<compile_context>
chip_gen: v7x
topology: tpu7x:2x2x1
jax: 0.10.0
libtpu: 0.0.40
codegen_flags: <defaults>
</compile_context>

<pallas_src>
import math

import jax
import jax.numpy as jnp
from jax import lax
from jax.experimental import pallas as pl
from jax.experimental.pallas import tpu as pltpu

D = 256            # d_model
NHEAD = 2
HEAD_DIM = D // NHEAD
FFN = 256          # dim_feedforward
NLAYERS = 2
EPS = 1e-5
LANE = 128
NEG_INF = -1e9


def _layernorm(x, gamma, beta):
    mu = jnp.mean(x, axis=-1, keepdims=True)
    var = jnp.mean((x - mu) ** 2, axis=-1, keepdims=True)
    return (x - mu) * lax.rsqrt(var + EPS) * gamma + beta


def _make_kernel(s_blk, n_agents, fin_pad):
    tokens = s_blk * n_agents

    def kernel(h_ref, mask_ref, wenc_ref,
               wqkv_ref, bqkv_ref, wo_ref, bo_ref,
               g1_ref, be1_ref, w1_ref, bb1_ref,
               w2_ref, bb2_ref, g2_ref, be2_ref,
               out_ref):
        # (s_blk, B, fin_pad) bf16 -> (tokens, fin_pad): leading-dim collapse only.
        h = h_ref[...].reshape(tokens, fin_pad)
        # encode_past (bias-free); K dim zero-padded to a lane multiple on the host.
        x0 = jnp.dot(h, wenc_ref[...], preferred_element_type=jnp.float32)
        mask = mask_ref[...]              # (tokens, tokens) block-diagonal additive mask
        x = x0

        for l in range(NLAYERS):          # static unroll over the two encoder layers
            # hoist per-layer vectors into locals (no repeated broadcasts)
            bqkv = bqkv_ref[l]
            bo = bo_ref[l]
            g1, be1 = g1_ref[l], be1_ref[l]
            bb1, bb2 = bb1_ref[l], bb2_ref[l]
            g2, be2 = g2_ref[l], be2_ref[l]

            # --- multi-head self attention (post-norm layer) ---
            # fused QKV projection; 1/sqrt(head_dim) is pre-folded into the Q block.
            qkv = jnp.dot(x.astype(jnp.bfloat16), wqkv_ref[l],
                          preferred_element_type=jnp.float32) + bqkv

            heads = []
            for hh in range(NHEAD):       # 128-lane aligned head slices
                lo, hi = hh * HEAD_DIM, (hh + 1) * HEAD_DIM
                qh = qkv[:, lo:hi]
                kh = qkv[:, D + lo:D + hi]
                vh = qkv[:, 2 * D + lo:2 * D + hi]
                # Q K^T without materializing a transpose: contract last axes of both.
                # Block-diagonal mask is added to the f32 scores BEFORE max/exp.
                scores = lax.dot_general(qh, kh, (((1,), (1,)), ((), ())),
                                         preferred_element_type=jnp.float32) + mask
                m = jnp.max(scores, axis=-1, keepdims=True)
                e = jnp.exp(scores - m)
                p = e * pl.reciprocal(jnp.sum(e, axis=-1, keepdims=True), approx=True)
                heads.append(jnp.dot(p, vh, preferred_element_type=jnp.float32))
            # heads occupy adjacent 128-lane halves -> layout-free concat, then a single
            # (tokens,256)x(256,256) output-projection matmul.
            oh = jnp.concatenate(heads, axis=-1)
            attn = jnp.dot(oh.astype(jnp.bfloat16), wo_ref[l],
                           preferred_element_type=jnp.float32) + bo
            x = _layernorm(x + attn, g1, be1)

            # --- feed forward ---
            ff = jnp.maximum(
                jnp.dot(x.astype(jnp.bfloat16), w1_ref[l],
                        preferred_element_type=jnp.float32) + bb1, 0.0)
            ff = jnp.dot(ff.astype(jnp.bfloat16), w2_ref[l],
                         preferred_element_type=jnp.float32) + bb2
            x = _layernorm(x + ff, g2, be2)

        # residual around the whole transformer: h_feat + h_feat_
        out_ref[...] = (x0 + x).reshape(s_blk, n_agents, D)

    return kernel


def init_params(key, past_len):
    fin = past_len * 6
    ks = jax.random.split(key, 13)
    s = 0.02
    scale = 1.0 / math.sqrt(HEAD_DIM)

    def w(k, shape):
        return (s * jax.random.normal(k, shape)).astype(jnp.float32)

    # fused QKV with the attention scale folded into the Q block (one-time rewrite).
    wq = w(ks[1], (NLAYERS, D, D)) * scale
    wk = w(ks[2], (NLAYERS, D, D))
    wv = w(ks[3], (NLAYERS, D, D))
    bq = w(ks[4], (NLAYERS, 1, D)) * scale
    bk = w(ks[5], (NLAYERS, 1, D))
    bv = w(ks[6], (NLAYERS, 1, D))

    params = dict(
        wenc=w(ks[0], (fin, D)).astype(jnp.bfloat16),        # Linear(past_len*6,256,bias=False)
        wqkv=jnp.concatenate([wq, wk, wv], axis=-1).astype(jnp.bfloat16),
        bqkv=jnp.concatenate([bq, bk, bv], axis=-1),          # f32 (vector math stays f32)
        wo=w(ks[7], (NLAYERS, D, D)).astype(jnp.bfloat16),
        bo=w(ks[8], (NLAYERS, 1, D)),
        g1=jnp.ones((NLAYERS, 1, D), jnp.float32),
        be1=jnp.zeros((NLAYERS, 1, D), jnp.float32),
        w1=w(ks[9], (NLAYERS, D, FFN)).astype(jnp.bfloat16),
        bb1=w(ks[10], (NLAYERS, 1, FFN)),
        w2=w(ks[11], (NLAYERS, FFN, D)).astype(jnp.bfloat16),
        bb2=w(ks[12], (NLAYERS, 1, D)),
        g2=jnp.ones((NLAYERS, 1, D), jnp.float32),
        be2=jnp.zeros((NLAYERS, 1, D), jnp.float32),
    )
    return params


_PARAM_ORDER = ("wenc", "wqkv", "bqkv", "wo", "bo", "g1", "be1",
                "w1", "bb1", "w2", "bb2", "g2", "be2")


def social_transformer_forward(h, mask, params, s_blk=None):
    """h: (S, B, past_len, 6) [or (B, past_len, 6)];  mask: (S, B, B) [or (B, B)].

    Returns (S, B, 1, 256) [or (B, 1, 256)], matching the PyTorch output per scene.
    """
    single = (h.ndim == 3)
    if single:
        h, mask = h[None], mask[None]
    S, B = h.shape[0], h.shape[1]
    fin = h.shape[2] * h.shape[3]

    # --- scene-block size: aim for 128-256 tokens per grid step (MXU fill on v5e/v6e/v7x)
    # while keeping >= 2 grid steps so dimension_semantics=("parallel",) can land work on
    # both v7x TensorCores.
    if s_blk is None:
        s_blk = max(1, min(256 // max(B, 1), S))
        if S > 1 and s_blk >= S:
            s_blk = pl.cdiv(S, 2)
    s_blk = max(1, min(s_blk, S))
    num_blocks = pl.cdiv(S, s_blk)
    s_pad = num_blocks * s_blk
    tokens = s_blk * B

    # --- flatten, pad scene count to a block multiple, pad encode_past contraction dim
    # to a lane multiple (lane-dense input DMA + first matmul), cast input to bf16.
    fin_pad = max(LANE, ((fin + LANE - 1) // LANE) * LANE)
    h_flat = h.reshape(S, B, fin).astype(jnp.float32)
    h_flat = jnp.pad(h_flat, ((0, s_pad - S), (0, 0), (0, fin_pad - fin)))
    h_flat = h_flat.astype(jnp.bfloat16)

    # block-diagonal additive mask (f32): per-scene mask on diagonal BxB blocks, -1e9
    # everywhere else.  (Built with `where`, not multiply, so -inf masks stay finite.)
    mask_f = jnp.pad(mask.astype(jnp.float32), ((0, s_pad - S), (0, 0), (0, 0)))
    m4 = mask_f.reshape(num_blocks, s_blk, B, B)
    same = jnp.eye(s_blk, dtype=bool)
    block_mask = jnp.where(same[None, :, None, :, None],
                           m4[:, :, :, None, :],
                           NEG_INF).reshape(num_blocks, tokens, tokens)

    wenc = jnp.pad(params["wenc"], ((0, fin_pad - params["wenc"].shape[0]), (0, 0)))
    weights = (wenc,) + tuple(params[n] for n in _PARAM_ORDER[1:])
    inputs = (h_flat, block_mask) + weights

    def resident_spec(shape):
        zeros = (0,) * len(shape)
        return pl.BlockSpec(tuple(shape), lambda s, _z=zeros: _z)

    in_specs = (
        [pl.BlockSpec((s_blk, B, fin_pad), lambda s: (s, 0, 0)),
         pl.BlockSpec((None, tokens, tokens), lambda s: (s, 0, 0))]
        + [resident_spec(w.shape) for w in weights])

    out = pl.pallas_call(
        _make_kernel(s_blk, B, fin_pad),
        out_shape=jax.ShapeDtypeStruct((s_pad, B, D), jnp.float32),
        grid=(num_blocks,),
        in_specs=in_specs,
        out_specs=pl.BlockSpec((s_blk, B, D), lambda s: (s, 0, 0)),
        compiler_params=pltpu.CompilerParams(
            dimension_semantics=("parallel",)),   # shard scene blocks across v7x's 2 TCs
    )(*inputs)

    out = out[:S, :, None, :]                     # (S, B, 1, 256)
    return out[0] if single else out


def reference_forward(h_flat, mask, p):
    """Pure-JAX per-scene reference (same bf16 weight path) — also validates that the
    block-diagonal batched attention has no cross-scene leakage."""
    def one(hs, ms):
        x0 = jnp.dot(hs.astype(jnp.bfloat16), p["wenc"],
                     preferred_element_type=jnp.float32)
        x = x0
        for l in range(NLAYERS):
            qkv = jnp.dot(x.astype(jnp.bfloat16), p["wqkv"][l],
                          preferred_element_type=jnp.float32) + p["bqkv"][l]
            attn = jnp.zeros_like(x)
            for hh in range(NHEAD):
                lo, hi = hh * HEAD_DIM, (hh + 1) * HEAD_DIM
                q = qkv[:, lo:hi]
                k = qkv[:, D + lo:D + hi]
                v = qkv[:, 2 * D + lo:2 * D + hi]
                s = jnp.dot(q, k.T, precision="highest") + ms
                pr = jax.nn.softmax(s, axis=-1)
                oh = jnp.dot(pr, v, precision="highest")
                attn = attn + jnp.dot(oh.astype(jnp.bfloat16), p["wo"][l, lo:hi, :],
                                      preferred_element_type=jnp.float32)
            x = _layernorm(x + attn + p["bo"][l], p["g1"][l], p["be1"][l])
            ff = jnp.maximum(jnp.dot(x.astype(jnp.bfloat16), p["w1"][l],
                                     preferred_element_type=jnp.float32) + p["bb1"][l], 0.0)
            ff = jnp.dot(ff.astype(jnp.bfloat16), p["w2"][l],
                         preferred_element_type=jnp.float32) + p["bb2"][l]
            x = _layernorm(x + ff, p["g2"][l], p["be2"][l])
        return x0 + x
    return jax.vmap(one)(h_flat, mask)


if __name__ == "__main__":
    past_len = 8
    B = 8          # agents per scene (= transformer sequence length)
    S = 8          # scenes batched through the grid (blocked S_BLK=4 -> 2 grid steps)
    key = jax.random.PRNGKey(0)
    k_h, k_m, k_p = jax.random.split(key, 3)

    h = jax.random.normal(k_h, (S, B, past_len, 6), dtype=jnp.float32)
    mask = 0.1 * jax.random.normal(k_m, (S, B, B), dtype=jnp.float32)  # float additive src_mask
    params = init_params(k_p, past_len)

    out = social_transformer_forward(h, mask, params)
    jax.block_until_ready(out)

    ref = reference_forward(h.reshape(S, B, -1), mask, params)
    assert out.shape == (S, B, 1, D)
    assert jnp.allclose(out[:, :, 0, :], ref, atol=1e-2, rtol=1e-2), (
        float(jnp.max(jnp.abs(out[:, :, 0, :] - ref))))

    # ragged scene count: exercises the scene-padding path (S not a multiple of S_BLK)
    S2 = 5
    h2, mask2 = h[:S2], mask[:S2]
    out2 = social_transformer_forward(h2, mask2, params)
    jax.block_until_ready(out2)
    ref2 = reference_forward(h2.reshape(S2, B, -1), mask2, params)
    assert out2.shape == (S2, B, 1, D)
    assert jnp.allclose(out2[:, :, 0, :], ref2, atol=1e-2, rtol=1e-2), (
        float(jnp.max(jnp.abs(out2[:, :, 0, :] - ref2))))

    print("KERNEL_OK")
</pallas_src>

<mosaic_0001>
module attributes {stable_mosaic.version = 11 : i64} {
  func.func @kernel(%arg0: i32, %arg1: memref<4x8x128xbf16, #tpu.memory_space<vmem>>, %arg2: memref<1x32x32xf32, #tpu.memory_space<vmem>>, %arg3: memref<128x256xbf16, #tpu.memory_space<vmem>>, %arg4: memref<2x256x768xbf16, #tpu.memory_space<vmem>>, %arg5: memref<2x1x768xf32, #tpu.memory_space<vmem>>, %arg6: memref<2x256x256xbf16, #tpu.memory_space<vmem>>, %arg7: memref<2x1x256xf32, #tpu.memory_space<vmem>>, %arg8: memref<2x1x256xf32, #tpu.memory_space<vmem>>, %arg9: memref<2x1x256xf32, #tpu.memory_space<vmem>>, %arg10: memref<2x256x256xbf16, #tpu.memory_space<vmem>>, %arg11: memref<2x1x256xf32, #tpu.memory_space<vmem>>, %arg12: memref<2x256x256xbf16, #tpu.memory_space<vmem>>, %arg13: memref<2x1x256xf32, #tpu.memory_space<vmem>>, %arg14: memref<2x1x256xf32, #tpu.memory_space<vmem>>, %arg15: memref<2x1x256xf32, #tpu.memory_space<vmem>>, %arg16: memref<4x8x256xf32, #tpu.memory_space<vmem>>) attributes {dimension_semantics = [#tpu.dimension_semantics<parallel>], iteration_bounds = array<i64: 2>, scalar_prefetch = 0 : i64, scratch_operands = 0 : i64, tpu.core_type = #tpu.core_type<tc>, window_params = [{transform_indices = @transform_0, window_bounds = array<i64: 4, 8, 128>}, {transform_indices = @transform_1, window_bounds = array<i64: 1, 32, 32>}, {pipeline_mode = #tpu.pipeline_mode<synchronous>, transform_indices = @transform_2, window_bounds = array<i64: 128, 256>}, {pipeline_mode = #tpu.pipeline_mode<synchronous>, transform_indices = @transform_3, window_bounds = array<i64: 2, 256, 768>}, {pipeline_mode = #tpu.pipeline_mode<synchronous>, transform_indices = @transform_4, window_bounds = array<i64: 2, 1, 768>}, {pipeline_mode = #tpu.pipeline_mode<synchronous>, transform_indices = @transform_5, window_bounds = array<i64: 2, 256, 256>}, {pipeline_mode = #tpu.pipeline_mode<synchronous>, transform_indices = @transform_6, window_bounds = array<i64: 2, 1, 256>}, {pipeline_mode = #tpu.pipeline_mode<synchronous>, transform_indices = @transform_7, window_bounds = array<i64: 2, 1, 256>}, {pipeline_mode = #tpu.pipeline_mode<synchronous>, transform_indices = @transform_8, window_bounds = array<i64: 2, 1, 256>}, {pipeline_mode = #tpu.pipeline_mode<synchronous>, transform_indices = @transform_9, window_bounds = array<i64: 2, 256, 256>}, {pipeline_mode = #tpu.pipeline_mode<synchronous>, transform_indices = @transform_10, window_bounds = array<i64: 2, 1, 256>}, {pipeline_mode = #tpu.pipeline_mode<synchronous>, transform_indices = @transform_11, window_bounds = array<i64: 2, 256, 256>}, {pipeline_mode = #tpu.pipeline_mode<synchronous>, transform_indices = @transform_12, window_bounds = array<i64: 2, 1, 256>}, {pipeline_mode = #tpu.pipeline_mode<synchronous>, transform_indices = @transform_13, window_bounds = array<i64: 2, 1, 256>}, {pipeline_mode = #tpu.pipeline_mode<synchronous>, transform_indices = @transform_14, window_bounds = array<i64: 2, 1, 256>}, {transform_indices = @transform_15, window_bounds = array<i64: 4, 8, 256>}]} {
    %c0 = arith.constant 0 : index
    %c0_0 = arith.constant 0 : index
    %c0_1 = arith.constant 0 : index
    %0 = vector.load %arg1[%c0, %c0_0, %c0_1] : memref<4x8x128xbf16, #tpu.memory_space<vmem>>, vector<4x8x128xbf16>
    %1 = vector.shape_cast %0 : vector<4x8x128xbf16> to vector<32x128xbf16>
    %c0_2 = arith.constant 0 : index
    %c0_3 = arith.constant 0 : index
    %2 = vector.load %arg3[%c0_2, %c0_3] : memref<128x256xbf16, #tpu.memory_space<vmem>>, vector<128x256xbf16>
    %cst = arith.constant dense<0.000000e+00> : vector<32x256xf32>
    %3 = tpu.matmul %1, %2, %cst {dimension_numbers = #tpu.dot_dimension_numbers<[1], [0], [0], [1], [0, 0, 1, 1], [], []>} : vector<32x128xbf16>, vector<128x256xbf16>, vector<32x256xf32> -> vector<32x256xf32>
    %c0_4 = arith.constant 0 : index
    %c0_5 = arith.constant 0 : index
    %c0_6 = arith.constant 0 : index
    %4 = vector.load %arg2[%c0_4, %c0_5, %c0_6] : memref<1x32x32xf32, #tpu.memory_space<vmem>>, vector<1x32x32xf32>
    %5 = vector.shape_cast %4 : vector<1x32x32xf32> to vector<32x32xf32>
    %c0_7 = arith.constant 0 : index
    %c0_8 = arith.constant 0 : index
    %c0_9 = arith.constant 0 : index
    %6 = vector.load %arg5[%c0_7, %c0_8, %c0_9] : memref<2x1x768xf32, #tpu.memory_space<vmem>>, vector<1x1x768xf32>
    %7 = vector.shape_cast %6 : vector<1x1x768xf32> to vector<1x768xf32>
    %c0_10 = arith.constant 0 : index
    %c0_11 = arith.constant 0 : index
    %c0_12 = arith.constant 0 : index
    %8 = vector.load %arg7[%c0_10, %c0_11, %c0_12] : memref<2x1x256xf32, #tpu.memory_space<vmem>>, vector<1x1x256xf32>
    %9 = vector.shape_cast %8 : vector<1x1x256xf32> to vector<1x256xf32>
    %c0_13 = arith.constant 0 : index
    %c0_14 = arith.constant 0 : index
    %c0_15 = arith.constant 0 : index
    %10 = vector.load %arg8[%c0_13, %c0_14, %c0_15] : memref<2x1x256xf32, #tpu.memory_space<vmem>>, vector<1x1x256xf32>
    %11 = vector.shape_cast %10 : vector<1x1x256xf32> to vector<1x256xf32>
    %c0_16 = arith.constant 0 : index
    %c0_17 = arith.constant 0 : index
    %c0_18 = arith.constant 0 : index
    %12 = vector.load %arg9[%c0_16, %c0_17, %c0_18] : memref<2x1x256xf32, #tpu.memory_space<vmem>>, vector<1x1x256xf32>
    %13 = vector.shape_cast %12 : vector<1x1x256xf32> to vector<1x256xf32>
    %c0_19 = arith.constant 0 : index
    %c0_20 = arith.constant 0 : index
    %c0_21 = arith.constant 0 : index
    %14 = vector.load %arg11[%c0_19, %c0_20, %c0_21] : memref<2x1x256xf32, #tpu.memory_space<vmem>>, vector<1x1x256xf32>
    %15 = vector.shape_cast %14 : vector<1x1x256xf32> to vector<1x256xf32>
    %c0_22 = arith.constant 0 : index
    %c0_23 = arith.constant 0 : index
    %c0_24 = arith.constant 0 : index
    %16 = vector.load %arg13[%c0_22, %c0_23, %c0_24] : memref<2x1x256xf32, #tpu.memory_space<vmem>>, vector<1x1x256xf32>
    %17 = vector.shape_cast %16 : vector<1x1x256xf32> to vector<1x256xf32>
    %c0_25 = arith.constant 0 : index
    %c0_26 = arith.constant 0 : index
    %c0_27 = arith.constant 0 : index
    %18 = vector.load %arg14[%c0_25, %c0_26, %c0_27] : memref<2x1x256xf32, #tpu.memory_space<vmem>>, vector<1x1x256xf32>
    %19 = vector.shape_cast %18 : vector<1x1x256xf32> to vector<1x256xf32>
    %c0_28 = arith.constant 0 : index
    %c0_29 = arith.constant 0 : index
    %c0_30 = arith.constant 0 : index
    %20 = vector.load %arg15[%c0_28, %c0_29, %c0_30] : memref<2x1x256xf32, #tpu.memory_space<vmem>>, vector<1x1x256xf32>
    %21 = vector.shape_cast %20 : vector<1x1x256xf32> to vector<1x256xf32>
    %22 = arith.truncf %3 : vector<32x256xf32> to vector<32x256xbf16>
    %c0_31 = arith.constant 0 : index
    %c0_32 = arith.constant 0 : index
    %c0_33 = arith.constant 0 : index
    %23 = vector.load %arg4[%c0_31, %c0_32, %c0_33] : memref<2x256x768xbf16, #tpu.memory_space<vmem>>, vector<1x256x768xbf16>
    %24 = vector.shape_cast %23 : vector<1x256x768xbf16> to vector<256x768xbf16>
    %cst_34 = arith.constant dense<0.000000e+00> : vector<32x768xf32>
    %25 = tpu.matmul %22, %24, %cst_34 {dimension_numbers = #tpu.dot_dimension_numbers<[1], [0], [0], [1], [0, 0, 1, 1], [], []>} : vector<32x256xbf16>, vector<256x768xbf16>, vector<32x768xf32> -> vector<32x768xf32>
    %26 = vector.broadcast %7 : vector<1x768xf32> to vector<32x768xf32>
    %27 = arith.addf %25, %26 : vector<32x768xf32>
    %28 = vector.extract_strided_slice %27 {offsets = [0, 0], sizes = [32, 128], strides = [1, 1]} : vector<32x768xf32> to vector<32x128xf32>
    %29 = vector.extract_strided_slice %27 {offsets = [0, 256], sizes = [32, 128], strides = [1, 1]} : vector<32x768xf32> to vector<32x128xf32>
    %30 = vector.extract_strided_slice %27 {offsets = [0, 512], sizes = [32, 128], strides = [1, 1]} : vector<32x768xf32> to vector<32x128xf32>
    %cst_35 = arith.constant dense<0.000000e+00> : vector<32x32xf32>
    %31 = tpu.matmul %28, %29, %cst_35 {dimension_numbers = #tpu.dot_dimension_numbers<[1], [1], [0], [0], [0, 0, 1, 0], [], []>} : vector<32x128xf32>, vector<32x128xf32>, vector<32x32xf32> -> vector<32x32xf32>
    %32 = arith.addf %31, %5 : vector<32x32xf32>
    %cst_36 = arith.constant dense<0xFF800000> : vector<32xf32>
    %33 = vector.multi_reduction <maximumf>, %32, %cst_36 [1] : vector<32x32xf32> to vector<32xf32>
    %34 = vector.shape_cast %33 : vector<32xf32> to vector<32x1xf32>
    %35 = vector.broadcast %34 : vector<32x1xf32> to vector<32x32xf32>
    %36 = arith.subf %32, %35 : vector<32x32xf32>
    %37 = math.exp %36 : vector<32x32xf32>
    %cst_37 = arith.constant dense<0.000000e+00> : vector<32xf32>
    %38 = vector.multi_reduction <add>, %37, %cst_37 [1] : vector<32x32xf32> to vector<32xf32>
    %39 = vector.shape_cast %38 : vector<32xf32> to vector<32x1xf32>
    %40 = tpu.reciprocal %39 {approx = true} : vector<32x1xf32> -> vector<32x1xf32>
    %41 = vector.broadcast %40 : vector<32x1xf32> to vector<32x32xf32>
    %42 = arith.mulf %37, %41 : vector<32x32xf32>
    %cst_38 = arith.constant dense<0.000000e+00> : vector<32x128xf32>
    %43 = tpu.matmul %42, %30, %cst_38 {dimension_numbers = #tpu.dot_dimension_numbers<[1], [0], [0], [1], [0, 0, 1, 1], [], []>} : vector<32x32xf32>, vector<32x128xf32>, vector<32x128xf32> -> vector<32x128xf32>
    %44 = vector.extract_strided_slice %27 {offsets = [0, 128], sizes = [32, 128], strides = [1, 1]} : vector<32x768xf32> to vector<32x128xf32>
    %45 = vector.extract_strided_slice %27 {offsets = [0, 384], sizes = [32, 128], strides = [1, 1]} : vector<32x768xf32> to vector<32x128xf32>
    %46 = vector.extract_strided_slice %27 {offsets = [0, 640], sizes = [32, 128], strides = [1, 1]} : vector<32x768xf32> to vector<32x128xf32>
    %cst_39 = arith.constant dense<0.000000e+00> : vector<32x32xf32>
    %47 = tpu.matmul %44, %45, %cst_39 {dimension_numbers = #tpu.dot_dimension_numbers<[1], [1], [0], [0], [0, 0, 1, 0], [], []>} : vector<32x128xf32>, vector<32x128xf32>, vector<32x32xf32> -> vector<32x32xf32>
    %48 = arith.addf %47, %5 : vector<32x32xf32>
    %cst_40 = arith.constant dense<0xFF800000> : vector<32xf32>
    %49 = vector.multi_reduction <maximumf>, %48, %cst_40 [1] : vector<32x32xf32> to vector<32xf32>
    %50 = vector.shape_cast %49 : vector<32xf32> to vector<32x1xf32>
    %51 = vector.broadcast %50 : vector<32x1xf32> to vector<32x32xf32>
    %52 = arith.subf %48, %51 : vector<32x32xf32>
    %53 = math.exp %52 : vector<32x32xf32>
    %cst_41 = arith.constant dense<0.000000e+00> : vector<32xf32>
    %54 = vector.multi_reduction <add>, %53, %cst_41 [1] : vector<32x32xf32> to vector<32xf32>
    %55 = vector.shape_cast %54 : vector<32xf32> to vector<32x1xf32>
    %56 = tpu.reciprocal %55 {approx = true} : vector<32x1xf32> -> vector<32x1xf32>
    %57 = vector.broadcast %56 : vector<32x1xf32> to vector<32x32xf32>
    %58 = arith.mulf %53, %57 : vector<32x32xf32>
    %cst_42 = arith.constant dense<0.000000e+00> : vector<32x128xf32>
    %59 = tpu.matmul %58, %46, %cst_42 {dimension_numbers = #tpu.dot_dimension_numbers<[1], [0], [0], [1], [0, 0, 1, 1], [], []>} : vector<32x32xf32>, vector<32x128xf32>, vector<32x128xf32> -> vector<32x128xf32>
    %60 = tpu.concatenate %43, %59 in 1 : vector<32x128xf32>, vector<32x128xf32> -> vector<32x256xf32>
    %61 = arith.truncf %60 : vector<32x256xf32> to vector<32x256xbf16>
    %c0_43 = arith.constant 0 : index
    %c0_44 = arith.constant 0 : index
    %c0_45 = arith.constant 0 : index
    %62 = vector.load %arg6[%c0_43, %c0_44, %c0_45] : memref<2x256x256xbf16, #tpu.memory_space<vmem>>, vector<1x256x256xbf16>
    %63 = vector.shape_cast %62 : vector<1x256x256xbf16> to vector<256x256xbf16>
    %cst_46 = arith.constant dense<0.000000e+00> : vector<32x256xf32>
    %64 = tpu.matmul %61, %63, %cst_46 {dimension_numbers = #tpu.dot_dimension_numbers<[1], [0], [0], [1], [0, 0, 1, 1], [], []>} : vector<32x256xbf16>, vector<256x256xbf16>, vector<32x256xf32> -> vector<32x256xf32>
    %65 = vector.broadcast %9 : vector<1x256xf32> to vector<32x256xf32>
    %66 = arith.addf %64, %65 : vector<32x256xf32>
    %67 = arith.addf %3, %66 : vector<32x256xf32>
    %cst_47 = arith.constant dense<0.000000e+00> : vector<32xf32>
    %68 = vector.multi_reduction <add>, %67, %cst_47 [1] : vector<32x256xf32> to vector<32xf32>
    %69 = vector.shape_cast %68 : vector<32xf32> to vector<32x1xf32>
    %cst_48 = arith.constant 2.560000e+02 : f32
    %70 = vector.broadcast %cst_48 : f32 to vector<32x1xf32>
    %71 = arith.divf %69, %70 : vector<32x1xf32>
    %72 = vector.broadcast %71 : vector<32x1xf32> to vector<32x256xf32>
    %73 = arith.subf %67, %72 : vector<32x256xf32>
    %74 = arith.mulf %73, %73 : vector<32x256xf32>
    %cst_49 = arith.constant dense<0.000000e+00> : vector<32xf32>
    %75 = vector.multi_reduction <add>, %74, %cst_49 [1] : vector<32x256xf32> to vector<32xf32>
    %76 = vector.shape_cast %75 : vector<32xf32> to vector<32x1xf32>
    %cst_50 = arith.constant 2.560000e+02 : f32
    %77 = vector.broadcast %cst_50 : f32 to vector<32x1xf32>
    %78 = arith.divf %76, %77 : vector<32x1xf32>
    %79 = vector.broadcast %71 : vector<32x1xf32> to vector<32x256xf32>
    %80 = arith.subf %67, %79 : vector<32x256xf32>
    %cst_51 = arith.constant 9.99999974E-6 : f32
    %81 = vector.broadcast %cst_51 : f32 to vector<32x1xf32>
    %82 = arith.addf %78, %81 : vector<32x1xf32>
    %83 = math.rsqrt %82 : vector<32x1xf32>
    %84 = vector.broadcast %83 : vector<32x1xf32> to vector<32x256xf32>
    %85 = arith.mulf %80, %84 : vector<32x256xf32>
    %86 = vector.broadcast %11 : vector<1x256xf32> to vector<32x256xf32>
    %87 = arith.mulf %85, %86 : vector<32x256xf32>
    %88 = vector.broadcast %13 : vector<1x256xf32> to vector<32x256xf32>
    %89 = arith.addf %87, %88 : vector<32x256xf32>
    %90 = arith.truncf %89 : vector<32x256xf32> to vector<32x256xbf16>
    %c0_52 = arith.constant 0 : index
    %c0_53 = arith.constant 0 : index
    %c0_54 = arith.constant 0 : index
    %91 = vector.load %arg10[%c0_52, %c0_53, %c0_54] : memref<2x256x256xbf16, #tpu.memory_space<vmem>>, vector<1x256x256xbf16>
    %92 = vector.shape_cast %91 : vector<1x256x256xbf16> to vector<256x256xbf16>
    %cst_55 = arith.constant dense<0.000000e+00> : vector<32x256xf32>
    %93 = tpu.matmul %90, %92, %cst_55 {dimension_numbers = #tpu.dot_dimension_numbers<[1], [0], [0], [1], [0, 0, 1, 1], [], []>} : vector<32x256xbf16>, vector<256x256xbf16>, vector<32x256xf32> -> vector<32x256xf32>
    %94 = vector.broadcast %15 : vector<1x256xf32> to vector<32x256xf32>
    %95 = arith.addf %93, %94 : vector<32x256xf32>
    %cst_56 = arith.constant 0.000000e+00 : f32
    %96 = vector.broadcast %cst_56 : f32 to vector<32x256xf32>
    %97 = arith.maximumf %95, %96 : vector<32x256xf32>
    %98 = arith.truncf %97 : vector<32x256xf32> to vector<32x256xbf16>
    %c0_57 = arith.constant 0 : index
    %c0_58 = arith.constant 0 : index
    %c0_59 = arith.constant 0 : index
    %99 = vector.load %arg12[%c0_57, %c0_58, %c0_59] : memref<2x256x256xbf16, #tpu.memory_space<vmem>>, vector<1x256x256xbf16>
    %100 = vector.shape_cast %99 : vector<1x256x256xbf16> to vector<256x256xbf16>
    %cst_60 = arith.constant dense<0.000000e+00> : vector<32x256xf32>
    %101 = tpu.matmul %98, %100, %cst_60 {dimension_numbers = #tpu.dot_dimension_numbers<[1], [0], [0], [1], [0, 0, 1, 1], [], []>} : vector<32x256xbf16>, vector<256x256xbf16>, vector<32x256xf32> -> vector<32x256xf32>
    %102 = vector.broadcast %17 : vector<1x256xf32> to vector<32x256xf32>
    %103 = arith.addf %101, %102 : vector<32x256xf32>
    %104 = arith.addf %89, %103 : vector<32x256xf32>
    %cst_61 = arith.constant dense<0.000000e+00> : vector<32xf32>
    %105 = vector.multi_reduction <add>, %104, %cst_61 [1] : vector<32x256xf32> to vector<32xf32>
    %106 = vector.shape_cast %105 : vector<32xf32> to vector<32x1xf32>
    %cst_62 = arith.constant 2.560000e+02 : f32
    %107 = vector.broadcast %cst_62 : f32 to vector<32x1xf32>
    %108 = arith.divf %106, %107 : vector<32x1xf32>
    %109 = vector.broadcast %108 : vector<32x1xf32> to vector<32x256xf32>
    %110 = arith.subf %104, %109 : vector<32x256xf32>
    %111 = arith.mulf %110, %110 : vector<32x256xf32>
    %cst_63 = arith.constant dense<0.000000e+00> : vector<32xf32>
    %112 = vector.multi_reduction <add>, %111, %cst_63 [1] : vector<32x256xf32> to vector<32xf32>
    %113 = vector.shape_cast %112 : vector<32xf32> to vector<32x1xf32>
    %cst_64 = arith.constant 2.560000e+02 : f32
    %114 = vector.broadcast %cst_64 : f32 to vector<32x1xf32>
    %115 = arith.divf %113, %114 : vector<32x1xf32>
    %116 = vector.broadcast %108 : vector<32x1xf32> to vector<32x256xf32>
    %117 = arith.subf %104, %116 : vector<32x256xf32>
    %cst_65 = arith.constant 9.99999974E-6 : f32
    %118 = vector.broadcast %cst_65 : f32 to vector<32x1xf32>
    %119 = arith.addf %115, %118 : vector<32x1xf32>
    %120 = math.rsqrt %119 : vector<32x1xf32>
    %121 = vector.broadcast %120 : vector<32x1xf32> to vector<32x256xf32>
    %122 = arith.mulf %117, %121 : vector<32x256xf32>
    %123 = vector.broadcast %19 : vector<1x256xf32> to vector<32x256xf32>
    %124 = arith.mulf %122, %123 : vector<32x256xf32>
    %125 = vector.broadcast %21 : vector<1x256xf32> to vector<32x256xf32>
    %126 = arith.addf %124, %125 : vector<32x256xf32>
    %c1 = arith.constant 1 : index
    %c0_66 = arith.constant 0 : index
    %c0_67 = arith.constant 0 : index
    %127 = vector.load %arg5[%c1, %c0_66, %c0_67] : memref<2x1x768xf32, #tpu.memory_space<vmem>>, vector<1x1x768xf32>
    %128 = vector.shape_cast %127 : vector<1x1x768xf32> to vector<1x768xf32>
    %c1_68 = arith.constant 1 : index
    %c0_69 = arith.constant 0 : index
    %c0_70 = arith.constant 0 : index
    %129 = vector.load %arg7[%c1_68, %c0_69, %c0_70] : memref<2x1x256xf32, #tpu.memory_space<vmem>>, vector<1x1x256xf32>
    %130 = vector.shape_cast %129 : vector<1x1x256xf32> to vector<1x256xf32>
    %c1_71 = arith.constant 1 : index
    %c0_72 = arith.constant 0 : index
    %c0_73 = arith.constant 0 : index
    %131 = vector.load %arg8[%c1_71, %c0_72, %c0_73] : memref<2x1x256xf32, #tpu.memory_space<vmem>>, vector<1x1x256xf32>
    %132 = vector.shape_cast %131 : vector<1x1x256xf32> to vector<1x256xf32>
    %c1_74 = arith.constant 1 : index
    %c0_75 = arith.constant 0 : index
    %c0_76 = arith.constant 0 : index
    %133 = vector.load %arg9[%c1_74, %c0_75, %c0_76] : memref<2x1x256xf32, #tpu.memory_space<vmem>>, vector<1x1x256xf32>
    %134 = vector.shape_cast %133 : vector<1x1x256xf32> to vector<1x256xf32>
    %c1_77 = arith.constant 1 : index
    %c0_78 = arith.constant 0 : index
    %c0_79 = arith.constant 0 : index
    %135 = vector.load %arg11[%c1_77, %c0_78, %c0_79] : memref<2x1x256xf32, #tpu.memory_space<vmem>>, vector<1x1x256xf32>
    %136 = vector.shape_cast %135 : vector<1x1x256xf32> to vector<1x256xf32>
    %c1_80 = arith.constant 1 : index
    %c0_81 = arith.constant 0 : index
    %c0_82 = arith.constant 0 : index
    %137 = vector.load %arg13[%c1_80, %c0_81, %c0_82] : memref<2x1x256xf32, #tpu.memory_space<vmem>>, vector<1x1x256xf32>
    %138 = vector.shape_cast %137 : vector<1x1x256xf32> to vector<1x256xf32>
    %c1_83 = arith.constant 1 : index
    %c0_84 = arith.constant 0 : index
    %c0_85 = arith.constant 0 : index
    %139 = vector.load %arg14[%c1_83, %c0_84, %c0_85] : memref<2x1x256xf32, #tpu.memory_space<vmem>>, vector<1x1x256xf32>
    %140 = vector.shape_cast %139 : vector<1x1x256xf32> to vector<1x256xf32>
    %c1_86 = arith.constant 1 : index
    %c0_87 = arith.constant 0 : index
    %c0_88 = arith.constant 0 : index
    %141 = vector.load %arg15[%c1_86, %c0_87, %c0_88] : memref<2x1x256xf32, #tpu.memory_space<vmem>>, vector<1x1x256xf32>
    %142 = vector.shape_cast %141 : vector<1x1x256xf32> to vector<1x256xf32>
    %143 = arith.truncf %126 : vector<32x256xf32> to vector<32x256xbf16>
    %c1_89 = arith.constant 1 : index
    %c0_90 = arith.constant 0 : index
    %c0_91 = arith.constant 0 : index
    %144 = vector.load %arg4[%c1_89, %c0_90, %c0_91] : memref<2x256x768xbf16, #tpu.memory_space<vmem>>, vector<1x256x768xbf16>
    %145 = vector.shape_cast %144 : vector<1x256x768xbf16> to vector<256x768xbf16>
    %cst_92 = arith.constant dense<0.000000e+00> : vector<32x768xf32>
    %146 = tpu.matmul %143, %145, %cst_92 {dimension_numbers = #tpu.dot_dimension_numbers<[1], [0], [0], [1], [0, 0, 1, 1], [], []>} : vector<32x256xbf16>, vector<256x768xbf16>, vector<32x768xf32> -> vector<32x768xf32>
    %147 = vector.broadcast %128 : vector<1x768xf32> to vector<32x768xf32>
    %148 = arith.addf %146, %147 : vector<32x768xf32>
    %149 = vector.extract_strided_slice %148 {offsets = [0, 0], sizes = [32, 128], strides = [1, 1]} : vector<32x768xf32> to vector<32x128xf32>
    %150 = vector.extract_strided_slice %148 {offsets = [0, 256], sizes = [32, 128], strides = [1, 1]} : vector<32x768xf32> to vector<32x128xf32>
    %151 = vector.extract_strided_slice %148 {offsets = [0, 512], sizes = [32, 128], strides = [1, 1]} : vector<32x768xf32> to vector<32x128xf32>
    %cst_93 = arith.constant dense<0.000000e+00> : vector<32x32xf32>
    %152 = tpu.matmul %149, %150, %cst_93 {dimension_numbers = #tpu.dot_dimension_numbers<[1], [1], [0], [0], [0, 0, 1, 0], [], []>} : vector<32x128xf32>, vector<32x128xf32>, vector<32x32xf32> -> vector<32x32xf32>
    %153 = arith.addf %152, %5 : vector<32x32xf32>
    %cst_94 = arith.constant dense<0xFF800000> : vector<32xf32>
    %154 = vector.multi_reduction <maximumf>, %153, %cst_94 [1] : vector<32x32xf32> to vector<32xf32>
    %155 = vector.shape_cast %154 : vector<32xf32> to vector<32x1xf32>
    %156 = vector.broadcast %155 : vector<32x1xf32> to vector<32x32xf32>
    %157 = arith.subf %153, %156 : vector<32x32xf32>
    %158 = math.exp %157 : vector<32x32xf32>
    %cst_95 = arith.constant dense<0.000000e+00> : vector<32xf32>
    %159 = vector.multi_reduction <add>, %158, %cst_95 [1] : vector<32x32xf32> to vector<32xf32>
    %160 = vector.shape_cast %159 : vector<32xf32> to vector<32x1xf32>
    %161 = tpu.reciprocal %160 {approx = true} : vector<32x1xf32> -> vector<32x1xf32>
    %162 = vector.broadcast %161 : vector<32x1xf32> to vector<32x32xf32>
    %163 = arith.mulf %158, %162 : vector<32x32xf32>
    %cst_96 = arith.constant dense<0.000000e+00> : vector<32x128xf32>
    %164 = tpu.matmul %163, %151, %cst_96 {dimension_numbers = #tpu.dot_dimension_numbers<[1], [0], [0], [1], [0, 0, 1, 1], [], []>} : vector<32x32xf32>, vector<32x128xf32>, vector<32x128xf32> -> vector<32x128xf32>
    %165 = vector.extract_strided_slice %148 {offsets = [0, 128], sizes = [32, 128], strides = [1, 1]} : vector<32x768xf32> to vector<32x128xf32>
    %166 = vector.extract_strided_slice %148 {offsets = [0, 384], sizes = [32, 128], strides = [1, 1]} : vector<32x768xf32> to vector<32x128xf32>
    %167 = vector.extract_strided_slice %148 {offsets = [0, 640], sizes = [32, 128], strides = [1, 1]} : vector<32x768xf32> to vector<32x128xf32>
    %cst_97 = arith.constant dense<0.000000e+00> : vector<32x32xf32>
    %168 = tpu.matmul %165, %166, %cst_97 {dimension_numbers = #tpu.dot_dimension_numbers<[1], [1], [0], [0], [0, 0, 1, 0], [], []>} : vector<32x128xf32>, vector<32x128xf32>, vector<32x32xf32> -> vector<32x32xf32>
    %169 = arith.addf %168, %5 : vector<32x32xf32>
    %cst_98 = arith.constant dense<0xFF800000> : vector<32xf32>
    %170 = vector.multi_reduction <maximumf>, %169, %cst_98 [1] : vector<32x32xf32> to vector<32xf32>
    %171 = vector.shape_cast %170 : vector<32xf32> to vector<32x1xf32>
    %172 = vector.broadcast %171 : vector<32x1xf32> to vector<32x32xf32>
    %173 = arith.subf %169, %172 : vector<32x32xf32>
    %174 = math.exp %173 : vector<32x32xf32>
    %cst_99 = arith.constant dense<0.000000e+00> : vector<32xf32>
    %175 = vector.multi_reduction <add>, %174, %cst_99 [1] : vector<32x32xf32> to vector<32xf32>
    %176 = vector.shape_cast %175 : vector<32xf32> to vector<32x1xf32>
    %177 = tpu.reciprocal %176 {approx = true} : vector<32x1xf32> -> vector<32x1xf32>
    %178 = vector.broadcast %177 : vector<32x1xf32> to vector<32x32xf32>
    %179 = arith.mulf %174, %178 : vector<32x32xf32>
    %cst_100 = arith.constant dense<0.000000e+00> : vector<32x128xf32>
    %180 = tpu.matmul %179, %167, %cst_100 {dimension_numbers = #tpu.dot_dimension_numbers<[1], [0], [0], [1], [0, 0, 1, 1], [], []>} : vector<32x32xf32>, vector<32x128xf32>, vector<32x128xf32> -> vector<32x128xf32>
    %181 = tpu.concatenate %164, %180 in 1 : vector<32x128xf32>, vector<32x128xf32> -> vector<32x256xf32>
    %182 = arith.truncf %181 : vector<32x256xf32> to vector<32x256xbf16>
    %c1_101 = arith.constant 1 : index
    %c0_102 = arith.constant 0 : index
    %c0_103 = arith.constant 0 : index
    %183 = vector.load %arg6[%c1_101, %c0_102, %c0_103] : memref<2x256x256xbf16, #tpu.memory_space<vmem>>, vector<1x256x256xbf16>
    %184 = vector.shape_cast %183 : vector<1x256x256xbf16> to vector<256x256xbf16>
    %cst_104 = arith.constant dense<0.000000e+00> : vector<32x256xf32>
    %185 = tpu.matmul %182, %184, %cst_104 {dimension_numbers = #tpu.dot_dimension_numbers<[1], [0], [0], [1], [0, 0, 1, 1], [], []>} : vector<32x256xbf16>, vector<256x256xbf16>, vector<32x256xf32> -> vector<32x256xf32>
    %186 = vector.broadcast %130 : vector<1x256xf32> to vector<32x256xf32>
    %187 = arith.addf %185, %186 : vector<32x256xf32>
    %188 = arith.addf %126, %187 : vector<32x256xf32>
    %cst_105 = arith.constant dense<0.000000e+00> : vector<32xf32>
    %189 = vector.multi_reduction <add>, %188, %cst_105 [1] : vector<32x256xf32> to vector<32xf32>
    %190 = vector.shape_cast %189 : vector<32xf32> to vector<32x1xf32>
    %cst_106 = arith.constant 2.560000e+02 : f32
    %191 = vector.broadcast %cst_106 : f32 to vector<32x1xf32>
    %192 = arith.divf %190, %191 : vector<32x1xf32>
    %193 = vector.broadcast %192 : vector<32x1xf32> to vector<32x256xf32>
    %194 = arith.subf %188, %193 : vector<32x256xf32>
    %195 = arith.mulf %194, %194 : vector<32x256xf32>
    %cst_107 = arith.constant dense<0.000000e+00> : vector<32xf32>
    %196 = vector.multi_reduction <add>, %195, %cst_107 [1] : vector<32x256xf32> to vector<32xf32>
    %197 = vector.shape_cast %196 : vector<32xf32> to vector<32x1xf32>
    %cst_108 = arith.constant 2.560000e+02 : f32
    %198 = vector.broadcast %cst_108 : f32 to vector<32x1xf32>
    %199 = arith.divf %197, %198 : vector<32x1xf32>
    %200 = vector.broadcast %192 : vector<32x1xf32> to vector<32x256xf32>
    %201 = arith.subf %188, %200 : vector<32x256xf32>
    %cst_109 = arith.constant 9.99999974E-6 : f32
    %202 = vector.broadcast %cst_109 : f32 to vector<32x1xf32>
    %203 = arith.addf %199, %202 : vector<32x1xf32>
    %204 = math.rsqrt %203 : vector<32x1xf32>
    %205 = vector.broadcast %204 : vector<32x1xf32> to vector<32x256xf32>
    %206 = arith.mulf %201, %205 : vector<32x256xf32>
    %207 = vector.broadcast %132 : vector<1x256xf32> to vector<32x256xf32>
    %208 = arith.mulf %206, %207 : vector<32x256xf32>
    %209 = vector.broadcast %134 : vector<1x256xf32> to vector<32x256xf32>
    %210 = arith.addf %208, %209 : vector<32x256xf32>
    %211 = arith.truncf %210 : vector<32x256xf32> to vector<32x256xbf16>
    %c1_110 = arith.constant 1 : index
    %c0_111 = arith.constant 0 : index
    %c0_112 = arith.constant 0 : index
    %212 = vector.load %arg10[%c1_110, %c0_111, %c0_112] : memref<2x256x256xbf16, #tpu.memory_space<vmem>>, vector<1x256x256xbf16>
    %213 = vector.shape_cast %212 : vector<1x256x256xbf16> to vector<256x256xbf16>
    %cst_113 = arith.constant dense<0.000000e+00> : vector<32x256xf32>
    %214 = tpu.matmul %211, %213, %cst_113 {dimension_numbers = #tpu.dot_dimension_numbers<[1], [0], [0], [1], [0, 0, 1, 1], [], []>} : vector<32x256xbf16>, vector<256x256xbf16>, vector<32x256xf32> -> vector<32x256xf32>
    %215 = vector.broadcast %136 : vector<1x256xf32> to vector<32x256xf32>
    %216 = arith.addf %214, %215 : vector<32x256xf32>
    %cst_114 = arith.constant 0.000000e+00 : f32
    %217 = vector.broadcast %cst_114 : f32 to vector<32x256xf32>
    %218 = arith.maximumf %216, %217 : vector<32x256xf32>
    %219 = arith.truncf %218 : vector<32x256xf32> to vector<32x256xbf16>
    %c1_115 = arith.constant 1 : index
    %c0_116 = arith.constant 0 : index
    %c0_117 = arith.constant 0 : index
    %220 = vector.load %arg12[%c1_115, %c0_116, %c0_117] : memref<2x256x256xbf16, #tpu.memory_space<vmem>>, vector<1x256x256xbf16>
    %221 = vector.shape_cast %220 : vector<1x256x256xbf16> to vector<256x256xbf16>
    %cst_118 = arith.constant dense<0.000000e+00> : vector<32x256xf32>
    %222 = tpu.matmul %219, %221, %cst_118 {dimension_numbers = #tpu.dot_dimension_numbers<[1], [0], [0], [1], [0, 0, 1, 1], [], []>} : vector<32x256xbf16>, vector<256x256xbf16>, vector<32x256xf32> -> vector<32x256xf32>
    %223 = vector.broadcast %138 : vector<1x256xf32> to vector<32x256xf32>
    %224 = arith.addf %222, %223 : vector<32x256xf32>
    %225 = arith.addf %210, %224 : vector<32x256xf32>
    %cst_119 = arith.constant dense<0.000000e+00> : vector<32xf32>
    %226 = vector.multi_reduction <add>, %225, %cst_119 [1] : vector<32x256xf32> to vector<32xf32>
    %227 = vector.shape_cast %226 : vector<32xf32> to vector<32x1xf32>
    %cst_120 = arith.constant 2.560000e+02 : f32
    %228 = vector.broadcast %cst_120 : f32 to vector<32x1xf32>
    %229 = arith.divf %227, %228 : vector<32x1xf32>
    %230 = vector.broadcast %229 : vector<32x1xf32> to vector<32x256xf32>
    %231 = arith.subf %225, %230 : vector<32x256xf32>
    %232 = arith.mulf %231, %231 : vector<32x256xf32>
    %cst_121 = arith.constant dense<0.000000e+00> : vector<32xf32>
    %233 = vector.multi_reduction <add>, %232, %cst_121 [1] : vector<32x256xf32> to vector<32xf32>
    %234 = vector.shape_cast %233 : vector<32xf32> to vector<32x1xf32>
    %cst_122 = arith.constant 2.560000e+02 : f32
    %235 = vector.broadcast %cst_122 : f32 to vector<32x1xf32>
    %236 = arith.divf %234, %235 : vector<32x1xf32>
    %237 = vector.broadcast %229 : vector<32x1xf32> to vector<32x256xf32>
    %238 = arith.subf %225, %237 : vector<32x256xf32>
    %cst_123 = arith.constant 9.99999974E-6 : f32
    %239 = vector.broadcast %cst_123 : f32 to vector<32x1xf32>
    %240 = arith.addf %236, %239 : vector<32x1xf32>
    %241 = math.rsqrt %240 : vector<32x1xf32>
    %242 = vector.broadcast %241 : vector<32x1xf32> to vector<32x256xf32>
    %243 = arith.mulf %238, %242 : vector<32x256xf32>
    %244 = vector.broadcast %140 : vector<1x256xf32> to vector<32x256xf32>
    %245 = arith.mulf %243, %244 : vector<32x256xf32>
    %246 = vector.broadcast %142 : vector<1x256xf32> to vector<32x256xf32>
    %247 = arith.addf %245, %246 : vector<32x256xf32>
    %248 = arith.addf %3, %247 : vector<32x256xf32>
    %249 = vector.shape_cast %248 : vector<32x256xf32> to vector<4x8x256xf32>
    %c0_124 = arith.constant 0 : index
    %c0_125 = arith.constant 0 : index
    %c0_126 = arith.constant 0 : index
    %250 = vector.load %arg16[%c0_124, %c0_125, %c0_126] : memref<4x8x256xf32, #tpu.memory_space<vmem>>, vector<4x8x256xf32>
    tpu.vector_store %arg16[%c0_124, %c0_125, %c0_126], %249 {strides = array<i32>} : memref<4x8x256xf32, #tpu.memory_space<vmem>>, vector<4x8x256xf32>,
    return
  }
  func.func @transform_0(%arg0: i32) -> (i32, i32, i32) {
    %c0_i32 = arith.constant 0 : i32
    %c0_i32_0 = arith.constant 0 : i32
    %c0_i32_1 = arith.constant 0 : i32
    return %arg0, %c0_i32, %c0_i32_0 : i32, i32, i32
  }
  func.func @transform_1(%arg0: i32) -> (i32, i32, i32) {
    %c0_i32 = arith.constant 0 : i32
    %c0_i32_0 = arith.constant 0 : i32
    %c0_i32_1 = arith.constant 0 : i32
    return %arg0, %c0_i32, %c0_i32_0 : i32, i32, i32
  }
  func.func @transform_2(%arg0: i32) -> (i32, i32) {
    %c0_i32 = arith.constant 0 : i32
    %c0_i32_0 = arith.constant 0 : i32
    %c0_i32_1 = arith.constant 0 : i32
    return %c0_i32, %c0_i32_0 : i32, i32
  }
  func.func @transform_3(%arg0: i32) -> (i32, i32, i32) {
    %c0_i32 = arith.constant 0 : i32
    %c0_i32_0 = arith.constant 0 : i32
    %c0_i32_1 = arith.constant 0 : i32
    %c0_i32_2 = arith.constant 0 : i32
    return %c0_i32, %c0_i32_0, %c0_i32_1 : i32, i32, i32
  }
  func.func @transform_4(%arg0: i32) -> (i32, i32, i32) {
    %c0_i32 = arith.constant 0 : i32
    %c0_i32_0 = arith.constant 0 : i32
    %c0_i32_1 = arith.constant 0 : i32
    %c0_i32_2 = arith.constant 0 : i32
    return %c0_i32, %c0_i32_0, %c0_i32_1 : i32, i32, i32
  }
  func.func @transform_5(%arg0: i32) -> (i32, i32, i32) {
    %c0_i32 = arith.constant 0 : i32
    %c0_i32_0 = arith.constant 0 : i32
    %c0_i32_1 = arith.constant 0 : i32
    %c0_i32_2 = arith.constant 0 : i32
    return %c0_i32, %c0_i32_0, %c0_i32_1 : i32, i32, i32
  }
  func.func @transform_6(%arg0: i32) -> (i32, i32, i32) {
    %c0_i32 = arith.constant 0 : i32
    %c0_i32_0 = arith.constant 0 : i32
    %c0_i32_1 = arith.constant 0 : i32
    %c0_i32_2 = arith.constant 0 : i32
    return %c0_i32, %c0_i32_0, %c0_i32_1 : i32, i32, i32
  }
  func.func @transform_7(%arg0: i32) -> (i32, i32, i32) {
    %c0_i32 = arith.constant 0 : i32
    %c0_i32_0 = arith.constant 0 : i32
    %c0_i32_1 = arith.constant 0 : i32
    %c0_i32_2 = arith.constant 0 : i32
    return %c0_i32, %c0_i32_0, %c0_i32_1 : i32, i32, i32
  }
  func.func @transform_8(%arg0: i32) -> (i32, i32, i32) {
    %c0_i32 = arith.constant 0 : i32
    %c0_i32_0 = arith.constant 0 : i32
    %c0_i32_1 = arith.constant 0 : i32
    %c0_i32_2 = arith.constant 0 : i32
    return %c0_i32, %c0_i32_0, %c0_i32_1 : i32, i32, i32
  }
  func.func @transform_9(%arg0: i32) -> (i32, i32, i32) {
    %c0_i32 = arith.constant 0 : i32
    %c0_i32_0 = arith.constant 0 : i32
    %c0_i32_1 = arith.constant 0 : i32
    %c0_i32_2 = arith.constant 0 : i32
    return %c0_i32, %c0_i32_0, %c0_i32_1 : i32, i32, i32
  }
  func.func @transform_10(%arg0: i32) -> (i32, i32, i32) {
    %c0_i32 = arith.constant 0 : i32
    %c0_i32_0 = arith.constant 0 : i32
    %c0_i32_1 = arith.constant 0 : i32
    %c0_i32_2 = arith.constant 0 : i32
    return %c0_i32, %c0_i32_0, %c0_i32_1 : i32, i32, i32
  }
  func.func @transform_11(%arg0: i32) -> (i32, i32, i32) {
    %c0_i32 = arith.constant 0 : i32
    %c0_i32_0 = arith.constant 0 : i32
    %c0_i32_1 = arith.constant 0 : i32
    %c0_i32_2 = arith.constant 0 : i32
    return %c0_i32, %c0_i32_0, %c0_i32_1 : i32, i32, i32
  }
  func.func @transform_12(%arg0: i32) -> (i32, i32, i32) {
    %c0_i32 = arith.constant 0 : i32
    %c0_i32_0 = arith.constant 0 : i32
    %c0_i32_1 = arith.constant 0 : i32
    %c0_i32_2 = arith.constant 0 : i32
    return %c0_i32, %c0_i32_0, %c0_i32_1 : i32, i32, i32
  }
  func.func @transform_13(%arg0: i32) -> (i32, i32, i32) {
    %c0_i32 = arith.constant 0 : i32
    %c0_i32_0 = arith.constant 0 : i32
    %c0_i32_1 = arith.constant 0 : i32
    %c0_i32_2 = arith.constant 0 : i32
    return %c0_i32, %c0_i32_0, %c0_i32_1 : i32, i32, i32
  }
  func.func @transform_14(%arg0: i32) -> (i32, i32, i32) {
    %c0_i32 = arith.constant 0 : i32
    %c0_i32_0 = arith.constant 0 : i32
    %c0_i32_1 = arith.constant 0 : i32
    %c0_i32_2 = arith.constant 0 : i32
    return %c0_i32, %c0_i32_0, %c0_i32_1 : i32, i32, i32
  }
  func.func @transform_15(%arg0: i32) -> (i32, i32, i32) {
    %c0_i32 = arith.constant 0 : i32
    %c0_i32_0 = arith.constant 0 : i32
    %c0_i32_1 = arith.constant 0 : i32
    return %arg0, %c0_i32, %c0_i32_0 : i32, i32, i32
  }
}

</mosaic_0001>

<bundles_post_ra>
// kernel: tpu_custom_call.1
= control target key start
LH: loop header
LB: loop body
LE: loop exit
PB: predicated region body
PF: predicated region fallthrough
CT: control target
= control target key end

     0   :  { %s8388_s0 = inlined_call_operand.hbm [shape: bf16[8,8,128], index: 0, kind: input, shape index: {}]   ;;  %s8389_s1 = inlined_call_operand.hbm [shape: f32[2,32,32], index: 1, kind: input, shape index: {}]   ;;  %s8390_s2 = inlined_call_operand.hbm [shape: bf16[128,256], index: 2, kind: input, shape index: {}]   ;;  %s8391_s3 = inlined_call_operand.hbm [shape: bf16[2,256,768], index: 3, kind: input, shape index: {}]   ;;  %s8392_s4 = inlined_call_operand.vmem [shape: f32[2,1,768], index: 4, kind: input, shape index: {}]   ;;  %s8393_s5 = inlined_call_operand.hbm [shape: bf16[2,256,256], index: 5, kind: input, shape index: {}]   ;;  %s8394_s6 = inlined_call_operand.vmem [shape: f32[2,1,256], index: 6, kind: input, shape index: {}]   ;;  %s8395_s7 = inlined_call_operand.vmem [shape: f32[2,1,256], index: 7, kind: input, shape index: {}]   ;;  %s8396_s8 = inlined_call_operand.vmem [shape: f32[2,1,256], index: 8, kind: input, shape index: {}]   ;;  %s8397_s9 = inlined_call_operand.hbm [shape: bf16[2,256,256], index: 9, kind: input, shape index: {}]   ;;  %s8398_s10 = inlined_call_operand.vmem [shape: f32[2,1,256], index: 10, kind: input, shape index: {}]   ;;  %s8399_s11 = inlined_call_operand.hbm [shape: bf16[2,256,256], index: 11, kind: input, shape index: {}]   ;;  %s8400_s12 = inlined_call_operand.vmem [shape: f32[2,1,256], index: 12, kind: input, shape index: {}]   ;;  %s8401_s13 = inlined_call_operand.vmem [shape: f32[2,1,256], index: 13, kind: input, shape index: {}]   ;;  %s8402_s14 = inlined_call_operand.vmem [shape: f32[2,1,256], index: 14, kind: input, shape index: {}]   ;;  %s8403_s15 = inlined_call_operand.hbm [shape: f32[8,8,256], index: 15, kind: output, shape index: {}]  }
   0x1   :  { %8417 = sst [smem:[#allocation22_spill]] %s8388_s0 }
   0x2   :  { %8418 = sst [smem:[#allocation23_spill]] %s8390_s2 }
   0x3   :  { %8419 = sst [smem:[#allocation24_spill]] %s8391_s3 }
   0x4   :  { %8420 = sst [smem:[#allocation25_spill]] %s8393_s5 }
   0x5   :  { %8421 = sst [smem:[#allocation26_spill]] %s8395_s7 }
   0x6   :  { %8422 = sst [smem:[#allocation27_spill]] %s8396_s8 }
   0x7   :  { %8423 = sst [smem:[#allocation28_spill]] %s8397_s9 }
   0x8   :  { %8424 = sst [smem:[#allocation29_spill]] %s8398_s10 }
   0x9   :  { %8425 = sst [smem:[#allocation30_spill]] %s8399_s11 }
   0xa   :  { %8426 = sst [smem:[#allocation31_spill]] %s8400_s12 }
   0xb   :  { %8427 = sst [smem:[#allocation32_spill]] %s8401_s13 }
   0xc   :  { %8428 = sst [smem:[#allocation33_spill]] %s8402_s14 }
   0xd   :  { %8429 = sst [smem:[#allocation34_spill]] %s8403_s15 }
   0xe   :  { %20 = vsyncpa [#allocation3], 0 }
   0xf   :  { %22 = vsyncpa [#allocation3 + $0x1], 0 }
  0x10   :  { %23 = vsyncpa [#allocation6], 0 }
  0x11   :  { %25 = vsyncpa [#allocation6 + $0x1], 0 }
  0x12   :  { %26 = vsyncpa [#allocation9], 0 }
  0x13   :  { %27 = vsyncpa [#allocation12], 0 }
  0x14   :  { %28 = vsyncpa [#allocation4], 0 }
  0x15   :  { %30 = vsyncpa [#allocation4 + $0x1], 0  ;;  %s7354_s18 = smov 0   ;;  %s7356_s19 = smov 0  }
  0x16   :  { %s7358_s20 = smov 0   ;;  %s7360_s21 = smov 0  }
  0x17 LB: > { %s7257_s22 = smov [#allocation7]   ;;  %s7375_s24 = sadd.s32 4294967295, %s7255_s21   ;;  %s7255_s21 = sphi %s7360_s21, %s8469_s21   ;;  %s7251_s20 = sphi %s7358_s20, %s8468_s20   ;;  %s7247_s19 = sphi %s7356_s19, %s8467_s19   ;;  %s7243_s18 = sphi %s7354_s18, %s8466_s18  }
  0x18   : > { %s404_s23 = sshll.u32 %s7257_s22, 4  ;;  %p5462_p0 = scmp.ge.s32.totalorder %s7255_s21, 1  ;;  %s7380_s23 = int_to_ptr.vmem [resolvable:$true] %s404_s23 }
  0x19   : > { %p8413_p1 = scmp.eq.s32.totalorder %s7375_s24, 0  ;;  %p392_p2 = scmp.lt.s32.totalorder %s7255_s21, 3 }
  0x1a   : > { %s7258_s26 = smov [#allocation8]   ;;  %s7259_s29 = smov [#allocation11]  }
  0x1b   : > { %p7382_p3 = pnand %p5462_p0, %p392_p2  ;;  %s417_s27 = sshll.u32 %s7258_s26, 4  ;;  %s7395_s27 = int_to_ptr.vmem [resolvable:$true] %s417_s27 }
  0x1c   : > { %s7397_s30 = sshll.u32 %s7259_s29, 4  ;;  %s8432_s2 = sld [smem:[#allocation23_spill]]  ;;  %s456_s30 = int_to_ptr.vmem [resolvable:$true] %s7397_s30 }
  0x1d   : > { %s8430_s25 = scalar_select %p7382_p3, 1, 0 }
  0x1e   : > { %p6186_p5 = pneg %p7382_p3 }
  0x20   : > { %p7391_p6 = pnand %p6186_p5, %p8413_p1 }
  0x22   : > { %s6973_s22 = scalar_lea.hbm %s8432_s2, 2048  ;;  %p7407_p8 = pneg %p7391_p6 }
  0x23   : > { %p6974_p7 = scmp.ne.s32.totalorder %s8432_s2, %s6973_s22  ;;  %p6980_p11 = scmp.lt.u32.totalorder %s6973_s22, %s8432_s2 }
  0x25   : > { %p6976_p9 = pnand %p7407_p8, %p6974_p7 }
  0x27   : > { %p6977_p10 = pneg %p6976_p9 }
  0x29   : > { %p6982_p12 = pnand %p6980_p11, %p6977_p10 }
  0x2b   : > { %6985 = shalt.err (!%p6982_p12)
}
  0x2c   : > { %s6986_s14 = scalar_lea.vmem %s7380_s23, 2048  ;;  %p6994_p5 = scmp.lt.s32.totalorder %s7380_s23, %s7380_s23 }
  0x2d   : > { %p6987_p13 = scmp.ne.s32.totalorder %s7380_s23, %s6986_s14  ;;  %p6995_p4 = scmp.lt.s32.totalorder %s6986_s14, %s6986_s14 }
  0x2f   : > { %p6989_p0 = pnand %p6987_p13, %p7407_p8  ;;  %p6996_p7 = por %p6995_p4, %p6994_p5 }
  0x31   : > { %p6990_p2 = pneg %p6989_p0 }
  0x33   : > { %p6997_p9 = pnand %p6996_p7, %p6990_p2 }
  0x35   : > { %7000 = shalt.err (!%p6997_p9)
}
  0x36   : > { %s8411_s15 = smov 128   ;;  %s8415_s13 = smov 8  }
  0x37   : > { %6189 = dma.hbm_to_vmem [thread:$0]  (!%p7391_p6), %s8432_s2, 2048, %s7380_s23, [#allocation6], %s8411_s15, %s8411_s15, %s8415_s13  }
  0x38   : > { %s8434_s3 = sld [smem:[#allocation24_spill]] }
  0x3e   : > { %s7001_s14 = scalar_lea.hbm %s8434_s3, 24576 }
  0x3f   : > { %p7002_p4 = scmp.ne.s32.totalorder %s8434_s3, %s7001_s14  ;;  %p7008_p12 = scmp.lt.u32.totalorder %s7001_s14, %s8434_s3 }
  0x41   : > { %p7004_p10 = pnand %p7002_p4, %p7407_p8 }
  0x43   : > { %p7005_p11 = pneg %p7004_p10 }
  0x45   : > { %p7010_p13 = pnand %p7008_p12, %p7005_p11 }
  0x47   : > { %7013 = shalt.err (!%p7010_p13)
}
  0x48   : > { %s7014_s23 = scalar_lea.vmem %s7395_s27, 24576  ;;  %p7022_p7 = scmp.lt.s32.totalorder %s7395_s27, %s7395_s27 }
  0x49   : > { %p7015_p0 = scmp.ne.s32.totalorder %s7395_s27, %s7014_s23  ;;  %p7023_p9 = scmp.lt.s32.totalorder %s7014_s23, %s7014_s23 }
  0x4b   : > { %p7017_p2 = pnand %p7015_p0, %p7407_p8  ;;  %p7024_p4 = por %p7023_p9, %p7022_p7 }
  0x4d   : > { %p7018_p5 = pneg %p7017_p2 }
  0x4f   : > { %p7025_p10 = pnand %p7024_p4, %p7018_p5 }
  0x51   : > { %7028 = shalt.err (!%p7025_p10)
}
  0x52   : > { %s7262_s10 = smov 384   ;;  %s7263_s7 = smov 24  }
  0x53   : > { %6192 = dma.hbm_to_vmem [thread:$0]  (!%p7391_p6), %s8434_s3, 24576, %s7395_s27, [#allocation9], %s7262_s10, %s7262_s10, %s7263_s7  }
  0x54   : > { %s8435_s9 = sld [smem:[#allocation28_spill]] }
  0x5a   : > { %s7029_s22 = scalar_lea.hbm %s8435_s9, 8192 }
  0x5b   : > { %p7030_p11 = scmp.ne.s32.totalorder %s8435_s9, %s7029_s22  ;;  %p7036_p0 = scmp.lt.u32.totalorder %s7029_s22, %s8435_s9 }
  0x5d   : > { %p7032_p12 = pnand %p7030_p11, %p7407_p8 }
  0x5f   : > { %p7033_p13 = pneg %p7032_p12 }
  0x61   : > { %p7038_p2 = pnand %p7036_p0, %p7033_p13 }
  0x63   : > { %7041 = shalt.err (!%p7038_p2)
}
  0x64   : > { %s7042_s8 = scalar_lea.vmem %s456_s30, 8192  ;;  %p7050_p4 = scmp.lt.s32.totalorder %s456_s30, %s456_s30 }
  0x65   : > { %p7043_p5 = scmp.ne.s32.totalorder %s456_s30, %s7042_s8  ;;  %p7051_p10 = scmp.lt.s32.totalorder %s7042_s8, %s7042_s8 }
  0x67   : > { %p7045_p7 = pnand %p7043_p5, %p7407_p8  ;;  %p7052_p1 = por %p7051_p10, %p7050_p4 }
  0x69   : > { %p7046_p9 = pneg %p7045_p7 }
  0x6b   : > { %p7053_p3 = pnand %p7052_p1, %p7046_p9 }
  0x6d   : > { %7056 = shalt.err (!%p7053_p3)
}
  0x6e   : > { %s8436_s27 = smov 128   ;;  %s7264_s7 = smov [#allocation10]  }
  0x6f   : > { %6198 = dma.hbm_to_vmem [thread:$0]  (!%p7391_p6), %s8435_s9, 8192, %s456_s30, [#allocation12], %s8436_s27, %s8436_s27, %s8415_s13  }
  0x70   : > { %s433_s12 = sshll.u32 %s7264_s7, 4  ;;  %s7265_s16 = smov [#allocation13]   ;;  %s434_s12 = int_to_ptr.vmem [resolvable:$true] %s433_s12 }
  0x71   : > { %s471_s17 = sshll.u32 %s7265_s16, 4  ;;  %s8437_s5 = sld [smem:[#allocation25_spill]]  ;;  %s472_s17 = int_to_ptr.vmem [resolvable:$true] %s471_s17 }
  0x77   : > { %s7057_s14 = scalar_lea.hbm %s8437_s5, 8192 }
  0x78   : > { %p7058_p1 = scmp.ne.s32.totalorder %s8437_s5, %s7057_s14  ;;  %p7064_p12 = scmp.lt.u32.totalorder %s7057_s14, %s8437_s5 }
  0x7a   : > { %p7060_p3 = pnand %p7058_p1, %p7407_p8 }
  0x7c   : > { %p7061_p11 = pneg %p7060_p3 }
  0x7e   : > { %p7066_p13 = pnand %p7064_p12, %p7061_p11 }
  0x80   : > { %7069 = shalt.err (!%p7066_p13)
}
  0x81   : > { %s7070_s30 = scalar_lea.vmem %s434_s12, 8192  ;;  %p7078_p7 = scmp.lt.s32.totalorder %s434_s12, %s434_s12 }
  0x82   : > { %p7071_p0 = scmp.ne.s32.totalorder %s434_s12, %s7070_s30  ;;  %p7079_p9 = scmp.lt.s32.totalorder %s7070_s30, %s7070_s30 }
  0x84   : > { %p7073_p2 = pnand %p7071_p0, %p7407_p8  ;;  %p7080_p4 = por %p7079_p9, %p7078_p7 }
  0x86   : > { %p7074_p5 = pneg %p7073_p2 }
  0x88   : > { %p7081_p10 = pnand %p7080_p4, %p7074_p5 }
  0x8a   : > { %7084 = shalt.err (!%p7081_p10)
}
  0x8b   : > { %6195 = dma.hbm_to_vmem [thread:$0]  (!%p7391_p6), %s8437_s5, 8192, %s434_s12, [#allocation9], %s8436_s27, %s8436_s27, %s8415_s13  }
  0x8c   : > { %s8438_s11 = sld [smem:[#allocation30_spill]] }
  0x92   : > { %s7085_s22 = scalar_lea.hbm %s8438_s11, 8192 }
  0x93   : > { %p7086_p1 = scmp.ne.s32.totalorder %s8438_s11, %s7085_s22  ;;  %p7092_p12 = scmp.lt.u32.totalorder %s7085_s22, %s8438_s11 }
  0x95   : > { %p7088_p3 = pnand %p7086_p1, %p7407_p8 }
  0x97   : > { %p7089_p11 = pneg %p7088_p3 }
  0x99   : > { %p7094_p13 = pnand %p7092_p12, %p7089_p11 }
  0x9b   : > { %7097 = shalt.err (!%p7094_p13)
}
  0x9c   : > { %s7098_s15 = scalar_lea.vmem %s472_s17, 8192  ;;  %p7106_p7 = scmp.lt.s32.totalorder %s472_s17, %s472_s17 }
  0x9d   : > { %p7099_p0 = scmp.ne.s32.totalorder %s472_s17, %s7098_s15  ;;  %p7107_p9 = scmp.lt.s32.totalorder %s7098_s15, %s7098_s15 }
  0x9f   : > { %p7101_p2 = pnand %p7099_p0, %p7407_p8  ;;  %p7108_p4 = por %p7107_p9, %p7106_p7 }
  0xa1   : > { %p7102_p5 = pneg %p7101_p2 }
  0xa3   : > { %p7109_p10 = pnand %p7108_p4, %p7102_p5 }
  0xa5   : > { %7112 = shalt.err (!%p7109_p10)
}
  0xa6   : > { %6201 = dma.hbm_to_vmem [thread:$0]  (!%p7391_p6), %s8438_s11, 8192, %s472_s17, [#allocation12], %s8436_s27, %s8436_s27, %s8415_s13  }
  0xa7   : > { %s5461_s28 = sadd.s32 4294967294, %s7255_s21   ;;  %s7520_s26 = sadd.s32 1, %s7255_s21  }
  0xa8   : > { %s43_s2 = sadd.s32 1, %s7251_s20  ;;  %s40_s10 = ssub.s32 %s7255_s21, %s7520_s26 }
  0xa9   : > { %p50_p8 = scmp.ne.s32.totalorder %s7251_s20, %s7247_s19  ;;  %p41_p1 = scmp.eq.s32.totalorder %s40_s10, 0 }
  0xaa   : > { %p51_p3 = scmp.eq.s32.totalorder %s7255_s21, 0  ;;  %p56_p11 = scmp.ne.s32.totalorder %s7247_s19, %s7243_s18 }
  0xab   : > { %p379_p12 = scmp.eq.s32.totalorder %s7375_s24, 1  ;;  %p8440_p0 = scmp.eq.s32.totalorder %s7375_s24, 0 }
  0xac   : > { %s7532_s7 = scalar_select %p41_p1, %s7251_s20, %s43_s2  }
  0xad   : > { %p52_p13 = por %p51_p3, %p50_p8  ;;  %p7536_p2 = por %p8440_p0, %p56_p11 }
  0xae   : > { %8439 = sst [smem:[#allocation21_spill]] %s7532_s7  ;;  %p7540_p6 = por %p379_p12, %p50_p8 }
  0xaf   : > { %p385_p5 = scmp.eq.s32.totalorder %s5461_s28, 1  ;;  %p6218_p7 = scmp.lt.s32.totalorder %s7255_s21, 2 }
  0xb0   : > { %s8442_s17 = scalar_select %p7540_p6, 1, 0 }
  0xb1   : > { %s7546_s22 = sand.u32 1, %s7251_s20   ;;  %p7548_p9 = por %p385_p5, %p56_p11 }
  0xb2   : > { %s5469_s14 = sshll.u32 %s7546_s22, 4  ;;  %s5916_s23 = sshll.u32 %s7255_s21, 8 }
  0xb3   : > { %s8443_s29 = scalar_select %p7548_p9, 1, 0 }
  0xb4   : > { %s8444_s0 = sld [smem:[#allocation22_spill]]  ;;  %s498_s30 = scalar_lea.vmem [#allocation2], %s5469_s14 }
  0xb5   : > { %s505_s28 = sshll.u32 %s498_s30, 4  ;;  %p7559_p4 = pnand %p6218_p7, %p52_p13  ;;  %s7563_s28 = int_to_ptr.vmem [resolvable:$true] %s505_s28 }
  0xb7   : > { %p7115_p8 = pneg %p7559_p4 }
  0xba   : > { %s7557_s12 = scalar_lea.hbm %s8444_s0, %s5916_s23  ;;  %s7118_s8 = scalar_lea.hbm %s8444_s0, 512 }
  0xbb   : > { %s7113_s13 = scalar_lea.hbm %s7557_s12, 256  ;;  %p7119_p11 = scmp.lt.u32.totalorder %s7557_s12, %s8444_s0 }
  0xbc   : > { %p7114_p10 = scmp.ne.s32.totalorder %s7557_s12, %s7113_s13  ;;  %p7120_p12 = scmp.lt.u32.totalorder %s7118_s8, %s7113_s13 }
  0xbd   : > { %p7122_p0 = scmp.lt.u32.totalorder %s7113_s13, %s7557_s12 }
  0xbe   : > { %p7116_p1 = pnand %p7115_p8, %p7114_p10  ;;  %p7121_p13 = por %p7120_p12, %p7119_p11 }
  0xc0   : > { %p7117_p3 = pneg %p7116_p1  ;;  %p7123_p5 = por %p7122_p0, %p7121_p13 }
  0xc2   : > { %p7124_p7 = pnand %p7123_p5, %p7117_p3 }
  0xc4   : > { %7127 = shalt.err (!%p7124_p7)
}
  0xc5   : > { %s7128_s10 = scalar_lea.vmem %s7563_s28, 256  ;;  %s7266_s23 = smov [#allocation2]  }
  0xc6   : > { %p7129_p10 = scmp.ne.s32.totalorder %s7563_s28, %s7128_s10  ;;  %s7133_s14 = sshll.u32 %s7266_s23, 4  ;;  %s7134_s14 = int_to_ptr.vmem [resolvable:$false] %s7133_s14 }
  0xc7   : > { %s7135_s15 = scalar_lea.vmem %s7134_s14, 512  ;;  %p7136_p6 = scmp.lt.s32.totalorder %s7563_s28, %s7134_s14 }
  0xc8   : > { %p7131_p1 = pnand %p7129_p10, %p7115_p8  ;;  %p7137_p11 = scmp.lt.s32.totalorder %s7135_s15, %s7128_s10 }
  0xca   : > { %p7132_p9 = pneg %p7131_p1  ;;  %p7138_p12 = por %p7137_p11, %p7136_p6 }
  0xcc   : > { %p7139_p13 = pnand %p7138_p12, %p7132_p9 }
  0xce   : > { %7142 = shalt.err (!%p7139_p13)
}
  0xcf   : > { %s7267_s13 = smov 64   ;;  %s7268_s8 = smov 4  }
  0xd0   : > { %s8446_s30 = scalar_lea.sflag [#allocation3], %s7546_s22  ;;  %s515_s23 = sand.u32 1, %s7255_s21  }
  0xd1   : > { %6205 = dma.hbm_to_vmem [thread:$0]  (!%p7559_p4), %s7557_s12, 256, %s7563_s28, %s8446_s30, %s7267_s13, %s7267_s13, %s7268_s8  }
  0xd2   : > { %s5472_s0 = sshll.u32 %s7546_s22, 5  ;;  %s5917_s14 = sshll.u32 %s7255_s21, 9 }
  0xd3   : > { %s519_s10 = scalar_lea.vmem [#allocation5], %s5472_s0  ;;  %s7599_s9 = scalar_lea.hbm %s8389_s1, %s5917_s14 }
  0xd4   : > { %s526_s15 = sshll.u32 %s519_s10, 4  ;;  %s7603_s11 = scalar_lea.sflag [#allocation6], %s515_s23  ;;  %s7601_s15 = int_to_ptr.vmem [resolvable:$true] %s526_s15 }
  0xd5   : > { %s7143_s7 = scalar_lea.hbm %s7599_s9, 512  ;;  %s7148_s3 = scalar_lea.hbm %s8389_s1, 1024 }
  0xd6   : > { %p7144_p6 = scmp.ne.s32.totalorder %s7599_s9, %s7143_s7  ;;  %p7149_p0 = scmp.lt.u32.totalorder %s7599_s9, %s8389_s1 }
  0xd7   : > { %p7150_p5 = scmp.lt.u32.totalorder %s7148_s3, %s7143_s7  ;;  %p7152_p10 = scmp.lt.u32.totalorder %s7143_s7, %s7599_s9 }
  0xd8   : > { %p7146_p9 = pnand %p7144_p6, %p7115_p8 }
  0xd9   : > { %p7151_p7 = por %p7150_p5, %p7149_p0 }
  0xda   : > { %p7147_p3 = pneg %p7146_p9 }
  0xdb   : > { %p7153_p1 = por %p7152_p10, %p7151_p7 }
  0xdd   : > { %p7154_p11 = pnand %p7153_p1, %p7147_p3 }
  0xdf   : > { %7157 = shalt.err (!%p7154_p11)
}
  0xe0   : > { %s7158_s28 = scalar_lea.vmem %s7601_s15, 512  ;;  %s7269_s13 = smov [#allocation5]  }
  0xe1   : > { %p7159_p12 = scmp.ne.s32.totalorder %s7601_s15, %s7158_s28  ;;  %s7163_s8 = sshll.u32 %s7269_s13, 4  ;;  %s7164_s8 = int_to_ptr.vmem [resolvable:$false] %s7163_s8 }
  0xe2   : > { %s7165_s30 = scalar_lea.vmem %s7164_s8, 1024  ;;  %p7166_p9 = scmp.lt.s32.totalorder %s7601_s15, %s7164_s8 }
  0xe3   : > { %p7161_p13 = pnand %p7159_p12, %p7115_p8  ;;  %p7167_p0 = scmp.lt.s32.totalorder %s7165_s30, %s7158_s28 }
  0xe5   : > { %p7162_p6 = pneg %p7161_p13  ;;  %p7168_p5 = por %p7167_p0, %p7166_p9 }
  0xe7   : > { %p7169_p7 = pnand %p7168_p5, %p7162_p6 }
  0xe9   : > { %7172 = shalt.err (!%p7169_p7)
}
  0xea   : > { %s8447_s7 = smov 8   ;;  %p8448_p8 = scmp.ne.s32.totalorder %s8430_s25, 0 }
  0xeb   : > { %6208 = dma.hbm_to_vmem [thread:$0]  (!%p7559_p4), %s7599_s9, 512, %s7601_s15, %s7603_s11, %s8436_s27, %s8436_s27, %s8447_s7  }
  0xec   : > { %538 = sbr.rel (%p8448_p8) target bundleno = 5639 (0x1607), region = 80  ;;  %s7635_s23 = sand.u32 (!%p8448_p8), 1, %s7247_s19  }
  0xed   : > { %s5476_s14 = sshll.u32 (!%p8448_p8), %s7635_s23, 4  ;;  %s541_s10 = scalar_lea.sflag (!%p8448_p8), [#allocation3], %s7635_s23 }
  0xee   : > { %s7639_s0 = scalar_lea.vmem (!%p8448_p8), [#allocation2], %s5476_s14 }
  0xf3   : > { %7218 = dma.done.wait (%p7536_p2), %s541_s10, 256  }
  0xf4   : > { %7220 = vsyncadd (%p7536_p2), %s541_s10, 4294967040  ;;  %s549_s9 = sand.u32 1, %s7375_s24   ;;  %s5477_s11 = sshll.u32 %s7635_s23, 5 }
  0xf5   : > { %s550_s25 = scalar_lea.sflag [#allocation6], %s549_s9  ;;  %s7647_s27 = scalar_lea.vmem [#allocation5], %s5477_s11 }
  0xf6   : > { %7222 = dma.done.wait (%p7536_p2), %s550_s25, 512  }
  0xf7   : > { %7224 = vsyncadd (%p7536_p2), %s550_s25, 4294966784  ;;  %p8449_p4 = scmp.eq.s32.totalorder %s7375_s24, 0 }
  0xf9   : > { %7226 = dma.done.wait (%p8449_p4), [#allocation6], 2048   ;;  %p8450_p3 = pmov %p8449_p4 }
  0xfb   : > { %7228 = vsyncadd (%p8450_p3), [#allocation6], 4294965248  ;;  %p8451_p10 = pmov %p8450_p3 }
  0xfc   : > { %p8452_p1 = pmov %p8450_p3 }
  0xfd   : > { %7230 = dma.done.wait (%p8451_p10), [#allocation9], 32768  }
  0xfe   : > { %7232 = vsyncadd (%p8452_p1), [#allocation9], 4294934528  ;;  %p8453_p11 = pmov %p8452_p1 }
  0xff   : > { %p8454_p12 = pmov %p8452_p1 }
 0x100   : > { %7234 = dma.done.wait (%p8453_p11), [#allocation12], 16384  }
 0x101   : > { %7236 = vsyncadd (%p8454_p12), [#allocation12], 4294950912  ;;  %v7270_v0 = vmov 0   ;;  %v6271_v1 = vld [vmem:[#allocation7 + $0x4] ss:$8 sps:$4 sm:$0xff]   ;;  %vm1660_vm0 = vcmask 261120  }
 0x102   : > { %772 = vmatprep.mubr.bf16.mxu1 %v7270_v0  ;;  %v6273_v2 = vld [vmem:[#allocation7] ss:$8 sps:$4 sm:$0xff]   ;;  %740 = vmatprep.subr.bf16.mxu1 %v6271_v1  ;;  %v6274_v3 = vld [vmem:[#allocation7 + $0x14] ss:$8 sps:$4 sm:$0xff]   ;;  %v6276_v4 = vld [vmem:[#allocation7 + $0x10] ss:$8 sps:$4 sm:$0xff]  }
 0x103   : > { %741 = vmatpush1.bf16.msra.mxu1 %v6273_v2  ;;  %v6277_v5 = vld [vmem:[#allocation7 + $0x24] ss:$8 sps:$4 sm:$0xff]   ;;  %v6279_v6 = vld [vmem:[#allocation7 + $0x20] ss:$8 sps:$4 sm:$0xff]   ;;  %v6280_v7 = vld [vmem:[#allocation7 + $0x34] ss:$8 sps:$4 sm:$0xff]  }
 0x104   : > { %742 = vmatprep.subr.bf16.mxu1 %v6274_v3  ;;  %v6282_v8 = vld [vmem:[#allocation7 + $0x30] ss:$8 sps:$4 sm:$0xff]   ;;  %v6283_v9 = vld [vmem:[#allocation7 + $0x44] ss:$8 sps:$4 sm:$0xff]   ;;  %v6285_v10 = vld [vmem:[#allocation7 + $0x40] ss:$8 sps:$4 sm:$0xff]  }
 0x105   : > { %v6300_v11 = vld [vmem:[#allocation8 + $0xc] ss:$24 sps:$4 sm:$0xff]   ;;  %v6302_v12 = vld [vmem:[#allocation8 + $0x8] ss:$24 sps:$4 sm:$0xff]   ;;  %v6286_v13 = vld [vmem:[#allocation7 + $0x54] ss:$8 sps:$4 sm:$0xff]  }
 0x106   : > { %1469 = vmatprep.subr.bf16.mxu0 %v6300_v11  ;;  %v6306_v14 = vld [vmem:[#allocation8 + $0x3c] ss:$24 sps:$4 sm:$0xff]   ;;  %v6308_v15 = vld [vmem:[#allocation8 + $0x38] ss:$24 sps:$4 sm:$0xff]   ;;  %v6289_v17 = vld [vmem:[#allocation7 + $0x64] ss:$8 sps:$4 sm:$0xff]  }
 0x107   : > { %743 = vmatpush1.bf16.msra.mxu1 %v6276_v4  ;;  %1470 = vmatpush1.bf16.msra.mxu0 %v6302_v12  ;;  %v6288_v16 = vld [vmem:[#allocation7 + $0x50] ss:$8 sps:$4 sm:$0xff]   ;;  %v6312_v18 = vld [vmem:[#allocation8 + $0x6c] ss:$24 sps:$4 sm:$0xff]   ;;  %v6314_v19 = vld [vmem:[#allocation8 + $0x68] ss:$24 sps:$4 sm:$0xff]  }
 0x108   : > { %744 = vmatprep.subr.bf16.mxu1 %v6277_v5  ;;  %1471 = vmatprep.subr.bf16.mxu0 %v6306_v14  ;;  %v6318_v20 = vld [vmem:[#allocation8 + $0x9c] ss:$24 sps:$4 sm:$0xff]   ;;  %v6291_v21 = vld [vmem:[#allocation7 + $0x60] ss:$8 sps:$4 sm:$0xff]   ;;  %v6320_v23 = vld [vmem:[#allocation8 + $0x98] ss:$24 sps:$4 sm:$0xff]  }
 0x109   : > { %v6292_v22 = vld [vmem:[#allocation7 + $0x74] ss:$8 sps:$4 sm:$0xff]   ;;  %v6324_v24 = vld [vmem:[#allocation8 + $0xcc] ss:$24 sps:$4 sm:$0xff]   ;;  %v6294_v25 = vld [vmem:[#allocation7 + $0x70] ss:$8 sps:$4 sm:$0xff]  }
 0x10a   : > { %v6299_v26 = vld [vmem:[#allocation8 + $0x4] ss:$24 sps:$4 sm:$0xff]   ;;  %v6326_v28 = vld [vmem:[#allocation8 + $0xc8] ss:$24 sps:$4 sm:$0xff]   ;;  %v6305_v31 = vld [vmem:[#allocation8 + $0x34] ss:$24 sps:$4 sm:$0xff]  }
 0x10b   : > { %745 = vmatpush1.bf16.msra.mxu1 %v6279_v6  ;;  %1472 = vmatpush1.bf16.msra.mxu0 %v6308_v15  ;;  %v6295_v27 = vld [vmem:[%s7639_s0] sm:$0xff]   ;;  %v6296_v36 = vld [vmem:[%s7639_s0 + $0x8] sm:$0xff]   ;;  %s8455_s12 = sld [smem:[#allocation26_spill]]  ;;  %s8456_s8 = sld [smem:[#allocation27_spill]] }
 0x10c   : > { %746 = vmatprep.subr.bf16.mxu1 %v6280_v7  ;;  %1473 = vmatprep.subr.bf16.mxu0 %v6312_v18  ;;  %v6330_v29 = vld [vmem:[#allocation8 + $0xfc] ss:$24 sps:$4 sm:$0xff]   ;;  %v6297_v30 = vld [vmem:[#allocation8] ss:$24 sps:$4 sm:$0xff]   ;;  %v6336_v33 = vld [vmem:[#allocation8 + $0x12c] ss:$24 sps:$4 sm:$0xff]  }
 0x10d   : > { %v6332_v32 = vld [vmem:[#allocation8 + $0xf8] ss:$24 sps:$4 sm:$0xff]   ;;  %v6311_v35 = vld [vmem:[#allocation8 + $0x64] ss:$24 sps:$4 sm:$0xff]   ;;  %v6338_v37 = vld [vmem:[#allocation8 + $0x128] ss:$24 sps:$4 sm:$0xff]  }
 0x10e   : > { %v6303_v34 = vld [vmem:[#allocation8 + $0x30] ss:$24 sps:$4 sm:$0xff]   ;;  %v6342_v38 = vld [vmem:[#allocation8 + $0x15c] ss:$24 sps:$4 sm:$0xff]   ;;  %v6309_v39 = vld [vmem:[#allocation8 + $0x60] ss:$24 sps:$4 sm:$0xff]  }
 0x10f   : > { %747 = vmatpush1.bf16.msra.mxu1 %v6282_v8  ;;  %1474 = vmatpush1.bf16.msra.mxu0 %v6314_v19  ;;  %v6317_v40 = vld [vmem:[#allocation8 + $0x94] ss:$24 sps:$4 sm:$0xff]   ;;  %v6344_v41 = vld [vmem:[#allocation8 + $0x158] ss:$24 sps:$4 sm:$0xff]   ;;  %v6323_v44 = vld [vmem:[#allocation8 + $0xc4] ss:$24 sps:$4 sm:$0xff]  }
 0x110   : > { %748 = vmatprep.subr.bf16.mxu1 %v6283_v9  ;;  %1475 = vmatprep.subr.bf16.mxu0 %v6318_v20  ;;  %v6348_v42 = vld [vmem:[#allocation8 + $0x18c] ss:$24 sps:$4 sm:$0xff]   ;;  %v6315_v43 = vld [vmem:[#allocation8 + $0x90] ss:$24 sps:$4 sm:$0xff]   ;;  %v6354_v46 = vld [vmem:[#allocation8 + $0x1bc] ss:$24 sps:$4 sm:$0xff]  }
 0x111   : > { %v6350_v45 = vld [vmem:[#allocation8 + $0x188] ss:$24 sps:$4 sm:$0xff]   ;;  %v6329_v48 = vld [vmem:[#allocation8 + $0xf4] ss:$24 sps:$4 sm:$0xff]   ;;  %v6356_v50 = vld [vmem:[#allocation8 + $0x1b8] ss:$24 sps:$4 sm:$0xff]  }
 0x112   : > { %v6321_v47 = vld [vmem:[#allocation8 + $0xc0] ss:$24 sps:$4 sm:$0xff]   ;;  %v6327_v49 = vld [vmem:[#allocation8 + $0xf0] ss:$24 sps:$4 sm:$0xff]   ;;  %v6335_v51 = vld [vmem:[#allocation8 + $0x124] ss:$24 sps:$4 sm:$0xff]  }
 0x113   : > { %749 = vmatpush1.bf16.msra.mxu1 %v6285_v10  ;;  %1476 = vmatpush1.bf16.msra.mxu0 %v6320_v23  ;;  %v6360_v52 = vld [vmem:[#allocation8 + $0x1ec] ss:$24 sps:$4 sm:$0xff]   ;;  %v6362_v53 = vld [vmem:[#allocation8 + $0x1e8] ss:$24 sps:$4 sm:$0xff]   ;;  %v6366_v54 = vld [vmem:[#allocation8 + $0x21c] ss:$24 sps:$4 sm:$0xff]  }
 0x114   : > { %750 = vmatprep.subr.bf16.mxu1 %v6286_v13  ;;  %1477 = vmatprep.subr.bf16.mxu0 %v6324_v24  ;;  %v6333_v55 = vld [vmem:[#allocation8 + $0x120] ss:$24 sps:$4 sm:$0xff]   ;;  %v6341_v56 = vld [vmem:[#allocation8 + $0x154] ss:$24 sps:$4 sm:$0xff]   ;;  %v6339_v59 = vld [vmem:[#allocation8 + $0x150] ss:$24 sps:$4 sm:$0xff]  }
 0x115   : > { %v6368_v57 = vld [vmem:[#allocation8 + $0x218] ss:$24 sps:$4 sm:$0xff]   ;;  %v6372_v58 = vld [vmem:[#allocation8 + $0x24c] ss:$24 sps:$4 sm:$0xff]   ;;  %v6374_v61 = vld [vmem:[#allocation8 + $0x248] ss:$24 sps:$4 sm:$0xff]  }
 0x116   : > { %v6347_v60 = vld [vmem:[#allocation8 + $0x184] ss:$24 sps:$4 sm:$0xff]   ;;  %v6345_v63 = vld [vmem:[#allocation8 + $0x180] ss:$24 sps:$4 sm:$0xff]   ;;  %v6351_v3 = vld [vmem:[#allocation8 + $0x1b0] ss:$24 sps:$4 sm:$0xff]  }
 0x117   : > { %751 = vmatpush1.bf16.msra.mxu1 %v6288_v16  ;;  %1478 = vmatpush1.bf16.msra.mxu0 %v6326_v28  ;;  %v6378_v62 = vld [vmem:[#allocation8 + $0x27c] ss:$24 sps:$4 sm:$0xff]   ;;  %v6380_v1 = vld [vmem:[#allocation8 + $0x278] ss:$24 sps:$4 sm:$0xff]   ;;  %v6384_v2 = vld [vmem:[#allocation8 + $0x2ac] ss:$24 sps:$4 sm:$0xff]  }
 0x118   : > { %752 = vmatprep.subr.bf16.mxu1 %v6289_v17  ;;  %1479 = vmatprep.subr.bf16.mxu0 %v6330_v29  ;;  %v6359_v4 = vld [vmem:[#allocation8 + $0x1e4] ss:$24 sps:$4 sm:$0xff]   ;;  %v6357_v5 = vld [vmem:[#allocation8 + $0x1e0] ss:$24 sps:$4 sm:$0xff]   ;;  %v6365_v6 = vld [vmem:[#allocation8 + $0x214] ss:$24 sps:$4 sm:$0xff]  }
 0x119   : > { %v6363_v7 = vld [vmem:[#allocation8 + $0x210] ss:$24 sps:$4 sm:$0xff]   ;;  %v6371_v8 = vld [vmem:[#allocation8 + $0x244] ss:$24 sps:$4 sm:$0xff]   ;;  %v6369_v9 = vld [vmem:[#allocation8 + $0x240] ss:$24 sps:$4 sm:$0xff]  }
 0x11a   : > { %v6377_v10 = vld [vmem:[#allocation8 + $0x274] ss:$24 sps:$4 sm:$0xff]   ;;  %v6375_v11 = vld [vmem:[#allocation8 + $0x270] ss:$24 sps:$4 sm:$0xff]   ;;  %v6383_v12 = vld [vmem:[#allocation8 + $0x2a4] ss:$24 sps:$4 sm:$0xff]  }
 0x11b   : > { %753 = vmatpush1.bf16.msra.mxu1 %v6291_v21  ;;  %1480 = vmatpush1.bf16.msra.mxu0 %v6332_v32  ;;  %v6381_v13 = vld [vmem:[#allocation8 + $0x2a0] ss:$24 sps:$4 sm:$0xff]   ;;  %v6389_v15 = vld [vmem:[#allocation8 + $0x2d4] ss:$24 sps:$4 sm:$0xff]   ;;  %v6387_v16 = vld [vmem:[#allocation8 + $0x2d0] ss:$24 sps:$4 sm:$0xff]  }
 0x11c   : > { %754 = vmatprep.subr.bf16.mxu1 %v6292_v22  ;;  %1481 = vmatprep.subr.bf16.mxu0 %v6336_v33  ;;  %v6386_v14 = vld [vmem:[#allocation8 + $0x2a8] ss:$24 sps:$4 sm:$0xff]   ;;  %v6390_v17 = vld [vmem:[#allocation8 + $0x2dc] ss:$24 sps:$4 sm:$0xff]   ;;  %v6392_v18 = vld [vmem:[#allocation8 + $0x2d8] ss:$24 sps:$4 sm:$0xff]  }
 0x11d   : > { %v6395_v19 = vld [vmem:[#allocation8 + $0x14] ss:$24 sps:$4 sm:$0xff]   ;;  %v6396_v29 = vld [vmem:[#allocation8 + $0x40] ss:$24 sps:$4 sm:$0xff]   ;;  %s8457_s14 = sld [smem:[#allocation29_spill]]  ;;  %s8458_s9 = sld [smem:[#allocation31_spill]] }
 0x11e   : > { %s8459_s16 = sld [smem:[#allocation32_spill]]  ;;  %s8460_s22 = sld [smem:[#allocation33_spill]] }
 0x11f   : > { %755 = vmatpush1.bf16.msra.mxu1 %v6294_v25  ;;  %1482 = vmatpush1.bf16.msra.mxu0 %v6338_v37  ;;  %v6404_v37 = vld [vmem:[#allocation8 + $0xa4] ss:$24 sps:$4 sm:$0xff]   ;;  %s5483_s28 = sshll.u32 %s7635_s23, 6  ;;  %s5919_s30 = sshll.u32 %s7375_s24, 10 }
 0x120   : > { %1416 = vmatprep.subr.bf16.mxu1 %v6299_v26  ;;  %1483 = vmatprep.subr.bf16.mxu0 %v6342_v38  ;;  %v6393_v26 = vld [vmem:[#allocation8 + $0x10] ss:$24 sps:$4 sm:$0xff]   ;;  %v6402_v38 = vld [vmem:[#allocation8 + $0xa0] ss:$24 sps:$4 sm:$0xff]   ;;  %s8321_s13 = scalar_lea.vmem [#allocation14], %s5483_s28  ;;  %s8461_s11 = sld [smem:[#allocation34_spill]] }
 0x121   : > { %s5318_s7 = sshll.u32 %s8321_s13, 4  ;;  %s5304_s24 = scalar_lea.sflag [#allocation4], %s7635_s23  ;;  %s8338_s7 = int_to_ptr.vmem [resolvable:$true] %s5318_s7 }
 0x122   : > { %773 = vmatmul.mubr.bf16.vlgmr.msra.gmra.mrb[0].mxu1 %v6295_v27  ;;  %v6398_v27 = vld [vmem:[#allocation8 + $0x44] ss:$24 sps:$4 sm:$0xff]   ;;  %s7173_s2 = scalar_lea.vmem %s8338_s7, 1024  ;;  %p8462_p13 = scmp.ne.s32.totalorder %s8442_s17, 0 }
 0x123   : > { %782 = vmatprep.mubr.bf16.mxu1 %v7270_v0  ;;  %1417 = vmatpush1.bf16.msra.mxu1 %v6297_v30  ;;  %v6353_v0 = vld [vmem:[#allocation8 + $0x1b4] ss:$24 sps:$4 sm:$0xff]   ;;  %p7174_p2 = scmp.ne.s32.totalorder %s8338_s7, %s7173_s2  ;;  %s7271_s15 = smov [#allocation14]  }
 0x124   : > { %1418 = vmatprep.subr.bf16.mxu1 %v6305_v31  ;;  %1484 = vmatpush1.bf16.msra.mxu0 %v6344_v41  ;;  %v6401_v31 = vld [vmem:[#allocation8 + $0x74] ss:$24 sps:$4 sm:$0xff]   ;;  %v6410_v41 = vld [vmem:[#allocation8 + $0x104] ss:$24 sps:$4 sm:$0xff]   ;;  %s7177_s3 = sshll.u32 %s7271_s15, 4  ;;  %s7178_s3 = int_to_ptr.vmem [resolvable:$false] %s7177_s3 }
 0x125   : > { %1485 = vmatprep.subr.bf16.mxu0 %v6348_v42  ;;  %v6408_v42 = vld [vmem:[#allocation8 + $0x100] ss:$24 sps:$4 sm:$0xff]   ;;  %p7175_p6 = pnand %p7174_p2, %p8462_p13  ;;  %s7179_s5 = scalar_lea.vmem %s7178_s3, 2048 }
 0x126   : > { %s8336_s25 = scalar_lea.hbm %s8461_s11, %s5919_s30  ;;  %p7180_p0 = scmp.lt.s32.totalorder %s8338_s7, %s7178_s3 }
 0x127   : > { %1419 = vmatpush1.bf16.msra.mxu1 %v6303_v34  ;;  %p7176_p9 = pneg %p7175_p6  ;;  %p7181_p5 = scmp.lt.s32.totalorder %s7179_s5, %s7173_s2 }
 0x128   : > { %1420 = vmatprep.subr.bf16.mxu1 %v6311_v35  ;;  %1486 = vmatpush1.bf16.msra.mxu0 %v6350_v45  ;;  %v6416_v45 = vld [vmem:[#allocation8 + $0x164] ss:$24 sps:$4 sm:$0xff]  }
 0x129   : > { %1487 = vmatprep.subr.bf16.mxu0 %v6354_v46  ;;  %v6414_v46 = vld [vmem:[#allocation8 + $0x160] ss:$24 sps:$4 sm:$0xff]   ;;  %p7182_p7 = por %p7181_p5, %p7180_p0 }
 0x12a   : > { %783 = vmatmul.mubr.bf16.gmra.mrb[4].mxu1 %v6296_v36  ;;  %v6399_v36 = vld [vmem:[#allocation8 + $0x70] ss:$24 sps:$4 sm:$0xff]  }
 0x12b   : > { %1421 = vmatpush1.bf16.msra.mxu1 %v6309_v39  ;;  %v6407_v39 = vld [vmem:[#allocation8 + $0xd4] ss:$24 sps:$4 sm:$0xff]   ;;  %p7183_p8 = pnand %p7182_p7, %p7176_p9 }
 0x12c   : > { %1422 = vmatprep.subr.bf16.mxu1 %v6317_v40  ;;  %1488 = vmatpush1.bf16.msra.mxu0 %v6356_v50  ;;  %v6405_v40 = vld [vmem:[#allocation8 + $0xd0] ss:$24 sps:$4 sm:$0xff]   ;;  %v6420_v50 = vld [vmem:[#allocation8 + $0x1c0] ss:$24 sps:$4 sm:$0xff]  }
 0x12d   : > { %1489 = vmatprep.subr.bf16.mxu0 %v6360_v52  ;;  %v6423_v52 = vld [vmem:[#allocation8 + $0x1f0] ss:$24 sps:$4 sm:$0xff]  }
 0x12f   : > { %1423 = vmatpush1.bf16.msra.mxu1 %v6315_v43  ;;  %v6413_v43 = vld [vmem:[#allocation8 + $0x134] ss:$24 sps:$4 sm:$0xff]  }
 0x130   : > { %1424 = vmatprep.subr.bf16.mxu1 %v6323_v44  ;;  %1490 = vmatpush1.bf16.msra.mxu0 %v6362_v53  ;;  %v6411_v44 = vld [vmem:[#allocation8 + $0x130] ss:$24 sps:$4 sm:$0xff]   ;;  %v6428_v53 = vld [vmem:[#allocation8 + $0x224] ss:$24 sps:$4 sm:$0xff]  }
 0x131   : > { %1491 = vmatprep.subr.bf16.mxu0 %v6366_v54  ;;  %v6426_v54 = vld [vmem:[#allocation8 + $0x220] ss:$24 sps:$4 sm:$0xff]  }
 0x133   : > { %1425 = vmatpush1.bf16.msra.mxu1 %v6321_v47  ;;  %v6419_v47 = vld [vmem:[#allocation8 + $0x194] ss:$24 sps:$4 sm:$0xff]  }
 0x134   : > { %1426 = vmatprep.subr.bf16.mxu1 %v6329_v48  ;;  %1492 = vmatpush1.bf16.msra.mxu0 %v6368_v57  ;;  %v6417_v48 = vld [vmem:[#allocation8 + $0x190] ss:$24 sps:$4 sm:$0xff]   ;;  %v6434_v57 = vld [vmem:[#allocation8 + $0x284] ss:$24 sps:$4 sm:$0xff]  }
 0x135   : > { %1493 = vmatprep.subr.bf16.mxu0 %v6372_v58  ;;  %v6432_v58 = vld [vmem:[#allocation8 + $0x280] ss:$24 sps:$4 sm:$0xff]  }
 0x137   : > { %1427 = vmatpush1.bf16.msra.mxu1 %v6327_v49  ;;  %v6422_v49 = vld [vmem:[#allocation8 + $0x1c4] ss:$24 sps:$4 sm:$0xff]  }
 0x138   : > { %1428 = vmatprep.subr.bf16.mxu1 %v6335_v51  ;;  %1494 = vmatpush1.bf16.msra.mxu0 %v6374_v61  ;;  %v6425_v51 = vld [vmem:[#allocation8 + $0x1f4] ss:$24 sps:$4 sm:$0xff]   ;;  %v6440_v61 = vld [vmem:[#allocation8 + $0x2e4] ss:$24 sps:$4 sm:$0xff]  }
 0x139   : > { %1495 = vmatprep.subr.bf16.mxu0 %v6378_v62  ;;  %v6438_v62 = vld [vmem:[#allocation8 + $0x2e0] ss:$24 sps:$4 sm:$0xff]  }
 0x13b   : > { %1429 = vmatpush1.bf16.msra.mxu1 %v6333_v55  ;;  %v6431_v55 = vld [vmem:[#allocation8 + $0x254] ss:$24 sps:$4 sm:$0xff]  }
 0x13c   : > { %1430 = vmatprep.subr.bf16.mxu1 %v6341_v56  ;;  %1496 = vmatpush1.bf16.msra.mxu0 %v6380_v1  ;;  %v6429_v56 = vld [vmem:[#allocation8 + $0x250] ss:$24 sps:$4 sm:$0xff]  }
 0x13d   : > { %1497 = vmatprep.subr.bf16.mxu0 %v6384_v2  ;;  %v7711_v2 = vld [vmem:[%s8392_s4] sm:$0x3f] }
 0x13f   : > { %1431 = vmatpush1.bf16.msra.mxu1 %v6339_v59  ;;  %v6437_v59 = vld [vmem:[#allocation8 + $0x2b4] ss:$24 sps:$4 sm:$0xff]  }
 0x140   : > { %1432 = vmatprep.subr.bf16.mxu1 %v6347_v60  ;;  %1498 = vmatpush1.bf16.msra.mxu0 %v6386_v14  ;;  %v6435_v60 = vld [vmem:[#allocation8 + $0x2b0] ss:$24 sps:$4 sm:$0xff]  }
 0x141   : > { %1499 = vmatprep.subr.bf16.mxu0 %v6390_v17 }
 0x143   : > { %1433 = vmatpush1.bf16.msra.mxu1 %v6345_v63  ;;  %v906_v63 = vlaneseq }
 0x144   : > { %1434 = vmatprep.subr.bf16.mxu1 %v6353_v0  ;;  %1500 = vmatpush1.bf16.msra.mxu0 %v6392_v18 }
 0x145   : > { %v7703_v0 = vshrl.u32 %v906_v63, 7 }
 0x147   : > { %1435 = vmatpush1.bf16.msra.mxu1 %v6351_v3  ;;  %v7706_v1 = vsub.s32 0, %v7703_v0  ;;  %v916_v3 = vsub.s32 2, %v7703_v0 }
 0x148   : > { %1436 = vmatprep.subr.bf16.mxu1 %v6359_v4  ;;  %v920_v4 = vsub.s32 3, %v7703_v0 }
 0x14b   : > { %1437 = vmatpush1.bf16.msra.mxu1 %v6357_v5  ;;  %v909_v5 = vrot.slane %v7711_v2, %v7706_v1 }
 0x14c   : > { %1438 = vmatprep.subr.bf16.mxu1 %v6365_v6  ;;  %v917_v6 = vrot.slane %v7711_v2, %v916_v3 }
 0x14f   : > { %1439 = vmatpush1.bf16.msra.mxu1 %v6363_v7 }
 0x150   : > { %1440 = vmatprep.subr.bf16.mxu1 %v6371_v8 }
 0x153   : > { %1441 = vmatpush1.bf16.msra.mxu1 %v6369_v9  ;;  %v921_v9 = vrot.slane %v7711_v2, %v920_v4 }
 0x154   : > { %1442 = vmatprep.subr.bf16.mxu1 %v6377_v10 }
 0x157   : > { %1443 = vmatpush1.bf16.msra.mxu1 %v6375_v11 }
 0x158   : > { %1444 = vmatprep.subr.bf16.mxu1 %v6383_v12 }
 0x15b   : > { %1445 = vmatpush1.bf16.msra.mxu1 %v6381_v13 }
 0x15c   : > { %1446 = vmatprep.subr.bf16.mxu1 %v6389_v15 }
 0x15f   : > { %1447 = vmatpush1.bf16.msra.mxu1 %v6387_v16 }
 0x160   : > { %1522 = vmatprep.subr.bf16.mxu1 %v6395_v19 }
 0x1f5   : > { %v7669_v20 = vpop.f32.mrb[0].mxu1 }
 0x1f6   : > { %v7671_v21 = vpop.f32.mrb[1].mxu1 }
 0x1f7   : > { %v7673_v22 = vpop.f32.mrb[2].mxu1 }
 0x1f8   : > { %v7677_v23 = vpack.c.bf16 %v7673_v22, %v7669_v20  ;;  %v7679_v24 = vpop.f32.mrb[3].mxu1 }
 0x1f9   : > { %v806_v25 = vpack.c.bf16 %v7679_v24, %v7671_v21 }
 0x1fb   : > { %1448 = vmatprep.mubr.bf16.mxu1 %v806_v25  ;;  %1501 = vmatprep.mubr.bf16.mxu0 %v806_v25 }
 0x1fc   : > { %1449 = vmatmul.mubr.bf16.vlgmr.msra.gmra.mrb[8].mxu1 %v7677_v23  ;;  %1502 = vmatmul.mubr.bf16.vlgmr.msra.gmra.mrb[0].mxu0 %v7677_v23 }
 0x1fd   : > { %1523 = vmatpush1.bf16.msra.mxu1 %v6393_v26  ;;  %v7685_v28 = vpop.f32.mrb[4].mxu1 }
 0x1fe   : > { %v7687_v30 = vpop.f32.mrb[5].mxu1  ;;  %1524 = vmatprep.subr.bf16.mxu1 %v6398_v27 }
 0x1ff   : > { %v7689_v32 = vpop.f32.mrb[6].mxu1 }
 0x200   : > { %v7693_v33 = vpack.c.bf16 %v7689_v32, %v7685_v28  ;;  %v7695_v34 = vpop.f32.mrb[7].mxu1 }
 0x201   : > { %v808_v35 = vpack.c.bf16 %v7695_v34, %v7687_v30  ;;  %1525 = vmatpush1.bf16.msra.mxu1 %v6396_v29 }
 0x202   : > { %1526 = vmatprep.subr.bf16.mxu1 %v6401_v31 }
 0x203   : > { %1458 = vmatprep.mubr.bf16.mxu1 %v808_v35  ;;  %1511 = vmatprep.mubr.bf16.mxu0 %v808_v35 }
 0x204   : > { %1459 = vmatmul.mubr.bf16.gmra.mrb[12].mxu1 %v7693_v33  ;;  %1512 = vmatmul.mubr.bf16.gmra.mrb[4].mxu0 %v7693_v33 }
 0x205   : > { %1527 = vmatpush1.bf16.msra.mxu1 %v6399_v36  ;;  %1554 = vmatprep.mubr.bf16.mxu1 %v806_v25 }
 0x206   : > { %1528 = vmatprep.subr.bf16.mxu1 %v6404_v37 }
 0x209   : > { %1529 = vmatpush1.bf16.msra.mxu1 %v6402_v38 }
 0x20a   : > { %1530 = vmatprep.subr.bf16.mxu1 %v6407_v39 }
 0x20d   : > { %1531 = vmatpush1.bf16.msra.mxu1 %v6405_v40 }
 0x20e   : > { %1532 = vmatprep.subr.bf16.mxu1 %v6410_v41 }
 0x211   : > { %1533 = vmatpush1.bf16.msra.mxu1 %v6408_v42 }
 0x212   : > { %1534 = vmatprep.subr.bf16.mxu1 %v6413_v43 }
 0x215   : > { %1535 = vmatpush1.bf16.msra.mxu1 %v6411_v44 }
 0x216   : > { %1536 = vmatprep.subr.bf16.mxu1 %v6416_v45 }
 0x219   : > { %1537 = vmatpush1.bf16.msra.mxu1 %v6414_v46 }
 0x21a   : > { %1538 = vmatprep.subr.bf16.mxu1 %v6419_v47 }
 0x21d   : > { %1539 = vmatpush1.bf16.msra.mxu1 %v6417_v48  ;;  %v924_v48 = vsub.s32 4, %v7703_v0 }
 0x21e   : > { %1540 = vmatprep.subr.bf16.mxu1 %v6422_v49  ;;  %v928_v49 = vsub.s32 5, %v7703_v0 }
 0x221   : > { %1541 = vmatpush1.bf16.msra.mxu1 %v6420_v50  ;;  %v925_v50 = vrot.slane %v7711_v2, %v924_v48 }
 0x222   : > { %1542 = vmatprep.subr.bf16.mxu1 %v6425_v51 }
 0x225   : > { %1543 = vmatpush1.bf16.msra.mxu1 %v6423_v52  ;;  %v929_v52 = vrot.slane %v7711_v2, %v928_v49 }
 0x226   : > { %1544 = vmatprep.subr.bf16.mxu1 %v6428_v53 }
 0x229   : > { %1545 = vmatpush1.bf16.msra.mxu1 %v6426_v54 }
 0x22a   : > { %1546 = vmatprep.subr.bf16.mxu1 %v6431_v55 }
 0x22d   : > { %1547 = vmatpush1.bf16.msra.mxu1 %v6429_v56 }
 0x22e   : > { %1548 = vmatprep.subr.bf16.mxu1 %v6434_v57 }
 0x231   : > { %1549 = vmatpush1.bf16.msra.mxu1 %v6432_v58 }
 0x232   : > { %1550 = vmatprep.subr.bf16.mxu1 %v6437_v59 }
 0x235   : > { %1551 = vmatpush1.bf16.msra.mxu1 %v6435_v60 }
 0x236   : > { %1552 = vmatprep.subr.bf16.mxu1 %v6440_v61 }
 0x239   : > { %1553 = vmatpush1.bf16.msra.mxu1 %v6438_v62 }
 0x23c   : > { %1555 = vmatmul.mubr.bf16.vlgmr.msra.gmra.mrb[16].mxu1 %v7677_v23 }
 0x23d   : > { %1564 = vmatprep.mubr.bf16.mxu1 %v808_v35 }
 0x244   : > { %1565 = vmatmul.mubr.bf16.gmra.mrb[20].mxu1 %v7693_v33 }
 0x2cf   : > { %v1450_v7 = vpop.f32.mrb[8].mxu1  ;;  %v1503_v8 = vpop.f32.mrb[0].mxu0 }
 0x2d0   : > { %v1451_v10 = vadd.f32 %v1450_v7, %v909_v5  ;;  %v7723_v11 = vpop.f32.mrb[9].mxu1  ;;  %v1505_v12 = vpop.f32.mrb[1].mxu0  ;;  %v1504_v15 = vadd.f32 %v1503_v8, %v917_v6 }
 0x2d1   : > { %v1454_v13 = vpop.f32.mrb[10].mxu1  ;;  %v1507_v14 = vpop.f32.mrb[2].mxu0  ;;  %v1506_v19 = vadd.f32 %v1505_v12, %v921_v9 }
 0x2d2   : > { %v1508_v16 = vadd.f32 %v1507_v14, %v917_v6  ;;  %v7725_v17 = vpop.f32.mrb[11].mxu1  ;;  %v1509_v18 = vpop.f32.mrb[3].mxu0  ;;  %5992 = vmatprep.mubr.f32.mxu0 %v1451_v10  ;;  %v1455_v45 = vadd.f32 %v1454_v13, %v909_v5  ;;  %v7749_v14 = vld [vmem:[%s7647_s27] sm:$0xff] }
 0x2d3   : > { %v1510_v23 = vadd.f32 %v1509_v18, %v921_v9 }
 0x2d4   : > { %v6096_v25 = vpack.c.bf16 %v1508_v16, %v1504_v15  ;;  %v7752_v16 = vld [vmem:[%s7647_s27 + $0x8] sm:$0xff] }
 0x2d5   : > { %v7727_v26 = vpack.c.bf16 %v1510_v23, %v1506_v19  ;;  %v7756_v23 = vld [vmem:[%s7647_s27 + $0x10] sm:$0xff] }
 0x2d6   : > { %6097 = vmatprep.subr.bf16.mxu0 %v6096_v25 }
 0x2d7   : > { %v1460_v27 = vpop.f32.mrb[12].mxu1  ;;  %v1513_v29 = vpop.f32.mrb[4].mxu0  ;;  %6099 = vmatpush3.bf16.xpose.msra.mxu0 %v6096_v25 }
 0x2d8   : > { %v7729_v31 = vpop.f32.mrb[13].mxu1  ;;  %v1515_v33 = vpop.f32.mrb[5].mxu0  ;;  %v1514_v38 = vadd.f32 %v1513_v29, %v917_v6  ;;  %v1461_v46 = vadd.f32 %v1460_v27, %v909_v5 }
 0x2d9   : > { %v1516_v35 = vadd.f32 %v1515_v33, %v921_v9  ;;  %v1464_v36 = vpop.f32.mrb[14].mxu1  ;;  %v1517_v37 = vpop.f32.mrb[6].mxu0  ;;  %v7761_v33 = vld [vmem:[%s7647_s27 + $0x18] sm:$0xff] }
 0x2da   : > { %v1518_v39 = vadd.f32 %v1517_v37, %v917_v6  ;;  %v7731_v40 = vpop.f32.mrb[15].mxu1  ;;  %v1519_v41 = vpop.f32.mrb[7].mxu0  ;;  %v1465_v47 = vadd.f32 %v1464_v36, %v909_v5 }
 0x2db   : > { %v1520_v42 = vadd.f32 %v1519_v41, %v921_v9 }
 0x2dc   : > { %v6100_v43 = vpack.c.bf16 %v1518_v39, %v1514_v38 }
 0x2dd   : > { %v7733_v44 = vpack.c.bf16 %v1520_v42, %v1516_v35 }
 0x2de   : > { %6101 = vmatprep.subr.bf16.mxu0 %v6100_v43 }
 0x2df   : > { %6103 = vmatpush3.bf16.xpose.msra.mxu0 %v6100_v43 }
 0x2e6   : > { %5993 = vmatmul.mubr.f32.vlgmr.msra.gmra.mrb[8].mxu0 %v1455_v45 }
 0x2e7   : > { %5995 = vmatprep.mubr.f32.mxu0 %v1461_v46 }
 0x2ea   : > { %5996 = vmatmul.mubr.f32.gmra.mrb[10].mxu0 %v1465_v47 }
 0x30f   : > { %v1556_v51 = vpop.f32.mrb[16].mxu1 }
 0x310   : > { %v1558_v53 = vpop.f32.mrb[17].mxu1  ;;  %v1557_v55 = vadd.f32 %v1556_v51, %v925_v50 }
 0x311   : > { %v1560_v54 = vpop.f32.mrb[18].mxu1  ;;  %v1559_v58 = vadd.f32 %v1558_v53, %v929_v52 }
 0x312   : > { %v1561_v56 = vadd.f32 %v1560_v54, %v925_v50  ;;  %v1562_v57 = vpop.f32.mrb[19].mxu1 }
 0x313   : > { %v1563_v59 = vadd.f32 %v1562_v57, %v929_v52 }
 0x314   : > { %v6104_v60 = vpack.c.bf16 %v1561_v56, %v1557_v55 }
 0x315   : > { %v7743_v61 = vpack.c.bf16 %v1563_v59, %v1559_v58 }
 0x316   : > { %6105 = vmatprep.subr.bf16.mxu0 %v6104_v60 }
 0x317   : > { %v1566_v62 = vpop.f32.mrb[20].mxu1  ;;  %6107 = vmatpush3.bf16.msra.mxu0 %v6104_v60 }
 0x318   : > { %v1568_v63 = vpop.f32.mrb[21].mxu1  ;;  %v1567_v6 = vadd.f32 %v1566_v62, %v925_v50 }
 0x319   : > { %v1570_v5 = vpop.f32.mrb[22].mxu1  ;;  %v1569_v9 = vadd.f32 %v1568_v63, %v929_v52 }
 0x31a   : > { %v1571_v7 = vadd.f32 %v1570_v5, %v925_v50  ;;  %v1572_v8 = vpop.f32.mrb[23].mxu1 }
 0x31b   : > { %v1573_v10 = vadd.f32 %v1572_v8, %v929_v52 }
 0x31c   : > { %v6108_v12 = vpack.c.bf16 %v1571_v7, %v1567_v6 }
 0x31d   : > { %v7745_v13 = vpack.c.bf16 %v1573_v10, %v1569_v9 }
 0x31e   : > { %6109 = vmatprep.subr.bf16.mxu0 %v6108_v12 }
 0x31f   : > { %6111 = vmatpush3.bf16.msra.mxu0 %v6108_v12 }
 0x320   : > { %6113 = vmatprep.subr.bf16.mxu0 %v7727_v26 }
 0x3b9   : > { %v5994_v15 = vpop.f32.mrb[8].mxu0 }
 0x3ba   : > { %v1641_v18 = vpop.f32.mrb[9].mxu0  ;;  %v1647_v25 = vadd.f32 %v5994_v15, %v7752_v16 }
 0x3bb   : > { %v1642_v19 = vadd.f32 %v1641_v18, %v7749_v14  ;;  %v7773_v18 = vsub.s32 1, %v7703_v0 }
 0x3bc   : > { %v1664_v38 = vsel %vm1660_vm0, %v1647_v25, -inf }
 0x3bd   : > { %v5997_v27 = vpop.f32.mrb[10].mxu0  ;;  %v1661_v29 = vsel %vm1660_vm0, %v1642_v19, -inf }
 0x3be   : > { %1662 = vmax.xlane.f32.xlu0 %v1661_v29  ;;  %v1651_v35 = vpop.f32.mrb[11].mxu0  ;;  %v1657_v37 = vadd.f32 %v5997_v27, %v7761_v33  ;;  %v913_v29 = vrot.slane %v7711_v2, %v7773_v18 }
 0x3bf   : > { %v1652_v36 = vadd.f32 %v1651_v35, %v7756_v23 }
 0x3c0   : > { %v1670_v41 = vsel %vm1660_vm0, %v1657_v37, -inf  ;;  %v1457_v2 = vadd.f32 %v7725_v17, %v913_v29 }
 0x3c1   : > { %v1667_v39 = vsel %vm1660_vm0, %v1652_v36, -inf }
 0x3c2   : > { %1665 = vmax.xlane.f32.xlu0 %v1664_v38  ;;  %1668 = vmax.xlane.f32.xlu1 %v1667_v39  ;;  %v1453_v38 = vadd.f32 %v7723_v11, %v913_v29  ;;  %v1463_v39 = vadd.f32 %v7729_v31, %v913_v29 }
 0x3c6   : > { %1671 = vmax.xlane.f32.xlu1 %v1670_v41 }
 0x44b   : > { %v1663_v42 = vpop.xlane.xlu0 %1662 }
 0x44c   : > { %v1673_v43 = vsub.f32 %v1642_v19, %v1663_v42 }
 0x44e   : > { %v1677_v45 = vmul.f32 1.442695, %v1673_v43 }
 0x44f   : > { %v1666_v46 = vpop.xlane.xlu0 %1665  ;;  %v1669_v47 = vpop.xlane.xlu1 %1668 }
 0x450   : > { %6873 = vpow2.f32 %v1677_v45  ;;  %v1674_v50 = vsub.f32 %v1647_v25, %v1666_v46  ;;  %v1675_v51 = vsub.f32 %v1652_v36, %v1669_v47 }
 0x452   : > { %v1679_v52 = vmul.f32 1.442695, %v1674_v50  ;;  %v1681_v53 = vmul.f32 1.442695, %v1675_v51 }
 0x453   : > { %v1672_v54 = vpop.xlane.xlu1 %1671 }
 0x454   : > { %6875 = vpow2.f32 %v1679_v52  ;;  %v1676_v55 = vsub.f32 %v1657_v37, %v1672_v54 }
 0x455   : > { %6877 = vpow2.f32 %v1681_v53 }
 0x456   : > { %v1683_v56 = vmul.f32 1.442695, %v1676_v55 }
 0x458   : > { %6879 = vpow2.f32 %v1683_v56 }
 0x45a   : > { %v6874_v57 = vpop.eup %6873 }
 0x45b   : > { %v1685_v58 = vsel %vm1660_vm0, %v6874_v57, 0.0 }
 0x45c   : > { %1686 = vadd.xlane.f32.xlu0 %v1685_v58 }
 0x45e   : > { %v6876_v59 = vpop.eup %6875 }
 0x45f   : > { %v6878_v60 = vpop.eup %6877  ;;  %v1688_v62 = vsel %vm1660_vm0, %v6876_v59, 0.0 }
 0x460   : > { %1689 = vadd.xlane.f32.xlu1 %v1688_v62  ;;  %v1691_v63 = vsel %vm1660_vm0, %v6878_v60, 0.0 }
 0x461   : > { %1692 = vadd.xlane.f32.xlu0 %v1691_v63 }
 0x462   : > { %v6880_v5 = vpop.eup %6879 }
 0x463   : > { %v1694_v6 = vsel %vm1660_vm0, %v6880_v5, 0.0 }
 0x464   : > { %1695 = vadd.xlane.f32.xlu1 %v1694_v6 }
 0x4e9   : > { %v1687_v7 = vpop.xlane.xlu0 %1686 }
 0x4ea   : > { %6881 = vrcp.f32 %v1687_v7 }
 0x4ed   : > { %v1690_v8 = vpop.xlane.xlu1 %1689 }
 0x4ee   : > { %v1693_v9 = vpop.xlane.xlu0 %1692  ;;  %6883 = vrcp.f32 %v1690_v8 }
 0x4ef   : > { %6885 = vrcp.f32 %v1693_v9 }
 0x4f1   : > { %v1696_v10 = vpop.xlane.xlu1 %1695 }
 0x4f2   : > { %6887 = vrcp.f32 %v1696_v10 }
 0x4f4   : > { %v6882_v12 = vpop.eup %6881 }
 0x4f5   : > { %v1701_v15 = vmul.f32 %v6882_v12, %v6874_v57 }
 0x4f7   : > { %6006 = vmatprep.mubr.msk.f32.mxu0 %vm1660_vm0, %v1701_v15 }
 0x4f8   : > { %v6884_v19 = vpop.eup %6883 }
 0x4f9   : > { %v6886_v25 = vpop.eup %6885  ;;  %v1702_v27 = vmul.f32 %v6884_v19, %v6876_v59  ;;  %v6441_v19 = vld [vmem:[#allocation10] ss:$8 sps:$4 sm:$0xff]  }
 0x4fa   : > { %v1703_v35 = vmul.f32 %v6886_v25, %v6878_v60  ;;  %v6443_v25 = vld [vmem:[#allocation10 + $0x4] ss:$8 sps:$4 sm:$0xff]  }
 0x4fb   : > { %6007 = vmatmul.mubr.msk.f32.vlgmr.msra.gmra.mrb[12].mxu0 %vm1660_vm0, %v1702_v27  ;;  %v6446_v27 = vld [vmem:[#allocation10 + $0x14] ss:$8 sps:$4 sm:$0xff]   ;;  %2235 = vmatprep.subr.bf16.mxu1 %v6443_v25 }
 0x4fc   : > { %v6888_v36 = vpop.eup %6887  ;;  %6115 = vmatpush3.bf16.xpose.msra.mxu0 %v7727_v26  ;;  %6009 = vmatprep.mubr.msk.f32.mxu0 %vm1660_vm0, %v1703_v35  ;;  %v1467_v26 = vadd.f32 %v7731_v40, %v913_v29  ;;  %v6444_v29 = vld [vmem:[#allocation10 + $0x10] ss:$8 sps:$4 sm:$0xff]   ;;  %v6449_v35 = vld [vmem:[#allocation10 + $0x24] ss:$8 sps:$4 sm:$0xff]  }
 0x4fd   : > { %6117 = vmatprep.subr.bf16.mxu0 %v7733_v44  ;;  %v1704_v37 = vmul.f32 %v6888_v36, %v6880_v5  ;;  %2236 = vmatpush1.bf16.msra.mxu1 %v6441_v19  ;;  %v6447_v36 = vld [vmem:[#allocation10 + $0x20] ss:$8 sps:$4 sm:$0xff]  }
 0x4fe   : > { %2237 = vmatprep.subr.bf16.mxu1 %v6446_v27 }
 0x4ff   : > { %6010 = vmatmul.mubr.msk.f32.gmra.mrb[14].mxu0 %vm1660_vm0, %v1704_v37  ;;  %v6452_v37 = vld [vmem:[#allocation10 + $0x34] ss:$8 sps:$4 sm:$0xff]  }
 0x500   : > { %6020 = vmatprep.mubr.f32.mxu0 %v1453_v38  ;;  %v6450_v38 = vld [vmem:[#allocation10 + $0x30] ss:$8 sps:$4 sm:$0xff]  }
 0x501   : > { %2238 = vmatpush1.bf16.msra.mxu1 %v6444_v29  ;;  %v6488_v29 = vld [vmem:[#allocation10 + $0xf4] ss:$8 sps:$4 sm:$0xff]  }
 0x502   : > { %2239 = vmatprep.subr.bf16.mxu1 %v6449_v35  ;;  %v6486_v35 = vld [vmem:[#allocation10 + $0xf0] ss:$8 sps:$4 sm:$0xff]  }
 0x504   : > { %6119 = vmatpush3.bf16.xpose.msra.mxu0 %v7733_v44 }
 0x505   : > { %6121 = vmatprep.subr.bf16.mxu0 %v7743_v61  ;;  %2240 = vmatpush1.bf16.msra.mxu1 %v6447_v36 }
 0x506   : > { %2241 = vmatprep.subr.bf16.mxu1 %v6452_v37 }
 0x509   : > { %2242 = vmatpush1.bf16.msra.mxu1 %v6450_v38 }
 0x50b   : > { %6021 = vmatmul.mubr.f32.vlgmr.msra.gmra.mrb[16].mxu0 %v1457_v2  ;;  %v6455_v2 = vld [vmem:[#allocation10 + $0x44] ss:$8 sps:$4 sm:$0xff]  }
 0x50c   : > { %6023 = vmatprep.mubr.f32.mxu0 %v1463_v39  ;;  %6123 = vmatpush3.bf16.msra.mxu0 %v7743_v61  ;;  %v6453_v39 = vld [vmem:[#allocation10 + $0x40] ss:$8 sps:$4 sm:$0xff]  }
 0x50d   : > { %6125 = vmatprep.subr.bf16.mxu0 %v7745_v13  ;;  %2243 = vmatprep.subr.bf16.mxu1 %v6455_v2 }
 0x50e   : > { %2244 = vmatpush1.bf16.msra.mxu1 %v6453_v39 }
 0x50f   : > { %6024 = vmatmul.mubr.f32.gmra.mrb[18].mxu0 %v1467_v26  ;;  %v6458_v26 = vld [vmem:[#allocation10 + $0x54] ss:$8 sps:$4 sm:$0xff]  }
 0x510   : > { %6127 = vmatpush3.bf16.msra.mxu0 %v7745_v13  ;;  %2245 = vmatprep.subr.bf16.mxu1 %v6458_v26 }
 0x5ce   : > { %v7792_v11 = vpop.f32.mrb[12].mxu0 }
 0x5cf   : > { %v7794_v44 = vpop.f32.mrb[13].mxu0 }
 0x5d0   : > { %v2028_v17 = vpack.c.bf16 %v7792_v11, %v7794_v44 }
 0x5d2   : > { %v7798_v41 = vpop.f32.mrb[14].mxu0 }
 0x5d3   : > { %v7800_v31 = vpop.f32.mrb[15].mxu0 }
 0x5d4   : > { %v2030_v61 = vpack.c.bf16 %v7798_v41, %v7800_v31 }
 0x5de   : > { %v6022_v40 = vpop.f32.mrb[16].mxu0 }
 0x5df   : > { %v1874_v42 = vadd.f32 %v6022_v40, %v7752_v16  ;;  %v1868_v43 = vpop.f32.mrb[17].mxu0  ;;  %v6456_v40 = vld [vmem:[#allocation10 + $0x50] ss:$8 sps:$4 sm:$0xff]  }
 0x5e0   : > { %v1869_v13 = vadd.f32 %v1868_v43, %v7749_v14  ;;  %2246 = vmatpush1.bf16.msra.mxu1 %v6456_v40  ;;  %v6459_v43 = vld [vmem:[#allocation10 + $0x60] ss:$8 sps:$4 sm:$0xff]  }
 0x5e1   : > { %v1890_v45 = vsel %vm1660_vm0, %v1874_v42, -inf }
 0x5e2   : > { %1891 = vmax.xlane.f32.xlu1 %v1890_v45  ;;  %v6025_v46 = vpop.f32.mrb[18].mxu0  ;;  %v1887_v47 = vsel %vm1660_vm0, %v1869_v13, -inf  ;;  %v6462_v45 = vld [vmem:[#allocation10 + $0x70] ss:$8 sps:$4 sm:$0xff]  }
 0x5e3   : > { %v1884_v50 = vadd.f32 %v6025_v46, %v7761_v33  ;;  %v1878_v51 = vpop.f32.mrb[19].mxu0  ;;  %1888 = vmax.xlane.f32.xlu0 %v1887_v47  ;;  %v6467_v46 = vld [vmem:[#allocation10 + $0x84] ss:$8 sps:$4 sm:$0xff]   ;;  %v6465_v47 = vld [vmem:[#allocation10 + $0x80] ss:$8 sps:$4 sm:$0xff]  }
 0x5e4   : > { %v1879_v52 = vadd.f32 %v1878_v51, %v7756_v23  ;;  %v6468_v51 = vld [vmem:[#allocation10 + $0x90] ss:$8 sps:$4 sm:$0xff]  }
 0x5e5   : > { %v1896_v53 = vsel %vm1660_vm0, %v1884_v50, -inf }
 0x5e6   : > { %1897 = vmax.xlane.f32.xlu1 %v1896_v53  ;;  %v1893_v16 = vsel %vm1660_vm0, %v1879_v52, -inf  ;;  %v6471_v53 = vld [vmem:[#allocation10 + $0xa0] ss:$8 sps:$4 sm:$0xff]  }
 0x5e7   : > { %1894 = vmax.xlane.f32.xlu0 %v1893_v16  ;;  %v6476_v16 = vld [vmem:[#allocation10 + $0xb4] ss:$8 sps:$4 sm:$0xff]  }
 0x66f   : > { %v1892_v54 = vpop.xlane.xlu1 %1891 }
 0x670   : > { %v1900_v14 = vsub.f32 %v1874_v42, %v1892_v54  ;;  %v1889_v55 = vpop.xlane.xlu0 %1888  ;;  %v6461_v42 = vld [vmem:[#allocation10 + $0x64] ss:$8 sps:$4 sm:$0xff]   ;;  %v6474_v54 = vld [vmem:[#allocation10 + $0xb0] ss:$8 sps:$4 sm:$0xff]  }
 0x671   : > { %v1899_v56 = vsub.f32 %v1869_v13, %v1889_v55  ;;  %2247 = vmatprep.subr.bf16.mxu1 %v6461_v42  ;;  %v6464_v13 = vld [vmem:[#allocation10 + $0x74] ss:$8 sps:$4 sm:$0xff]   ;;  %v6477_v55 = vld [vmem:[#allocation10 + $0xc0] ss:$8 sps:$4 sm:$0xff]  }
 0x672   : > { %v1905_v57 = vmul.f32 1.442695, %v1900_v14  ;;  %2248 = vmatpush1.bf16.msra.mxu1 %v6459_v43  ;;  %v6479_v14 = vld [vmem:[#allocation10 + $0xc4] ss:$8 sps:$4 sm:$0xff]  }
 0x673   : > { %v1903_v58 = vmul.f32 1.442695, %v1899_v56  ;;  %v1898_v59 = vpop.xlane.xlu1 %1897  ;;  %2249 = vmatprep.subr.bf16.mxu1 %v6464_v13  ;;  %v6482_v56 = vld [vmem:[#allocation10 + $0xd4] ss:$8 sps:$4 sm:$0xff]  }
 0x674   : > { %6889 = vpow2.f32 %v1905_v57  ;;  %v1902_v60 = vsub.f32 %v1884_v50, %v1898_v59  ;;  %v1895_v33 = vpop.xlane.xlu0 %1894  ;;  %v6470_v50 = vld [vmem:[#allocation10 + $0x94] ss:$8 sps:$4 sm:$0xff]   ;;  %v6480_v57 = vld [vmem:[#allocation10 + $0xd0] ss:$8 sps:$4 sm:$0xff]   ;;  %v6483_v59 = vld [vmem:[#allocation10 + $0xe0] ss:$8 sps:$4 sm:$0xff]  }
 0x675   : > { %6891 = vpow2.f32 %v1903_v58  ;;  %v1901_v62 = vsub.f32 %v1879_v52, %v1895_v33  ;;  %v6473_v52 = vld [vmem:[#allocation10 + $0xa4] ss:$8 sps:$4 sm:$0xff]  }
 0x676   : > { %v1909_v63 = vmul.f32 1.442695, %v1902_v60  ;;  %2250 = vmatpush1.bf16.msra.mxu1 %v6462_v45  ;;  %v6485_v58 = vld [vmem:[#allocation10 + $0xe4] ss:$8 sps:$4 sm:$0xff]  }
 0x677   : > { %v1907_v23 = vmul.f32 1.442695, %v1901_v62  ;;  %2251 = vmatprep.subr.bf16.mxu1 %v6467_v46 }
 0x678   : > { %6893 = vpow2.f32 %v1909_v63 }
 0x679   : > { %6895 = vpow2.f32 %v1907_v23 }
 0x67a   : > { %2252 = vmatpush1.bf16.msra.mxu1 %v6465_v47 }
 0x67b   : > { %2253 = vmatprep.subr.bf16.mxu1 %v6470_v50 }
 0x67e   : > { %v7812_v5 = vpop.eup %6889  ;;  %2254 = vmatpush1.bf16.msra.mxu1 %v6468_v51 }
 0x67f   : > { %v7814_v6 = vpop.eup %6891  ;;  %v1914_v7 = vsel %vm1660_vm0, %v7812_v5, 0.0  ;;  %2255 = vmatprep.subr.bf16.mxu1 %v6473_v52 }
 0x680   : > { %1915 = vadd.xlane.f32.xlu1 %v1914_v7  ;;  %v1911_v8 = vsel %vm1660_vm0, %v7814_v6, 0.0 }
 0x681   : > { %1912 = vadd.xlane.f32.xlu0 %v1911_v8 }
 0x682   : > { %v7820_v9 = vpop.eup %6893  ;;  %2256 = vmatpush1.bf16.msra.mxu1 %v6471_v53 }
 0x683   : > { %v7822_v10 = vpop.eup %6895  ;;  %v1920_v12 = vsel %vm1660_vm0, %v7820_v9, 0.0  ;;  %2257 = vmatprep.subr.bf16.mxu1 %v6476_v16 }
 0x684   : > { %1921 = vadd.xlane.f32.xlu1 %v1920_v12  ;;  %v1917_v15 = vsel %vm1660_vm0, %v7822_v10, 0.0 }
 0x685   : > { %1918 = vadd.xlane.f32.xlu0 %v1917_v15 }
 0x686   : > { %2258 = vmatpush1.bf16.msra.mxu1 %v6474_v54 }
 0x687   : > { %2259 = vmatprep.subr.bf16.mxu1 %v6479_v14 }
 0x68a   : > { %2260 = vmatpush1.bf16.msra.mxu1 %v6477_v55 }
 0x68b   : > { %2261 = vmatprep.subr.bf16.mxu1 %v6482_v56 }
 0x68e   : > { %2262 = vmatpush1.bf16.msra.mxu1 %v6480_v57 }
 0x68f   : > { %2263 = vmatprep.subr.bf16.mxu1 %v6485_v58 }
 0x692   : > { %2264 = vmatpush1.bf16.msra.mxu1 %v6483_v59 }
 0x693   : > { %2265 = vmatprep.subr.bf16.mxu1 %v6488_v29  ;;  %v6506_v29 = vld [vmem:[#allocation11 + $0x54] ss:$8 sps:$4 sm:$0xff]  }
 0x696   : > { %2266 = vmatpush1.bf16.msra.mxu1 %v6486_v35  ;;  %v6504_v35 = vld [vmem:[#allocation11 + $0x50] ss:$8 sps:$4 sm:$0xff]  }
 0x70d   : > { %v1916_v60 = vpop.xlane.xlu1 %1915 }
 0x70e   : > { %6897 = vrcp.f32 %v1916_v60  ;;  %v1913_v33 = vpop.xlane.xlu0 %1912 }
 0x70f   : > { %6899 = vrcp.f32 %v1913_v33 }
 0x711   : > { %v1922_v62 = vpop.xlane.xlu1 %1921 }
 0x712   : > { %6901 = vrcp.f32 %v1922_v62  ;;  %v1919_v63 = vpop.xlane.xlu0 %1918  ;;  %v6489_v62 = vld [vmem:[#allocation11] ss:$8 sps:$4 sm:$0xff]  }
 0x713   : > { %6903 = vrcp.f32 %v1919_v63  ;;  %v6491_v63 = vld [vmem:[#allocation11 + $0x4] ss:$8 sps:$4 sm:$0xff]  }
 0x714   : > { %2606 = vmatprep.subr.bf16.mxu0 %v6491_v63  ;;  %v6519_v63 = vld [vmem:[#allocation11 + $0xa0] ss:$8 sps:$4 sm:$0xff]  }
 0x718   : > { %v6898_v23 = vpop.eup %6897 }
 0x719   : > { %v6900_v7 = vpop.eup %6899  ;;  %v1928_v12 = vmul.f32 %v6898_v23, %v7812_v5  ;;  %v6494_v23 = vld [vmem:[#allocation11 + $0x14] ss:$8 sps:$4 sm:$0xff]  }
 0x71a   : > { %v1927_v8 = vmul.f32 %v6900_v7, %v7814_v6  ;;  %v6492_v7 = vld [vmem:[#allocation11 + $0x10] ss:$8 sps:$4 sm:$0xff]  }
 0x71c   : > { %v6902_v15 = vpop.eup %6901  ;;  %6034 = vmatprep.mubr.msk.f32.mxu0 %vm1660_vm0, %v1927_v8  ;;  %v6497_v8 = vld [vmem:[#allocation11 + $0x24] ss:$8 sps:$4 sm:$0xff]  }
 0x71d   : > { %v6904_v19 = vpop.eup %6903  ;;  %6035 = vmatmul.mubr.msk.f32.vlgmr.msra.gmra.mrb[20].mxu0 %vm1660_vm0, %v1928_v12  ;;  %v1930_v27 = vmul.f32 %v6902_v15, %v7820_v9  ;;  %v798_v9 = vld [vmem:[%s8394_s6] sm:$0x3]  ;;  %v6500_v15 = vld [vmem:[#allocation11 + $0x34] ss:$8 sps:$4 sm:$0xff]  }
 0x71e   : > { %v1929_v25 = vmul.f32 %v6904_v19, %v7822_v10  ;;  %v2068_v2 = vrot.slane %v798_v9, %v7706_v1  ;;  %v2072_v39 = vrot.slane %v798_v9, %v7773_v18  ;;  %2607 = vmatpush1.bf16.msra.mxu0 %v6489_v62  ;;  %v6495_v12 = vld [vmem:[#allocation11 + $0x20] ss:$8 sps:$4 sm:$0xff]   ;;  %v6498_v19 = vld [vmem:[#allocation11 + $0x30] ss:$8 sps:$4 sm:$0xff]   ;;  %v6518_v9 = vld [vmem:[#allocation11 + $0x94] ss:$8 sps:$4 sm:$0xff]  }
 0x71f   : > { %2608 = vmatprep.subr.bf16.mxu0 %v6494_v23  ;;  %v6522_v23 = vld [vmem:[#allocation11 + $0xb0] ss:$8 sps:$4 sm:$0xff]  }
 0x720   : > { %6037 = vmatprep.mubr.msk.f32.mxu0 %vm1660_vm0, %v1929_v25  ;;  %v6503_v25 = vld [vmem:[#allocation11 + $0x44] ss:$8 sps:$4 sm:$0xff]  }
 0x721   : > { %6038 = vmatmul.mubr.msk.f32.gmra.mrb[22].mxu0 %vm1660_vm0, %v1930_v27  ;;  %v6501_v27 = vld [vmem:[#allocation11 + $0x40] ss:$8 sps:$4 sm:$0xff]  }
 0x722   : > { %2609 = vmatpush1.bf16.msra.mxu0 %v6492_v7  ;;  %v6527_v7 = vld [vmem:[#allocation11 + $0xc4] ss:$8 sps:$4 sm:$0xff]  }
 0x723   : > { %2610 = vmatprep.subr.bf16.mxu0 %v6497_v8  ;;  %v6525_v8 = vld [vmem:[#allocation11 + $0xc0] ss:$8 sps:$4 sm:$0xff]  }
 0x726   : > { %2611 = vmatpush1.bf16.msra.mxu0 %v6495_v12  ;;  %v6530_v12 = vld [vmem:[#allocation11 + $0xd4] ss:$8 sps:$4 sm:$0xff]  }
 0x727   : > { %2612 = vmatprep.subr.bf16.mxu0 %v6500_v15  ;;  %v6528_v15 = vld [vmem:[#allocation11 + $0xd0] ss:$8 sps:$4 sm:$0xff]  }
 0x72a   : > { %2613 = vmatpush1.bf16.msra.mxu0 %v6498_v19  ;;  %v6533_v19 = vld [vmem:[#allocation11 + $0xe4] ss:$8 sps:$4 sm:$0xff]  }
 0x72b   : > { %2614 = vmatprep.subr.bf16.mxu0 %v6503_v25  ;;  %v6531_v25 = vld [vmem:[#allocation11 + $0xe0] ss:$8 sps:$4 sm:$0xff]  }
 0x72e   : > { %2615 = vmatpush1.bf16.msra.mxu0 %v6501_v27  ;;  %v6534_v27 = vld [vmem:[#allocation11 + $0xf0] ss:$8 sps:$4 sm:$0xff]  }
 0x72f   : > { %2616 = vmatprep.subr.bf16.mxu0 %v6506_v29  ;;  %v6536_v29 = vld [vmem:[#allocation11 + $0xf4] ss:$8 sps:$4 sm:$0xff]  }
 0x732   : > { %2617 = vmatpush1.bf16.msra.mxu0 %v6504_v35  ;;  %v6537_v35 = vld [vmem:[#allocation13] ss:$8 sps:$4 sm:$0xff]  }
 0x7f0   : > { %v6036_v6 = vpop.f32.mrb[20].mxu0 }
 0x7f1   : > { %v2009_v5 = vpop.f32.mrb[21].mxu0 }
 0x7f2   : > { %v2029_v36 = vpack.c.bf16 %v6036_v6, %v2009_v5  ;;  %v6509_v6 = vld [vmem:[#allocation11 + $0x64] ss:$8 sps:$4 sm:$0xff]   ;;  %v6507_v5 = vld [vmem:[#allocation11 + $0x60] ss:$8 sps:$4 sm:$0xff]  }
 0x7f3   : > { %2618 = vmatprep.subr.bf16.mxu0 %v6509_v6  ;;  %v6539_v6 = vld [vmem:[#allocation13 + $0x4] ss:$8 sps:$4 sm:$0xff]  }
 0x7f4   : > { %v6039_v37 = vpop.f32.mrb[22].mxu0  ;;  %2267 = vmatprep.mubr.bf16.mxu1 %v2029_v36  ;;  %v6512_v36 = vld [vmem:[#allocation11 + $0x74] ss:$8 sps:$4 sm:$0xff]   ;;  %2619 = vmatpush1.bf16.msra.mxu0 %v6507_v5 }
 0x7f5   : > { %v2019_v38 = vpop.f32.mrb[23].mxu0  ;;  %2268 = vmatmul.mubr.bf16.vlgmr.msra.gmra.mrb[24].mxu1 %v2028_v17  ;;  %2620 = vmatprep.subr.bf16.mxu0 %v6512_v36  ;;  %v6542_v5 = vld [vmem:[#allocation13 + $0x14] ss:$8 sps:$4 sm:$0xff]   ;;  %v6540_v36 = vld [vmem:[#allocation13 + $0x10] ss:$8 sps:$4 sm:$0xff]  }
 0x7f6   : > { %v2031_v10 = vpack.c.bf16 %v6039_v37, %v2019_v38  ;;  %v6510_v37 = vld [vmem:[#allocation11 + $0x70] ss:$8 sps:$4 sm:$0xff]   ;;  %v6515_v38 = vld [vmem:[#allocation11 + $0x84] ss:$8 sps:$4 sm:$0xff]   ;;  %2874 = vmatprep.subr.bf16.mxu1 %v6539_v6  ;;  %v800_v6 = vld [vmem:[%s8456_s8] sm:$0x3] }
 0x7f7   : > { %2875 = vmatpush1.bf16.msra.mxu1 %v6537_v35 }
 0x7f8   : > { %2277 = vmatprep.mubr.bf16.mxu1 %v2031_v10  ;;  %2621 = vmatpush1.bf16.msra.mxu0 %v6510_v37  ;;  %v6513_v10 = vld [vmem:[#allocation11 + $0x80] ss:$8 sps:$4 sm:$0xff]   ;;  %v6545_v37 = vld [vmem:[#allocation13 + $0x24] ss:$8 sps:$4 sm:$0xff]  }
 0x7f9   : > { %2622 = vmatprep.subr.bf16.mxu0 %v6515_v38  ;;  %2876 = vmatprep.subr.bf16.mxu1 %v6542_v5  ;;  %v6543_v38 = vld [vmem:[#allocation13 + $0x20] ss:$8 sps:$4 sm:$0xff]  }
 0x7fb   : > { %2877 = vmatpush1.bf16.msra.mxu1 %v6540_v36 }
 0x7fc   : > { %2623 = vmatpush1.bf16.msra.mxu0 %v6513_v10  ;;  %2878 = vmatprep.subr.bf16.mxu1 %v6545_v37  ;;  %v6548_v10 = vld [vmem:[#allocation13 + $0x34] ss:$8 sps:$4 sm:$0xff]  }
 0x7fd   : > { %2278 = vmatmul.mubr.bf16.gmra.mrb[28].mxu1 %v2030_v61  ;;  %2624 = vmatprep.subr.bf16.mxu0 %v6518_v9  ;;  %v6546_v9 = vld [vmem:[#allocation13 + $0x30] ss:$8 sps:$4 sm:$0xff]  }
 0x7ff   : > { %2879 = vmatpush1.bf16.msra.mxu1 %v6543_v38 }
 0x800   : > { %2880 = vmatprep.subr.bf16.mxu1 %v6548_v10 }
 0x803   : > { %2881 = vmatpush1.bf16.msra.mxu1 %v6546_v9  ;;  %v2384_v9 = vrot.slane %v800_v6, %v7706_v1 }
 0x8c8   : > { %v2269_v26 = vpop.f32.mrb[24].mxu1 }
 0x8c9   : > { %v2270_v40 = vadd.f32 %v2269_v26, %v2068_v2  ;;  %v2271_v42 = vpop.f32.mrb[25].mxu1 }
 0x8ca   : > { %v2272_v43 = vadd.f32 %v2271_v42, %v2072_v39  ;;  %v2273_v11 = vpop.f32.mrb[26].mxu1 }
 0x8cb   : > { %v7848_v44 = vadd.f32 %v2270_v40, %v7669_v20  ;;  %v2274_v17 = vadd.f32 %v2273_v11, %v2068_v2  ;;  %v2275_v13 = vpop.f32.mrb[27].mxu1 }
 0x8cc   : > { %v7851_v41 = vadd.f32 %v2272_v43, %v7671_v21  ;;  %v2276_v31 = vadd.f32 %v2275_v13, %v2072_v39 }
 0x8cd   : > { %v7854_v61 = vadd.f32 %v2274_v17, %v7673_v22 }
 0x8ce   : > { %v7857_v45 = vadd.f32 %v2276_v31, %v7679_v24  ;;  %v2296_v46 = vadd.f32 %v7851_v41, %v7848_v44 }
 0x8d0   : > { %2297 = vadd.xlane.f32.xlu0 %v2296_v46  ;;  %v2279_v47 = vpop.f32.mrb[28].mxu1  ;;  %v2299_v50 = vadd.f32 %v7857_v45, %v7854_v61 }
 0x8d1   : > { %v2280_v51 = vadd.f32 %v2279_v47, %v2068_v2  ;;  %v2281_v52 = vpop.f32.mrb[29].mxu1 }
 0x8d2   : > { %v2282_v53 = vadd.f32 %v2281_v52, %v2072_v39  ;;  %2300 = vadd.xlane.f32.xlu1 %v2299_v50  ;;  %v2283_v16 = vpop.f32.mrb[30].mxu1 }
 0x8d3   : > { %v7864_v54 = vadd.f32 %v2280_v51, %v7685_v28  ;;  %v2284_v14 = vadd.f32 %v2283_v16, %v2068_v2  ;;  %v2285_v55 = vpop.f32.mrb[31].mxu1  ;;  %v6516_v2 = vld [vmem:[#allocation11 + $0x90] ss:$8 sps:$4 sm:$0xff]  }
 0x8d4   : > { %v7867_v56 = vadd.f32 %v2282_v53, %v7687_v30  ;;  %v2286_v57 = vadd.f32 %v2285_v55, %v2072_v39  ;;  %2625 = vmatpush1.bf16.msra.mxu0 %v6516_v2  ;;  %v6551_v2 = vld [vmem:[#allocation13 + $0x44] ss:$8 sps:$4 sm:$0xff]  }
 0x8d5   : > { %v7870_v58 = vadd.f32 %v2284_v14, %v7689_v32  ;;  %2882 = vmatprep.subr.bf16.mxu1 %v6551_v2  ;;  %v2388_v2 = vrot.slane %v800_v6, %v7773_v18 }
 0x8d6   : > { %v7873_v59 = vadd.f32 %v2286_v57, %v7695_v34  ;;  %v2302_v60 = vadd.f32 %v7867_v56, %v7864_v54 }
 0x8d8   : > { %2303 = vadd.xlane.f32.xlu0 %v2302_v60  ;;  %v2305_v33 = vadd.f32 %v7873_v59, %v7870_v58 }
 0x8da   : > { %2306 = vadd.xlane.f32.xlu1 %v2305_v33 }
 0x95d   : > { %v2298_v39 = vpop.xlane.xlu0 %2297 }
 0x95e   : > { %v2309_v26 = vmul.f32 0.00390625, %v2298_v39  ;;  %v6549_v39 = vld [vmem:[#allocation13 + $0x40] ss:$8 sps:$4 sm:$0xff]  }
 0x95f   : > { %v2301_v40 = vpop.xlane.xlu1 %2300  ;;  %2883 = vmatpush1.bf16.msra.mxu1 %v6549_v39 }
 0x960   : > { %v7880_v42 = vsub.f32 %v7848_v44, %v2309_v26  ;;  %v7883_v43 = vsub.f32 %v7851_v41, %v2309_v26  ;;  %v2310_v11 = vmul.f32 0.00390625, %v2301_v40  ;;  %v6554_v26 = vld [vmem:[#allocation13 + $0x54] ss:$8 sps:$4 sm:$0xff]   ;;  %v6552_v40 = vld [vmem:[#allocation13 + $0x50] ss:$8 sps:$4 sm:$0xff]  }
 0x961   : > { %2884 = vmatprep.subr.bf16.mxu1 %v6554_v26 }
 0x962   : > { %v7886_v17 = vsub.f32 %v7854_v61, %v2310_v11  ;;  %v7889_v13 = vsub.f32 %v7857_v45, %v2310_v11  ;;  %v2321_v31 = vmul.f32 %v7880_v42, %v7880_v42  ;;  %v2322_v46 = vmul.f32 %v7883_v43, %v7883_v43  ;;  %v6557_v11 = vld [vmem:[#allocation13 + $0x64] ss:$8 sps:$4 sm:$0xff]  }
 0x963   : > { %2885 = vmatpush1.bf16.msra.mxu1 %v6552_v40 }
 0x964   : > { %v2329_v47 = vadd.f32 %v2322_v46, %v2321_v31  ;;  %v2323_v44 = vmul.f32 %v7886_v17, %v7886_v17  ;;  %v2324_v41 = vmul.f32 %v7889_v13, %v7889_v13  ;;  %v6555_v31 = vld [vmem:[#allocation13 + $0x60] ss:$8 sps:$4 sm:$0xff]   ;;  %2886 = vmatprep.subr.bf16.mxu1 %v6557_v11  ;;  %v6560_v46 = vld [vmem:[#allocation13 + $0x74] ss:$8 sps:$4 sm:$0xff]  }
 0x965   : > { %v2304_v50 = vpop.xlane.xlu0 %2303 }
 0x966   : > { %v2311_v51 = vmul.f32 0.00390625, %v2304_v50  ;;  %2330 = vadd.xlane.f32.xlu0 %v2329_v47  ;;  %v2332_v61 = vadd.f32 %v2324_v41, %v2323_v44  ;;  %v6558_v47 = vld [vmem:[#allocation13 + $0x70] ss:$8 sps:$4 sm:$0xff]   ;;  %v6563_v44 = vld [vmem:[#allocation13 + $0x84] ss:$8 sps:$4 sm:$0xff]  }
 0x967   : > { %v2307_v52 = vpop.xlane.xlu1 %2306  ;;  %2887 = vmatpush1.bf16.msra.mxu1 %v6555_v31  ;;  %v6561_v41 = vld [vmem:[#allocation13 + $0x80] ss:$8 sps:$4 sm:$0xff]   ;;  %v6566_v50 = vld [vmem:[#allocation13 + $0x94] ss:$8 sps:$4 sm:$0xff]  }
 0x968   : > { %v7900_v45 = vsub.f32 %v7864_v54, %v2311_v51  ;;  %v7903_v53 = vsub.f32 %v7867_v56, %v2311_v51  ;;  %v2312_v16 = vmul.f32 0.00390625, %v2307_v52  ;;  %2333 = vadd.xlane.f32.xlu1 %v2332_v61  ;;  %2888 = vmatprep.subr.bf16.mxu1 %v6560_v46  ;;  %v6564_v51 = vld [vmem:[#allocation13 + $0x90] ss:$8 sps:$4 sm:$0xff]   ;;  %v6569_v61 = vld [vmem:[#allocation13 + $0xa4] ss:$8 sps:$4 sm:$0xff]  }
 0x969   : > { %v6567_v52 = vld [vmem:[#allocation13 + $0xa0] ss:$8 sps:$4 sm:$0xff]  }
 0x96a   : > { %v7906_v14 = vsub.f32 %v7870_v58, %v2312_v16  ;;  %v7909_v55 = vsub.f32 %v7873_v59, %v2312_v16  ;;  %v2325_v57 = vmul.f32 %v7900_v45, %v7900_v45  ;;  %v2326_v60 = vmul.f32 %v7903_v53, %v7903_v53  ;;  %v6521_v58 = vld [vmem:[#allocation11 + $0xa4] ss:$8 sps:$4 sm:$0xff]   ;;  %v6524_v59 = vld [vmem:[#allocation11 + $0xb4] ss:$8 sps:$4 sm:$0xff]  }
 0x96b   : > { %2626 = vmatprep.subr.bf16.mxu0 %v6521_v58  ;;  %2889 = vmatpush1.bf16.msra.mxu1 %v6558_v47  ;;  %v6572_v16 = vld [vmem:[#allocation13 + $0xb4] ss:$8 sps:$4 sm:$0xff]  }
 0x96c   : > { %v2335_v33 = vadd.f32 %v2326_v60, %v2325_v57  ;;  %v2327_v54 = vmul.f32 %v7906_v14, %v7906_v14  ;;  %v2328_v56 = vmul.f32 %v7909_v55, %v7909_v55  ;;  %2627 = vmatpush1.bf16.msra.mxu0 %v6519_v63  ;;  %2890 = vmatprep.subr.bf16.mxu1 %v6563_v44  ;;  %v6570_v57 = vld [vmem:[#allocation13 + $0xb0] ss:$8 sps:$4 sm:$0xff]   ;;  %v6575_v60 = vld [vmem:[#allocation13 + $0xc4] ss:$8 sps:$4 sm:$0xff]  }
 0x96d   : > { %2628 = vmatprep.subr.bf16.mxu0 %v6524_v59 }
 0x96e   : > { %2336 = vadd.xlane.f32.xlu0 %v2335_v33  ;;  %v2338_v62 = vadd.f32 %v2328_v56, %v2327_v54  ;;  %v6573_v33 = vld [vmem:[#allocation13 + $0xc0] ss:$8 sps:$4 sm:$0xff]   ;;  %v6578_v54 = vld [vmem:[#allocation13 + $0xd4] ss:$8 sps:$4 sm:$0xff]   ;;  %v6576_v56 = vld [vmem:[#allocation13 + $0xd0] ss:$8 sps:$4 sm:$0xff]  }
 0x96f   : > { %2891 = vmatpush1.bf16.msra.mxu1 %v6561_v41 }
 0x970   : > { %2339 = vadd.xlane.f32.xlu1 %v2338_v62  ;;  %2629 = vmatpush1.bf16.msra.mxu0 %v6522_v23 }
 0x971   : > { %2630 = vmatprep.subr.bf16.mxu0 %v6527_v7  ;;  %2892 = vmatprep.subr.bf16.mxu1 %v6566_v50 }
 0x973   : > { %2893 = vmatpush1.bf16.msra.mxu1 %v6564_v51 }
 0x974   : > { %2631 = vmatpush1.bf16.msra.mxu0 %v6525_v8  ;;  %2894 = vmatprep.subr.bf16.mxu1 %v6569_v61 }
 0x975   : > { %2632 = vmatprep.subr.bf16.mxu0 %v6530_v12 }
 0x977   : > { %2895 = vmatpush1.bf16.msra.mxu1 %v6567_v52 }
 0x978   : > { %2633 = vmatpush1.bf16.msra.mxu0 %v6528_v15  ;;  %2896 = vmatprep.subr.bf16.mxu1 %v6572_v16 }
 0x979   : > { %2634 = vmatprep.subr.bf16.mxu0 %v6533_v19  ;;  %v799_v19 = vld [vmem:[%s8455_s12] sm:$0x3] }
 0x97a   : > { %v2365_v35 = vrot.slane %v799_v19, %v7706_v1  ;;  %v2369_v5 = vrot.slane %v799_v19, %v7773_v18 }
 0x97b   : > { %2897 = vmatpush1.bf16.msra.mxu1 %v6570_v57 }
 0x97c   : > { %2635 = vmatpush1.bf16.msra.mxu0 %v6531_v25  ;;  %2898 = vmatprep.subr.bf16.mxu1 %v6575_v60 }
 0x97d   : > { %2636 = vmatprep.subr.bf16.mxu0 %v6536_v29 }
 0x97f   : > { %2899 = vmatpush1.bf16.msra.mxu1 %v6573_v33 }
 0x980   : > { %2637 = vmatpush1.bf16.msra.mxu0 %v6534_v27  ;;  %2900 = vmatprep.subr.bf16.mxu1 %v6578_v54 }
 0x983   : > { %2901 = vmatpush1.bf16.msra.mxu1 %v6576_v56 }
 0x9f3   : > { %v2331_v62 = vpop.xlane.xlu0 %2330 }
 0x9f4   : > { %v2341_v58 = vmul.f32 0.00390625, %v2331_v62 }
 0x9f5   : > { %v2334_v63 = vpop.xlane.xlu1 %2333 }
 0x9f6   : > { %v2345_v59 = vadd.f32 1e-05, %v2341_v58  ;;  %v2342_v23 = vmul.f32 0.00390625, %v2334_v63  ;;  %v6579_v63 = vld [vmem:[#allocation13 + $0xe0] ss:$8 sps:$4 sm:$0xff]  }
 0x9f8   : > { %6905 = vrsqrt.f32 %v2345_v59  ;;  %v2346_v7 = vadd.f32 1e-05, %v2342_v23  ;;  %v6584_v59 = vld [vmem:[#allocation13 + $0xf4] ss:$8 sps:$4 sm:$0xff]   ;;  %v6582_v23 = vld [vmem:[#allocation13 + $0xf0] ss:$8 sps:$4 sm:$0xff]  }
 0x9fa   : > { %6907 = vrsqrt.f32 %v2346_v7  ;;  %v801_v7 = vld [vmem:[%s8457_s14] sm:$0x3] }
 0x9fb   : > { %v2337_v8 = vpop.xlane.xlu0 %2336 }
 0x9fc   : > { %v2343_v12 = vmul.f32 0.00390625, %v2337_v8  ;;  %v2439_v8 = vrot.slane %v801_v7, %v7706_v1 }
 0x9fd   : > { %v2340_v15 = vpop.xlane.xlu1 %2339 }
 0x9fe   : > { %v2347_v25 = vadd.f32 1e-05, %v2343_v12  ;;  %v2344_v27 = vmul.f32 0.00390625, %v2340_v15  ;;  %v2443_v12 = vrot.slane %v801_v7, %v7773_v18 }
 0xa00   : > { %6909 = vrsqrt.f32 %v2347_v25  ;;  %v2348_v29 = vadd.f32 1e-05, %v2344_v27 }
 0xa02   : > { %v6906_v36 = vpop.eup %6905  ;;  %6911 = vrsqrt.f32 %v2348_v29 }
 0xa03   : > { %v2353_v37 = vmul.f32 %v6906_v36, %v7880_v42  ;;  %v2354_v38 = vmul.f32 %v6906_v36, %v7883_v43 }
 0xa04   : > { %v6908_v10 = vpop.eup %6907 }
 0xa05   : > { %v2372_v39 = vmul.f32 %v2365_v35, %v2353_v37  ;;  %v2355_v26 = vmul.f32 %v6908_v10, %v7886_v17  ;;  %v2356_v40 = vmul.f32 %v6908_v10, %v7889_v13  ;;  %v2373_v11 = vmul.f32 %v2369_v5, %v2354_v38 }
 0xa07   : > { %v2374_v31 = vmul.f32 %v2365_v35, %v2355_v26  ;;  %v2375_v46 = vmul.f32 %v2369_v5, %v2356_v40  ;;  %v7933_v47 = vadd.f32 %v2388_v2, %v2373_v11  ;;  %v7937_v42 = vadd.f32 %v2384_v9, %v2372_v39 }
 0xa09   : > { %v7935_v44 = vadd.f32 %v2388_v2, %v2375_v46  ;;  %v7939_v43 = vadd.f32 %v2384_v9, %v2374_v31 }
 0xa0a   : > { %v6910_v41 = vpop.eup %6909 }
 0xa0b   : > { %v2400_v50 = vpack.c.bf16 %v7935_v44, %v7933_v47  ;;  %v2399_v17 = vpack.c.bf16 %v7939_v43, %v7937_v42  ;;  %v2358_v13 = vmul.f32 %v6910_v41, %v7903_v53  ;;  %v2357_v51 = vmul.f32 %v6910_v41, %v7900_v45 }
 0xa0c   : > { %v6912_v61 = vpop.eup %6911 }
 0xa0d   : > { %2638 = vmatprep.mubr.bf16.mxu0 %v2400_v50  ;;  %v2360_v52 = vmul.f32 %v6912_v61, %v7909_v55  ;;  %v2377_v16 = vmul.f32 %v2369_v5, %v2358_v13  ;;  %v2359_v57 = vmul.f32 %v6912_v61, %v7906_v14  ;;  %v2376_v60 = vmul.f32 %v2365_v35, %v2357_v51  ;;  %v6581_v14 = vld [vmem:[#allocation13 + $0xe4] ss:$8 sps:$4 sm:$0xff]  }
 0xa0e   : > { %2639 = vmatmul.mubr.bf16.vlgmr.msra.gmra.mrb[24].mxu0 %v2399_v17  ;;  %2902 = vmatprep.subr.bf16.mxu1 %v6581_v14 }
 0xa0f   : > { %v2379_v33 = vmul.f32 %v2369_v5, %v2360_v52  ;;  %v2378_v54 = vmul.f32 %v2365_v35, %v2359_v57  ;;  %v7949_v56 = vadd.f32 %v2388_v2, %v2377_v16  ;;  %v7953_v58 = vadd.f32 %v2384_v9, %v2376_v60  ;;  %2903 = vmatpush1.bf16.msra.mxu1 %v6579_v63  ;;  %v802_v57 = vld [vmem:[%s8458_s9] sm:$0x3] }
 0xa10   : > { %2904 = vmatprep.subr.bf16.mxu1 %v6584_v59  ;;  %v2707_v60 = vrot.slane %v802_v57, %v7706_v1 }
 0xa11   : > { %v7951_v62 = vadd.f32 %v2388_v2, %v2379_v33  ;;  %v7955_v53 = vadd.f32 %v2384_v9, %v2378_v54  ;;  %v2711_v33 = vrot.slane %v802_v57, %v7773_v18  ;;  %v6609_v57 = vld [vmem:[#allocation8 + $0x3c0] ss:$24 sps:$4 sm:$0xff]  }
 0xa13   : > { %v2402_v45 = vpack.c.bf16 %v7951_v62, %v7949_v56  ;;  %v2401_v55 = vpack.c.bf16 %v7955_v53, %v7953_v58  ;;  %2905 = vmatpush1.bf16.msra.mxu1 %v6582_v23 }
 0xa15   : > { %2648 = vmatprep.mubr.bf16.mxu0 %v2402_v45 }
 0xa16   : > { %2649 = vmatmul.mubr.bf16.gmra.mrb[28].mxu0 %v2401_v55 }
 0xae1   : > { %v2640_v15 = vpop.f32.mrb[24].mxu0 }
 0xae2   : > { %v2641_v19 = vadd.f32 %v2640_v15, %v2439_v8  ;;  %v2642_v25 = vpop.f32.mrb[25].mxu0 }
 0xae3   : > { %v2643_v27 = vadd.f32 %v2642_v25, %v2443_v12  ;;  %v2644_v29 = vpop.f32.mrb[26].mxu0 }
 0xae4   : > { %v2645_v35 = vadd.f32 %v2644_v29, %v2439_v8  ;;  %v2646_v6 = vpop.f32.mrb[27].mxu0  ;;  %v2659_v36 = vmax.f32 %v2641_v19, 0.0 }
 0xae5   : > { %v2647_v5 = vadd.f32 %v2646_v6, %v2443_v12  ;;  %v2660_v38 = vmax.f32 %v2643_v27, 0.0 }
 0xae6   : > { %v2661_v37 = vmax.f32 %v2645_v35, 0.0 }
 0xae7   : > { %v2662_v10 = vmax.f32 %v2647_v5, 0.0 }
 0xae8   : > { %v2667_v9 = vpack.c.bf16 %v2661_v37, %v2659_v36 }
 0xae9   : > { %v2668_v2 = vpack.c.bf16 %v2662_v10, %v2660_v38  ;;  %v2650_v39 = vpop.f32.mrb[28].mxu0 }
 0xaea   : > { %v2651_v26 = vadd.f32 %v2650_v39, %v2439_v8  ;;  %v2652_v40 = vpop.f32.mrb[29].mxu0  ;;  %v6587_v39 = vld [vmem:[#allocation8 + $0x304] ss:$24 sps:$4 sm:$0xff]  }
 0xaeb   : > { %v2653_v11 = vadd.f32 %v2652_v40, %v2443_v12  ;;  %v2654_v31 = vpop.f32.mrb[30].mxu0  ;;  %2906 = vmatprep.mubr.bf16.mxu1 %v2668_v2  ;;  %v6585_v2 = vld [vmem:[#allocation8 + $0x300] ss:$24 sps:$4 sm:$0xff]   ;;  %v6593_v40 = vld [vmem:[#allocation8 + $0x334] ss:$24 sps:$4 sm:$0xff]   ;;  %3665 = vmatprep.subr.bf16.mxu0 %v6587_v39 }
 0xaec   : > { %v2655_v46 = vadd.f32 %v2654_v31, %v2439_v8  ;;  %v2656_v41 = vpop.f32.mrb[31].mxu0  ;;  %2907 = vmatmul.mubr.bf16.vlgmr.msra.gmra.mrb[32].mxu1 %v2667_v9  ;;  %v2663_v17 = vmax.f32 %v2651_v26, 0.0  ;;  %v6588_v26 = vld [vmem:[#allocation8 + $0x308] ss:$24 sps:$4 sm:$0xff]   ;;  %3666 = vmatpush1.bf16.msra.mxu0 %v6585_v2  ;;  %v6599_v31 = vld [vmem:[#allocation8 + $0x364] ss:$24 sps:$4 sm:$0xff]  }
 0xaed   : > { %v2657_v50 = vadd.f32 %v2656_v41, %v2443_v12  ;;  %v2664_v51 = vmax.f32 %v2653_v11, 0.0  ;;  %v6596_v11 = vld [vmem:[#allocation8 + $0x33c] ss:$24 sps:$4 sm:$0xff]   ;;  %3667 = vmatprep.subr.bf16.mxu0 %v6593_v40  ;;  %v6597_v41 = vld [vmem:[#allocation8 + $0x360] ss:$24 sps:$4 sm:$0xff]  }
 0xaee   : > { %v2665_v13 = vmax.f32 %v2655_v46, 0.0  ;;  %v6602_v46 = vld [vmem:[#allocation8 + $0x36c] ss:$24 sps:$4 sm:$0xff]  }
 0xaef   : > { %v2666_v61 = vmax.f32 %v2657_v50, 0.0  ;;  %v6600_v50 = vld [vmem:[#allocation8 + $0x368] ss:$24 sps:$4 sm:$0xff]  }
 0xaf0   : > { %v2669_v52 = vpack.c.bf16 %v2665_v13, %v2663_v17  ;;  %v6605_v17 = vld [vmem:[#allocation8 + $0x394] ss:$24 sps:$4 sm:$0xff]  }
 0xaf1   : > { %v2670_v16 = vpack.c.bf16 %v2666_v61, %v2664_v51  ;;  %v6608_v13 = vld [vmem:[#allocation8 + $0x39c] ss:$24 sps:$4 sm:$0xff]   ;;  %v6603_v51 = vld [vmem:[#allocation8 + $0x390] ss:$24 sps:$4 sm:$0xff]  }
 0xaf2   : > { %v6606_v61 = vld [vmem:[#allocation8 + $0x398] ss:$24 sps:$4 sm:$0xff]  }
 0xaf3   : > { %2916 = vmatprep.mubr.bf16.mxu1 %v2670_v16  ;;  %v6614_v16 = vld [vmem:[#allocation8 + $0x3cc] ss:$24 sps:$4 sm:$0xff]  }
 0xaf4   : > { %2917 = vmatmul.mubr.bf16.gmra.mrb[36].mxu1 %v2669_v52  ;;  %v6611_v52 = vld [vmem:[#allocation8 + $0x3c4] ss:$24 sps:$4 sm:$0xff]  }
 0xbbf   : > { %v2908_v54 = vpop.f32.mrb[32].mxu1 }
 0xbc0   : > { %v2909_v45 = vadd.f32 %v2908_v54, %v2707_v60  ;;  %v2910_v55 = vpop.f32.mrb[33].mxu1  ;;  %v6620_v54 = vld [vmem:[#allocation8 + $0x3fc] ss:$24 sps:$4 sm:$0xff]  }
 0xbc1   : > { %v2911_v14 = vadd.f32 %v2910_v55, %v2711_v33  ;;  %v2912_v63 = vpop.f32.mrb[34].mxu1  ;;  %v6618_v55 = vld [vmem:[#allocation8 + $0x3f8] ss:$24 sps:$4 sm:$0xff]  }
 0xbc2   : > { %v7972_v59 = vadd.f32 %v2909_v45, %v7937_v42  ;;  %v2913_v23 = vadd.f32 %v2912_v63, %v2707_v60  ;;  %v2914_v7 = vpop.f32.mrb[35].mxu1  ;;  %v6615_v45 = vld [vmem:[#allocation8 + $0x3f0] ss:$24 sps:$4 sm:$0xff]   ;;  %v6626_v63 = vld [vmem:[#allocation8 + $0x42c] ss:$24 sps:$4 sm:$0xff]  }
 0xbc3   : > { %v7975_v8 = vadd.f32 %v2911_v14, %v7933_v47  ;;  %v2915_v12 = vadd.f32 %v2914_v7, %v2711_v33  ;;  %v6623_v14 = vld [vmem:[#allocation8 + $0x424] ss:$24 sps:$4 sm:$0xff]   ;;  %v6624_v7 = vld [vmem:[#allocation8 + $0x428] ss:$24 sps:$4 sm:$0xff]  }
 0xbc4   : > { %v7978_v15 = vadd.f32 %v2913_v23, %v7939_v43  ;;  %v6621_v23 = vld [vmem:[#allocation8 + $0x420] ss:$24 sps:$4 sm:$0xff]  }
 0xbc5   : > { %v7981_v19 = vadd.f32 %v2915_v12, %v7935_v44  ;;  %v2935_v25 = vadd.f32 %v7975_v8, %v7972_v59  ;;  %v6629_v12 = vld [vmem:[#allocation8 + $0x454] ss:$24 sps:$4 sm:$0xff]  }
 0xbc7   : > { %2936 = vadd.xlane.f32.xlu0 %v2935_v25  ;;  %v2918_v27 = vpop.f32.mrb[36].mxu1  ;;  %v2938_v42 = vadd.f32 %v7981_v19, %v7978_v15  ;;  %v6632_v25 = vld [vmem:[#allocation8 + $0x45c] ss:$24 sps:$4 sm:$0xff]  }
 0xbc8   : > { %v2919_v29 = vadd.f32 %v2918_v27, %v2707_v60  ;;  %v2920_v35 = vpop.f32.mrb[37].mxu1  ;;  %v6627_v27 = vld [vmem:[#allocation8 + $0x450] ss:$24 sps:$4 sm:$0xff]  }
 0xbc9   : > { %v2921_v6 = vadd.f32 %v2920_v35, %v2711_v33  ;;  %2939 = vadd.xlane.f32.xlu1 %v2938_v42  ;;  %v2922_v47 = vpop.f32.mrb[38].mxu1  ;;  %v6630_v42 = vld [vmem:[#allocation8 + $0x458] ss:$24 sps:$4 sm:$0xff]   ;;  %v6638_v35 = vld [vmem:[#allocation8 + $0x48c] ss:$24 sps:$4 sm:$0xff]  }
 0xbca   : > { %v7988_v5 = vadd.f32 %v2919_v29, %v7953_v58  ;;  %v2923_v43 = vadd.f32 %v2922_v47, %v2707_v60  ;;  %v2924_v36 = vpop.f32.mrb[39].mxu1  ;;  %v6612_v60 = vld [vmem:[#allocation8 + $0x3c8] ss:$24 sps:$4 sm:$0xff]   ;;  %v6635_v29 = vld [vmem:[#allocation8 + $0x484] ss:$24 sps:$4 sm:$0xff]  }
 0xbcb   : > { %v7991_v44 = vadd.f32 %v2921_v6, %v7949_v56  ;;  %v2925_v37 = vadd.f32 %v2924_v36, %v2711_v33  ;;  %v6590_v56 = vld [vmem:[#allocation8 + $0x30c] ss:$24 sps:$4 sm:$0xff]   ;;  %v6633_v6 = vld [vmem:[#allocation8 + $0x480] ss:$24 sps:$4 sm:$0xff]   ;;  %v6644_v36 = vld [vmem:[#allocation8 + $0x4bc] ss:$24 sps:$4 sm:$0xff]  }
 0xbcc   : > { %v7994_v38 = vadd.f32 %v2923_v43, %v7955_v53  ;;  %3718 = vmatprep.subr.bf16.mxu1 %v6590_v56  ;;  %v6591_v53 = vld [vmem:[#allocation8 + $0x330] ss:$24 sps:$4 sm:$0xff]   ;;  %v6617_v33 = vld [vmem:[#allocation8 + $0x3f4] ss:$24 sps:$4 sm:$0xff]  }
 0xbcd   : > { %v7997_v10 = vadd.f32 %v2925_v37, %v7951_v62  ;;  %v2941_v9 = vadd.f32 %v7991_v44, %v7988_v5  ;;  %3719 = vmatpush1.bf16.msra.mxu1 %v6588_v26  ;;  %v6594_v62 = vld [vmem:[#allocation8 + $0x338] ss:$24 sps:$4 sm:$0xff]   ;;  %3668 = vmatpush1.bf16.msra.mxu0 %v6591_v53  ;;  %v6636_v47 = vld [vmem:[#allocation8 + $0x488] ss:$24 sps:$4 sm:$0xff]   ;;  %v6641_v43 = vld [vmem:[#allocation8 + $0x4b4] ss:$24 sps:$4 sm:$0xff]  }
 0xbce   : > { %3720 = vmatprep.subr.bf16.mxu1 %v6596_v11  ;;  %3669 = vmatprep.subr.bf16.mxu0 %v6599_v31  ;;  %v6639_v37 = vld [vmem:[#allocation8 + $0x4b0] ss:$24 sps:$4 sm:$0xff]  }
 0xbcf   : > { %2942 = vadd.xlane.f32.xlu0 %v2941_v9  ;;  %v2944_v58 = vadd.f32 %v7997_v10, %v7994_v38  ;;  %v6642_v9 = vld [vmem:[#allocation8 + $0x4b8] ss:$24 sps:$4 sm:$0xff]  }
 0xbd1   : > { %2945 = vadd.xlane.f32.xlu1 %v2944_v58  ;;  %3721 = vmatpush1.bf16.msra.mxu1 %v6594_v62 }
 0xbd2   : > { %3722 = vmatprep.subr.bf16.mxu1 %v6602_v46  ;;  %3670 = vmatpush1.bf16.msra.mxu0 %v6597_v41 }
 0xbd3   : > { %3671 = vmatprep.subr.bf16.mxu0 %v6605_v17 }
 0xbd5   : > { %3723 = vmatpush1.bf16.msra.mxu1 %v6600_v50 }
 0xbd6   : > { %3724 = vmatprep.subr.bf16.mxu1 %v6608_v13  ;;  %3672 = vmatpush1.bf16.msra.mxu0 %v6603_v51 }
 0xbd7   : > { %3673 = vmatprep.subr.bf16.mxu0 %v6611_v52 }
 0xbd9   : > { %3725 = vmatpush1.bf16.msra.mxu1 %v6606_v61 }
 0xbda   : > { %3726 = vmatprep.subr.bf16.mxu1 %v6614_v16  ;;  %3674 = vmatpush1.bf16.msra.mxu0 %v6609_v57 }
 0xbdb   : > { %3675 = vmatprep.subr.bf16.mxu0 %v6617_v33 }
 0xbdd   : > { %3727 = vmatpush1.bf16.msra.mxu1 %v6612_v60 }
 0xbde   : > { %3728 = vmatprep.subr.bf16.mxu1 %v6620_v54  ;;  %3676 = vmatpush1.bf16.msra.mxu0 %v6615_v45  ;;  %v6645_v54 = vld [vmem:[#allocation8 + $0x4e0] ss:$24 sps:$4 sm:$0xff]  }
 0xbdf   : > { %3677 = vmatprep.subr.bf16.mxu0 %v6623_v14  ;;  %v6648_v45 = vld [vmem:[#allocation8 + $0x4e8] ss:$24 sps:$4 sm:$0xff]  }
 0xbe0   : > { %v6651_v14 = vld [vmem:[#allocation8 + $0x510] ss:$24 sps:$4 sm:$0xff]  }
 0xbe1   : > { %3729 = vmatpush1.bf16.msra.mxu1 %v6618_v55  ;;  %v6653_v55 = vld [vmem:[#allocation8 + $0x514] ss:$24 sps:$4 sm:$0xff]  }
 0xbe2   : > { %3730 = vmatprep.subr.bf16.mxu1 %v6626_v63  ;;  %3678 = vmatpush1.bf16.msra.mxu0 %v6621_v23  ;;  %v6656_v63 = vld [vmem:[#allocation8 + $0x51c] ss:$24 sps:$4 sm:$0xff]   ;;  %v6654_v23 = vld [vmem:[#allocation8 + $0x518] ss:$24 sps:$4 sm:$0xff]  }
 0xbe3   : > { %3679 = vmatprep.subr.bf16.mxu0 %v6629_v12  ;;  %v6657_v12 = vld [vmem:[#allocation8 + $0x540] ss:$24 sps:$4 sm:$0xff]  }
 0xbe5   : > { %3731 = vmatpush1.bf16.msra.mxu1 %v6624_v7  ;;  %v6659_v7 = vld [vmem:[#allocation8 + $0x544] ss:$24 sps:$4 sm:$0xff]  }
 0xbe6   : > { %3732 = vmatprep.subr.bf16.mxu1 %v6632_v25  ;;  %3680 = vmatpush1.bf16.msra.mxu0 %v6627_v27  ;;  %v6662_v25 = vld [vmem:[#allocation8 + $0x54c] ss:$24 sps:$4 sm:$0xff]   ;;  %v6660_v27 = vld [vmem:[#allocation8 + $0x548] ss:$24 sps:$4 sm:$0xff]  }
 0xbe7   : > { %3681 = vmatprep.subr.bf16.mxu0 %v6635_v29  ;;  %v6663_v29 = vld [vmem:[#allocation8 + $0x570] ss:$24 sps:$4 sm:$0xff]  }
 0xbe9   : > { %3733 = vmatpush1.bf16.msra.mxu1 %v6630_v42  ;;  %v6665_v42 = vld [vmem:[#allocation8 + $0x574] ss:$24 sps:$4 sm:$0xff]  }
 0xbea   : > { %3734 = vmatprep.subr.bf16.mxu1 %v6638_v35  ;;  %3682 = vmatpush1.bf16.msra.mxu0 %v6633_v6  ;;  %v6668_v35 = vld [vmem:[#allocation8 + $0x57c] ss:$24 sps:$4 sm:$0xff]   ;;  %v6666_v6 = vld [vmem:[#allocation8 + $0x578] ss:$24 sps:$4 sm:$0xff]  }
 0xbeb   : > { %3683 = vmatprep.subr.bf16.mxu0 %v6641_v43  ;;  %v6669_v43 = vld [vmem:[#allocation8 + $0x5a0] ss:$24 sps:$4 sm:$0xff]  }
 0xbed   : > { %3735 = vmatpush1.bf16.msra.mxu1 %v6636_v47  ;;  %v6671_v47 = vld [vmem:[#allocation8 + $0x5a4] ss:$24 sps:$4 sm:$0xff]  }
 0xbee   : > { %3736 = vmatprep.subr.bf16.mxu1 %v6644_v36  ;;  %3684 = vmatpush1.bf16.msra.mxu0 %v6639_v37  ;;  %v6674_v36 = vld [vmem:[#allocation8 + $0x5ac] ss:$24 sps:$4 sm:$0xff]   ;;  %v6672_v37 = vld [vmem:[#allocation8 + $0x5a8] ss:$24 sps:$4 sm:$0xff]  }
 0xbf1   : > { %3737 = vmatpush1.bf16.msra.mxu1 %v6642_v9  ;;  %v6675_v9 = vld [vmem:[#allocation8 + $0x5d0] ss:$24 sps:$4 sm:$0xff]  }
 0xc54   : > { %v2937_v58 = vpop.xlane.xlu0 %2936 }
 0xc55   : > { %v2947_v2 = vmul.f32 0.00390625, %v2937_v58  ;;  %v6677_v58 = vld [vmem:[#allocation8 + $0x5d4] ss:$24 sps:$4 sm:$0xff]  }
 0xc56   : > { %v2940_v39 = vpop.xlane.xlu1 %2939 }
 0xc57   : > { %v8004_v26 = vsub.f32 %v7972_v59, %v2947_v2  ;;  %v8007_v56 = vsub.f32 %v7975_v8, %v2947_v2  ;;  %v2948_v40 = vmul.f32 0.00390625, %v2940_v39  ;;  %v6678_v2 = vld [vmem:[#allocation8 + $0x5d8] ss:$24 sps:$4 sm:$0xff]   ;;  %v6680_v39 = vld [vmem:[#allocation8 + $0x5dc] ss:$24 sps:$4 sm:$0xff]  }
 0xc59   : > { %v8010_v11 = vsub.f32 %v7978_v15, %v2948_v40  ;;  %v8013_v53 = vsub.f32 %v7981_v19, %v2948_v40  ;;  %v2959_v62 = vmul.f32 %v8004_v26, %v8004_v26  ;;  %v2960_v31 = vmul.f32 %v8007_v56, %v8007_v56  ;;  %v6683_v40 = vld [vmem:[#allocation8 + $0x314] ss:$24 sps:$4 sm:$0xff]  }
 0xc5b   : > { %v2967_v46 = vadd.f32 %v2960_v31, %v2959_v62  ;;  %v2961_v59 = vmul.f32 %v8010_v11, %v8010_v11  ;;  %v2962_v8 = vmul.f32 %v8013_v53, %v8013_v53 }
 0xc5c   : > { %v2943_v41 = vpop.xlane.xlu0 %2942 }
 0xc5d   : > { %v2949_v50 = vmul.f32 0.00390625, %v2943_v41  ;;  %2968 = vadd.xlane.f32.xlu0 %v2967_v46  ;;  %v2970_v15 = vadd.f32 %v2962_v8, %v2961_v59 }
 0xc5e   : > { %v2946_v17 = vpop.xlane.xlu1 %2945 }
 0xc5f   : > { %v8024_v19 = vsub.f32 %v7988_v5, %v2949_v50  ;;  %v8027_v13 = vsub.f32 %v7991_v44, %v2949_v50  ;;  %v2950_v51 = vmul.f32 0.00390625, %v2946_v17  ;;  %2971 = vadd.xlane.f32.xlu1 %v2970_v15 }
 0xc61   : > { %v8030_v61 = vsub.f32 %v7994_v38, %v2950_v51  ;;  %v8033_v52 = vsub.f32 %v7997_v10, %v2950_v51  ;;  %v2963_v16 = vmul.f32 %v8024_v19, %v8024_v19  ;;  %v2964_v57 = vmul.f32 %v8027_v13, %v8027_v13  ;;  %v6647_v38 = vld [vmem:[#allocation8 + $0x4e4] ss:$24 sps:$4 sm:$0xff]   ;;  %v803_v51 = vld [vmem:[%s8459_s16] sm:$0x3] }
 0xc62   : > { %v6650_v10 = vld [vmem:[#allocation8 + $0x4ec] ss:$24 sps:$4 sm:$0xff]   ;;  %3685 = vmatprep.subr.bf16.mxu0 %v6647_v38 }
 0xc63   : > { %v2973_v60 = vadd.f32 %v2964_v57, %v2963_v16  ;;  %v2965_v5 = vmul.f32 %v8030_v61, %v8030_v61  ;;  %v2966_v44 = vmul.f32 %v8033_v52, %v8033_v52  ;;  %3686 = vmatpush1.bf16.msra.mxu0 %v6645_v54  ;;  %3738 = vmatprep.subr.bf16.mxu1 %v6650_v10 }
 0xc64   : > { %3739 = vmatpush1.bf16.msra.mxu1 %v6648_v45  ;;  %3687 = vmatprep.subr.bf16.mxu0 %v6653_v55 }
 0xc65   : > { %2974 = vadd.xlane.f32.xlu0 %v2973_v60  ;;  %v2976_v33 = vadd.f32 %v2966_v44, %v2965_v5  ;;  %3740 = vmatprep.subr.bf16.mxu1 %v6656_v63  ;;  %v3003_v5 = vrot.slane %v803_v51, %v7706_v1  ;;  %v804_v44 = vld [vmem:[%s8460_s22] sm:$0x3] }
 0xc66   : > { %v3022_v55 = vrot.slane %v804_v44, %v7706_v1 }
 0xc67   : > { %2977 = vadd.xlane.f32.xlu1 %v2976_v33  ;;  %3688 = vmatpush1.bf16.msra.mxu0 %v6651_v14  ;;  %v3007_v33 = vrot.slane %v803_v51, %v7773_v18  ;;  %v3026_v14 = vrot.slane %v804_v44, %v7773_v18  ;;  %v6693_v51 = vld [vmem:[#allocation8 + $0x3d0] ss:$24 sps:$4 sm:$0xff]   ;;  %v6704_v44 = vld [vmem:[#allocation8 + $0x464] ss:$24 sps:$4 sm:$0xff]  }
 0xc68   : > { %3741 = vmatpush1.bf16.msra.mxu1 %v6654_v23  ;;  %3689 = vmatprep.subr.bf16.mxu0 %v6659_v7 }
 0xc69   : > { %3742 = vmatprep.subr.bf16.mxu1 %v6662_v25 }
 0xc6b   : > { %3690 = vmatpush1.bf16.msra.mxu0 %v6657_v12 }
 0xc6c   : > { %3743 = vmatpush1.bf16.msra.mxu1 %v6660_v27  ;;  %3691 = vmatprep.subr.bf16.mxu0 %v6665_v42 }
 0xc6d   : > { %3744 = vmatprep.subr.bf16.mxu1 %v6668_v35 }
 0xc6f   : > { %3692 = vmatpush1.bf16.msra.mxu0 %v6663_v29 }
 0xc70   : > { %3745 = vmatpush1.bf16.msra.mxu1 %v6666_v6  ;;  %3693 = vmatprep.subr.bf16.mxu0 %v6671_v47  ;;  %v6681_v47 = vld [vmem:[#allocation8 + $0x310] ss:$24 sps:$4 sm:$0xff]  }
 0xc71   : > { %3746 = vmatprep.subr.bf16.mxu1 %v6674_v36 }
 0xc73   : > { %3694 = vmatpush1.bf16.msra.mxu0 %v6669_v43 }
 0xc74   : > { %3747 = vmatpush1.bf16.msra.mxu1 %v6672_v37  ;;  %3695 = vmatprep.subr.bf16.mxu0 %v6677_v58  ;;  %v6686_v37 = vld [vmem:[#allocation8 + $0x344] ss:$24 sps:$4 sm:$0xff]  }
 0xc75   : > { %3748 = vmatprep.subr.bf16.mxu1 %v6680_v39 }
 0xc77   : > { %3696 = vmatpush1.bf16.msra.mxu0 %v6675_v9 }
 0xc78   : > { %3749 = vmatpush1.bf16.msra.mxu1 %v6678_v2  ;;  %3771 = vmatprep.subr.bf16.mxu0 %v6683_v40  ;;  %v6684_v40 = vld [vmem:[#allocation8 + $0x340] ss:$24 sps:$4 sm:$0xff]  }
 0xcea   : > { %v2969_v62 = vpop.xlane.xlu0 %2968 }
 0xceb   : > { %v2979_v31 = vmul.f32 0.00390625, %v2969_v62 }
 0xcec   : > { %v2972_v46 = vpop.xlane.xlu1 %2971 }
 0xced   : > { %v2983_v59 = vadd.f32 1e-05, %v2979_v31  ;;  %v2980_v8 = vmul.f32 0.00390625, %v2972_v46 }
 0xcef   : > { %6913 = vrsqrt.f32 %v2983_v59  ;;  %v2984_v41 = vadd.f32 1e-05, %v2980_v8  ;;  %v6687_v8 = vld [vmem:[#allocation8 + $0x370] ss:$24 sps:$4 sm:$0xff]  }
 0xcf1   : > { %6915 = vrsqrt.f32 %v2984_v41 }
 0xcf2   : > { %v2975_v50 = vpop.xlane.xlu0 %2974 }
 0xcf3   : > { %v2981_v15 = vmul.f32 0.00390625, %v2975_v50  ;;  %v6692_v50 = vld [vmem:[#allocation8 + $0x3a4] ss:$24 sps:$4 sm:$0xff]  }
 0xcf4   : > { %v2978_v17 = vpop.xlane.xlu1 %2977 }
 0xcf5   : > { %v2985_v16 = vadd.f32 1e-05, %v2981_v15  ;;  %v2982_v57 = vmul.f32 0.00390625, %v2978_v17  ;;  %v6690_v15 = vld [vmem:[#allocation8 + $0x3a0] ss:$24 sps:$4 sm:$0xff]  }
 0xcf6   : > { %v6695_v17 = vld [vmem:[#allocation8 + $0x3d4] ss:$24 sps:$4 sm:$0xff]  }
 0xcf7   : > { %6917 = vrsqrt.f32 %v2985_v16  ;;  %v2986_v60 = vadd.f32 1e-05, %v2982_v57  ;;  %v6698_v16 = vld [vmem:[#allocation8 + $0x404] ss:$24 sps:$4 sm:$0xff]   ;;  %v6696_v57 = vld [vmem:[#allocation8 + $0x400] ss:$24 sps:$4 sm:$0xff]  }
 0xcf9   : > { %v6914_v38 = vpop.eup %6913  ;;  %6919 = vrsqrt.f32 %v2986_v60  ;;  %v6701_v60 = vld [vmem:[#allocation8 + $0x434] ss:$24 sps:$4 sm:$0xff]  }
 0xcfa   : > { %v2991_v54 = vmul.f32 %v6914_v38, %v8004_v26  ;;  %v2992_v10 = vmul.f32 %v6914_v38, %v8007_v56  ;;  %v6707_v38 = vld [vmem:[#allocation8 + $0x494] ss:$24 sps:$4 sm:$0xff]  }
 0xcfb   : > { %v6916_v45 = vpop.eup %6915 }
 0xcfc   : > { %v3010_v63 = vmul.f32 %v3003_v5, %v2991_v54  ;;  %v2993_v23 = vmul.f32 %v6916_v45, %v8010_v11  ;;  %v2994_v7 = vmul.f32 %v6916_v45, %v8013_v53  ;;  %v3011_v12 = vmul.f32 %v3007_v33, %v2992_v10  ;;  %v6705_v54 = vld [vmem:[#allocation8 + $0x490] ss:$24 sps:$4 sm:$0xff]   ;;  %v6710_v10 = vld [vmem:[#allocation8 + $0x4c4] ss:$24 sps:$4 sm:$0xff]   ;;  %v6708_v45 = vld [vmem:[#allocation8 + $0x4c0] ss:$24 sps:$4 sm:$0xff]  }
 0xcfe   : > { %v3012_v25 = vmul.f32 %v3003_v5, %v2993_v23  ;;  %v3013_v27 = vmul.f32 %v3007_v33, %v2994_v7  ;;  %v8057_v42 = vadd.f32 %v3026_v14, %v3011_v12  ;;  %v8061_v26 = vadd.f32 %v3022_v55, %v3010_v63  ;;  %v6716_v63 = vld [vmem:[#allocation8 + $0x524] ss:$24 sps:$4 sm:$0xff]   ;;  %v6714_v23 = vld [vmem:[#allocation8 + $0x520] ss:$24 sps:$4 sm:$0xff]   ;;  %v6719_v7 = vld [vmem:[#allocation8 + $0x554] ss:$24 sps:$4 sm:$0xff]  }
 0xcff   : > { %v6717_v12 = vld [vmem:[#allocation8 + $0x550] ss:$24 sps:$4 sm:$0xff]  }
 0xd00   : > { %v8059_v29 = vadd.f32 %v3026_v14, %v3013_v27  ;;  %v8063_v56 = vadd.f32 %v3022_v55, %v3012_v25  ;;  %v6722_v25 = vld [vmem:[#allocation8 + $0x584] ss:$24 sps:$4 sm:$0xff]   ;;  %v6720_v27 = vld [vmem:[#allocation8 + $0x580] ss:$24 sps:$4 sm:$0xff]  }
 0xd01   : > { %v6918_v35 = vpop.eup %6917 }
 0xd02   : > { %v3054_v6 = vpack.c.bf16 %v8059_v29, %v8057_v42  ;;  %v8069_v11 = vpack.c.bf16 %v8063_v56, %v8061_v26  ;;  %v2996_v53 = vmul.f32 %v6918_v35, %v8027_v13  ;;  %v2995_v43 = vmul.f32 %v6918_v35, %v8024_v19  ;;  %v6689_v19 = vld [vmem:[#allocation8 + $0x374] ss:$24 sps:$4 sm:$0xff]  }
 0xd03   : > { %v6920_v36 = vpop.eup %6919  ;;  %v6725_v35 = vld [vmem:[#allocation8 + $0x5b4] ss:$24 sps:$4 sm:$0xff]  }
 0xd04   : > { %3697 = vmatprep.mubr.bf16.mxu0 %v3054_v6  ;;  %3750 = vmatprep.mubr.bf16.mxu1 %v3054_v6  ;;  %v2998_v9 = vmul.f32 %v6920_v36, %v8033_v52  ;;  %v3015_v58 = vmul.f32 %v3007_v33, %v2996_v53  ;;  %v2997_v2 = vmul.f32 %v6920_v36, %v8030_v61  ;;  %v6726_v53 = vld [vmem:[#allocation8 + $0x5e0] ss:$24 sps:$4 sm:$0xff]  }
 0xd05   : > { %3698 = vmatmul.mubr.bf16.vlgmr.msra.gmra.mrb[32].mxu0 %v8069_v11  ;;  %3751 = vmatmul.mubr.bf16.vlgmr.msra.gmra.mrb[40].mxu1 %v8069_v11  ;;  %v3014_v39 = vmul.f32 %v3003_v5, %v2995_v43  ;;  %v5702_v43 = vld [vmem:[%s8392_s4 + $0x6] sm:$0x3f] }
 0xd06   : > { %3772 = vmatpush1.bf16.msra.mxu0 %v6681_v47  ;;  %v3017_v62 = vmul.f32 %v3007_v33, %v2998_v9  ;;  %v3016_v13 = vmul.f32 %v3003_v5, %v2997_v2  ;;  %v8077_v31 = vadd.f32 %v3026_v14, %v3015_v58  ;;  %v6699_v5 = vld [vmem:[#allocation8 + $0x430] ss:$24 sps:$4 sm:$0xff]   ;;  %v6702_v33 = vld [vmem:[#allocation8 + $0x460] ss:$24 sps:$4 sm:$0xff]   ;;  %v6728_v47 = vld [vmem:[#allocation8 + $0x5e4] ss:$24 sps:$4 sm:$0xff]   ;;  %v3158_v36 = vrot.slane %v5702_v43, %v7706_v1 }
 0xd07   : > { %3773 = vmatprep.subr.bf16.mxu0 %v6686_v37  ;;  %v8081_v59 = vadd.f32 %v3022_v55, %v3014_v39  ;;  %v3162_v37 = vrot.slane %v5702_v43, %v7773_v18  ;;  %v3166_v9 = vrot.slane %v5702_v43, %v916_v3  ;;  %v3170_v39 = vrot.slane %v5702_v43, %v920_v4 }
 0xd08   : > { %v8079_v46 = vadd.f32 %v3026_v14, %v3017_v62  ;;  %v8083_v52 = vadd.f32 %v3022_v55, %v3016_v13  ;;  %v6713_v55 = vld [vmem:[#allocation8 + $0x4f4] ss:$24 sps:$4 sm:$0xff]   ;;  %v6711_v14 = vld [vmem:[#allocation8 + $0x4f0] ss:$24 sps:$4 sm:$0xff]  }
 0xd0a   : > { %3774 = vmatpush1.bf16.msra.mxu0 %v6684_v40  ;;  %v3056_v61 = vpack.c.bf16 %v8079_v46, %v8077_v31  ;;  %v3055_v41 = vpack.c.bf16 %v8083_v52, %v8081_v59 }
 0xd0b   : > { %3775 = vmatprep.subr.bf16.mxu0 %v6689_v19 }
 0xd0c   : > { %3707 = vmatprep.mubr.bf16.mxu0 %v3056_v61  ;;  %3760 = vmatprep.mubr.bf16.mxu1 %v3056_v61 }
 0xd0d   : > { %3708 = vmatmul.mubr.bf16.gmra.mrb[36].mxu0 %v3055_v41  ;;  %3761 = vmatmul.mubr.bf16.gmra.mrb[44].mxu1 %v3055_v41 }
 0xd0e   : > { %3776 = vmatpush1.bf16.msra.mxu0 %v6687_v8  ;;  %3803 = vmatprep.mubr.bf16.mxu0 %v3054_v6  ;;  %v6723_v6 = vld [vmem:[#allocation8 + $0x5b0] ss:$24 sps:$4 sm:$0xff]  }
 0xd0f   : > { %3777 = vmatprep.subr.bf16.mxu0 %v6692_v50 }
 0xd12   : > { %3778 = vmatpush1.bf16.msra.mxu0 %v6690_v15 }
 0xd13   : > { %3779 = vmatprep.subr.bf16.mxu0 %v6695_v17 }
 0xd16   : > { %3780 = vmatpush1.bf16.msra.mxu0 %v6693_v51 }
 0xd17   : > { %3781 = vmatprep.subr.bf16.mxu0 %v6698_v16 }
 0xd1a   : > { %3782 = vmatpush1.bf16.msra.mxu0 %v6696_v57 }
 0xd1b   : > { %3783 = vmatprep.subr.bf16.mxu0 %v6701_v60 }
 0xd1e   : > { %3784 = vmatpush1.bf16.msra.mxu0 %v6699_v5 }
 0xd1f   : > { %3785 = vmatprep.subr.bf16.mxu0 %v6704_v44 }
 0xd22   : > { %3786 = vmatpush1.bf16.msra.mxu0 %v6702_v33 }
 0xd23   : > { %3787 = vmatprep.subr.bf16.mxu0 %v6707_v38 }
 0xd26   : > { %3788 = vmatpush1.bf16.msra.mxu0 %v6705_v54 }
 0xd27   : > { %3789 = vmatprep.subr.bf16.mxu0 %v6710_v10 }
 0xd2a   : > { %3790 = vmatpush1.bf16.msra.mxu0 %v6708_v45 }
 0xd2b   : > { %3791 = vmatprep.subr.bf16.mxu0 %v6713_v55 }
 0xd2e   : > { %3792 = vmatpush1.bf16.msra.mxu0 %v6711_v14 }
 0xd2f   : > { %3793 = vmatprep.subr.bf16.mxu0 %v6716_v63 }
 0xd32   : > { %3794 = vmatpush1.bf16.msra.mxu0 %v6714_v23 }
 0xd33   : > { %3795 = vmatprep.subr.bf16.mxu0 %v6719_v7 }
 0xd36   : > { %3796 = vmatpush1.bf16.msra.mxu0 %v6717_v12 }
 0xd37   : > { %3797 = vmatprep.subr.bf16.mxu0 %v6722_v25 }
 0xd3a   : > { %3798 = vmatpush1.bf16.msra.mxu0 %v6720_v27 }
 0xd3b   : > { %3799 = vmatprep.subr.bf16.mxu0 %v6725_v35 }
 0xd3e   : > { %3800 = vmatpush1.bf16.msra.mxu0 %v6723_v6 }
 0xd3f   : > { %3801 = vmatprep.subr.bf16.mxu0 %v6728_v47  ;;  %v3174_v47 = vrot.slane %v5702_v43, %v924_v48 }
 0xd42   : > { %3802 = vmatpush1.bf16.msra.mxu0 %v6726_v53 }
 0xd45   : > { %3804 = vmatmul.mubr.bf16.vlgmr.msra.gmra.mrb[40].mxu0 %v8069_v11 }
 0xd46   : > { %3813 = vmatprep.mubr.bf16.mxu0 %v3056_v61 }
 0xd4d   : > { %3814 = vmatmul.mubr.bf16.gmra.mrb[44].mxu0 %v3055_v41 }
 0xdd8   : > { %v3699_v58 = vpop.f32.mrb[32].mxu0  ;;  %v3752_v2 = vpop.f32.mrb[40].mxu1 }
 0xdd9   : > { %v3700_v40 = vadd.f32 %v3699_v58, %v3158_v36  ;;  %v3701_v11 = vpop.f32.mrb[33].mxu0  ;;  %v3754_v62 = vpop.f32.mrb[41].mxu1  ;;  %v3753_v8 = vadd.f32 %v3752_v2, %v3166_v9 }
 0xdda   : > { %v3702_v13 = vadd.f32 %v3701_v11, %v3162_v37  ;;  %v3703_v19 = vpop.f32.mrb[34].mxu0  ;;  %v3756_v61 = vpop.f32.mrb[42].mxu1  ;;  %v3755_v17 = vadd.f32 %v3754_v62, %v3170_v39 }
 0xddb   : > { %v3757_v41 = vadd.f32 %v3756_v61, %v3166_v9  ;;  %v3705_v50 = vpop.f32.mrb[35].mxu0  ;;  %v3758_v15 = vpop.f32.mrb[43].mxu1  ;;  %6048 = vmatprep.mubr.f32.mxu1 %v3700_v40  ;;  %v3704_v7 = vadd.f32 %v3703_v19, %v3158_v36 }
 0xddc   : > { %v3759_v51 = vadd.f32 %v3758_v15, %v3170_v39  ;;  %6076 = vmatprep.mubr.f32.mxu0 %v3702_v13  ;;  %v3706_v12 = vadd.f32 %v3705_v50, %v3162_v37 }
 0xddd   : > { %v6128_v3 = vpack.c.bf16 %v3757_v41, %v3753_v8 }
 0xdde   : > { %v6144_v16 = vpack.c.bf16 %v3759_v51, %v3755_v17  ;;  %v6969_v51 = vld [vmem:[%s7647_s27 + $0x8] sm:$0xff] }
 0xddf   : > { %6129 = vmatprep.subr.bf16.mxu1 %v6128_v3 }
 0xde0   : > { %v3709_v57 = vpop.f32.mrb[36].mxu0  ;;  %v3762_v60 = vpop.f32.mrb[44].mxu1  ;;  %6131 = vmatpush3.bf16.xpose.msra.mxu1 %v6128_v3  ;;  %6145 = vmatprep.subr.bf16.mxu0 %v6144_v16 }
 0xde1   : > { %v3711_v4 = vpop.f32.mrb[37].mxu0  ;;  %v3764_v5 = vpop.f32.mrb[45].mxu1  ;;  %6147 = vmatpush3.bf16.xpose.msra.mxu0 %v6144_v16  ;;  %v3763_v38 = vadd.f32 %v3762_v60, %v3166_v9  ;;  %v3710_v25 = vadd.f32 %v3709_v57, %v3158_v36  ;;  %v6970_v60 = vld [vmem:[%s7647_s27] sm:$0xff] }
 0xde2   : > { %v3713_v44 = vpop.f32.mrb[38].mxu0  ;;  %v3766_v33 = vpop.f32.mrb[46].mxu1  ;;  %v3765_v55 = vadd.f32 %v3764_v5, %v3170_v39  ;;  %v3712_v27 = vadd.f32 %v3711_v4, %v3162_v37 }
 0xde3   : > { %v3767_v54 = vadd.f32 %v3766_v33, %v3166_v9  ;;  %v3715_v10 = vpop.f32.mrb[39].mxu0  ;;  %v3768_v45 = vpop.f32.mrb[47].mxu1  ;;  %v3714_v35 = vadd.f32 %v3713_v44, %v3158_v36  ;;  %v3178_v9 = vrot.slane %v5702_v43, %v928_v49 }
 0xde4   : > { %v3769_v14 = vadd.f32 %v3768_v45, %v3170_v39  ;;  %v3716_v6 = vadd.f32 %v3715_v10, %v3162_v37 }
 0xde5   : > { %v6132_v63 = vpack.c.bf16 %v3767_v54, %v3763_v38  ;;  %v6971_v54 = vld [vmem:[%s7647_s27 + $0x18] sm:$0xff] }
 0xde6   : > { %v6148_v23 = vpack.c.bf16 %v3769_v14, %v3765_v55  ;;  %v6972_v14 = vld [vmem:[%s7647_s27 + $0x10] sm:$0xff] }
 0xde7   : > { %6133 = vmatprep.subr.bf16.mxu1 %v6132_v63 }
 0xde8   : > { %6135 = vmatpush3.bf16.xpose.msra.mxu1 %v6132_v63  ;;  %6149 = vmatprep.subr.bf16.mxu0 %v6148_v23 }
 0xde9   : > { %6151 = vmatpush3.bf16.xpose.msra.mxu0 %v6148_v23 }
 0xdef   : > { %6049 = vmatmul.mubr.f32.vlgmr.msra.gmra.mrb[48].mxu1 %v3704_v7 }
 0xdf0   : > { %6051 = vmatprep.mubr.f32.mxu1 %v3710_v25  ;;  %6077 = vmatmul.mubr.f32.vlgmr.msra.gmra.mrb[48].mxu0 %v3706_v12 }
 0xdf1   : > { %6079 = vmatprep.mubr.f32.mxu0 %v3712_v27 }
 0xdf3   : > { %6052 = vmatmul.mubr.f32.gmra.mrb[50].mxu1 %v3714_v35 }
 0xdf4   : > { %6080 = vmatmul.mubr.f32.gmra.mrb[50].mxu0 %v3716_v6 }
 0xe18   : > { %v3805_v53 = vpop.f32.mrb[40].mxu0 }
 0xe19   : > { %v3807_v58 = vpop.f32.mrb[41].mxu0  ;;  %v3806_v39 = vadd.f32 %v3805_v53, %v3174_v47 }
 0xe1a   : > { %v3809_v2 = vpop.f32.mrb[42].mxu0  ;;  %v3808_v62 = vadd.f32 %v3807_v58, %v3178_v9 }
 0xe1b   : > { %v3810_v40 = vadd.f32 %v3809_v2, %v3174_v47  ;;  %v3811_v11 = vpop.f32.mrb[43].mxu0 }
 0xe1c   : > { %v3812_v13 = vadd.f32 %v3811_v11, %v3178_v9 }
 0xe1d   : > { %v6136_v19 = vpack.c.bf16 %v3810_v40, %v3806_v39 }
 0xe1e   : > { %v8103_v36 = vpack.c.bf16 %v3812_v13, %v3808_v62 }
 0xe1f   : > { %6137 = vmatprep.subr.bf16.mxu1 %v6136_v19 }
 0xe20   : > { %v3815_v37 = vpop.f32.mrb[44].mxu0  ;;  %6139 = vmatpush3.bf16.msra.mxu1 %v6136_v19 }
 0xe21   : > { %v3817_v61 = vpop.f32.mrb[45].mxu0  ;;  %v3816_v0 = vadd.f32 %v3815_v37, %v3174_v47 }
 0xe22   : > { %v3818_v48 = vadd.f32 %v3817_v61, %v3178_v9  ;;  %v3819_v8 = vpop.f32.mrb[46].mxu0 }
 0xe23   : > { %v3820_v49 = vadd.f32 %v3819_v8, %v3174_v47  ;;  %v3821_v43 = vpop.f32.mrb[47].mxu0 }
 0xe24   : > { %v3822_v41 = vadd.f32 %v3821_v43, %v3178_v9 }
 0xe25   : > { %v6140_v50 = vpack.c.bf16 %v3820_v49, %v3816_v0 }
 0xe26   : > { %v8105_v15 = vpack.c.bf16 %v3822_v41, %v3818_v48 }
 0xe27   : > { %6141 = vmatprep.subr.bf16.mxu1 %v6140_v50 }
 0xe28   : > { %6143 = vmatpush3.bf16.msra.mxu1 %v6140_v50 }
 0xe29   : > { %6153 = vmatprep.subr.bf16.mxu1 %v8103_v36 }
 0xec2   : > { %v6050_v17 = vpop.f32.mrb[48].mxu1 }
 0xec3   : > { %v3896_v3 = vadd.f32 %v6969_v51, %v6050_v17  ;;  %v3890_v16 = vpop.f32.mrb[49].mxu1  ;;  %v6078_v57 = vpop.f32.mrb[48].mxu0 }
 0xec4   : > { %v3891_v4 = vadd.f32 %v6970_v60, %v3890_v16  ;;  %v4116_v5 = vpop.f32.mrb[49].mxu0  ;;  %v4122_v7 = vadd.f32 %v6969_v51, %v6078_v57 }
 0xec5   : > { %v3912_v44 = vsel %vm1660_vm0, %v3896_v3, -inf  ;;  %v4117_v25 = vadd.f32 %v6970_v60, %v4116_v5 }
 0xec6   : > { %3913 = vmax.xlane.f32.xlu1 %v3912_v44  ;;  %v6053_v33 = vpop.f32.mrb[50].mxu1  ;;  %v3909_v38 = vsel %vm1660_vm0, %v3891_v4, -inf  ;;  %v4138_v6 = vsel %vm1660_vm0, %v4122_v7, -inf }
 0xec7   : > { %v3906_v10 = vadd.f32 %v6971_v54, %v6053_v33  ;;  %3910 = vmax.xlane.f32.xlu0 %v3909_v38  ;;  %v3900_v45 = vpop.f32.mrb[51].mxu1  ;;  %v6081_v55 = vpop.f32.mrb[50].mxu0  ;;  %v4135_v53 = vsel %vm1660_vm0, %v4117_v25, -inf }
 0xec8   : > { %v3901_v63 = vadd.f32 %v6972_v14, %v3900_v45  ;;  %v4126_v23 = vpop.f32.mrb[51].mxu0  ;;  %v4132_v35 = vadd.f32 %v6971_v54, %v6081_v55 }
 0xec9   : > { %v3918_v12 = vsel %vm1660_vm0, %v3906_v10, -inf  ;;  %v4127_v47 = vadd.f32 %v6972_v14, %v4126_v23 }
 0xeca   : > { %3919 = vmax.xlane.f32.xlu1 %v3918_v12  ;;  %v3915_v27 = vsel %vm1660_vm0, %v3901_v63, -inf  ;;  %v4144_v9 = vsel %vm1660_vm0, %v4132_v35, -inf }
 0xecb   : > { %3916 = vmax.xlane.f32.xlu0 %v3915_v27  ;;  %v4141_v58 = vsel %vm1660_vm0, %v4127_v47, -inf }
 0xece   : > { %4139 = vmax.xlane.f32.xlu1 %v4138_v6 }
 0xecf   : > { %4136 = vmax.xlane.f32.xlu0 %v4135_v53  ;;  %v6731_v53 = vld [vmem:[#allocation10 + $0x104] ss:$8 sps:$4 sm:$0xff]  }
 0xed0   : > { %4484 = vmatprep.subr.bf16.mxu0 %v6731_v53 }
 0xed2   : > { %4145 = vmax.xlane.f32.xlu1 %v4144_v9  ;;  %v6734_v9 = vld [vmem:[#allocation10 + $0x114] ss:$8 sps:$4 sm:$0xff]  }
 0xed3   : > { %4142 = vmax.xlane.f32.xlu0 %v4141_v58  ;;  %v6732_v58 = vld [vmem:[#allocation10 + $0x110] ss:$8 sps:$4 sm:$0xff]  }
 0xf53   : > { %v3914_v2 = vpop.xlane.xlu1 %3913 }
 0xf54   : > { %v3922_v39 = vsub.f32 %v3896_v3, %v3914_v2  ;;  %v3911_v40 = vpop.xlane.xlu0 %3910  ;;  %v6737_v2 = vld [vmem:[#allocation10 + $0x124] ss:$8 sps:$4 sm:$0xff]  }
 0xf55   : > { %v3921_v11 = vsub.f32 %v3891_v4, %v3911_v40  ;;  %v6740_v40 = vld [vmem:[#allocation10 + $0x134] ss:$8 sps:$4 sm:$0xff]  }
 0xf56   : > { %v3927_v62 = vmul.f32 1.442695, %v3922_v39  ;;  %v6735_v39 = vld [vmem:[#allocation10 + $0x120] ss:$8 sps:$4 sm:$0xff]  }
 0xf57   : > { %v3925_v13 = vmul.f32 1.442695, %v3921_v11  ;;  %v3920_v19 = vpop.xlane.xlu1 %3919  ;;  %v6738_v11 = vld [vmem:[#allocation10 + $0x130] ss:$8 sps:$4 sm:$0xff]  }
 0xf58   : > { %6921 = vpow2.f32 %v3927_v62  ;;  %v3924_v37 = vsub.f32 %v3906_v10, %v3920_v19  ;;  %v3917_v61 = vpop.xlane.xlu0 %3916  ;;  %v6743_v62 = vld [vmem:[#allocation10 + $0x144] ss:$8 sps:$4 sm:$0xff]   ;;  %v6746_v19 = vld [vmem:[#allocation10 + $0x154] ss:$8 sps:$4 sm:$0xff]  }
 0xf59   : > { %6923 = vpow2.f32 %v3925_v13  ;;  %v3923_v48 = vsub.f32 %v3901_v63, %v3917_v61  ;;  %v6741_v13 = vld [vmem:[#allocation10 + $0x140] ss:$8 sps:$4 sm:$0xff]   ;;  %v6749_v61 = vld [vmem:[#allocation10 + $0x164] ss:$8 sps:$4 sm:$0xff]  }
 0xf5a   : > { %v3931_v8 = vmul.f32 1.442695, %v3924_v37  ;;  %v6744_v37 = vld [vmem:[#allocation10 + $0x150] ss:$8 sps:$4 sm:$0xff]  }
 0xf5b   : > { %v3929_v0 = vmul.f32 1.442695, %v3923_v48  ;;  %v4140_v49 = vpop.xlane.xlu1 %4139  ;;  %v6747_v48 = vld [vmem:[#allocation10 + $0x160] ss:$8 sps:$4 sm:$0xff]  }
 0xf5c   : > { %6925 = vpow2.f32 %v3931_v8  ;;  %v4148_v43 = vsub.f32 %v4122_v7, %v4140_v49  ;;  %v4137_v41 = vpop.xlane.xlu0 %4136  ;;  %v6752_v8 = vld [vmem:[#allocation10 + $0x174] ss:$8 sps:$4 sm:$0xff]   ;;  %v6755_v49 = vld [vmem:[#allocation10 + $0x184] ss:$8 sps:$4 sm:$0xff]  }
 0xf5d   : > { %6927 = vpow2.f32 %v3929_v0  ;;  %v4147_v50 = vsub.f32 %v4117_v25, %v4137_v41  ;;  %v6750_v0 = vld [vmem:[#allocation10 + $0x170] ss:$8 sps:$4 sm:$0xff]   ;;  %v6758_v41 = vld [vmem:[#allocation10 + $0x194] ss:$8 sps:$4 sm:$0xff]  }
 0xf5e   : > { %v4153_v17 = vmul.f32 1.442695, %v4148_v43  ;;  %v6753_v43 = vld [vmem:[#allocation10 + $0x180] ss:$8 sps:$4 sm:$0xff]  }
 0xf5f   : > { %v4151_v51 = vmul.f32 1.442695, %v4147_v50  ;;  %v4146_v3 = vpop.xlane.xlu1 %4145  ;;  %v6756_v50 = vld [vmem:[#allocation10 + $0x190] ss:$8 sps:$4 sm:$0xff]  }
 0xf60   : > { %6929 = vpow2.f32 %v4153_v17  ;;  %v4150_v16 = vsub.f32 %v4132_v35, %v4146_v3  ;;  %v4143_v57 = vpop.xlane.xlu0 %4142  ;;  %v6761_v17 = vld [vmem:[#allocation10 + $0x1a4] ss:$8 sps:$4 sm:$0xff]   ;;  %v6764_v3 = vld [vmem:[#allocation10 + $0x1b4] ss:$8 sps:$4 sm:$0xff]  }
 0xf61   : > { %6931 = vpow2.f32 %v4151_v51  ;;  %v4149_v60 = vsub.f32 %v4127_v47, %v4143_v57  ;;  %v6729_v47 = vld [vmem:[#allocation10 + $0x100] ss:$8 sps:$4 sm:$0xff]   ;;  %v6767_v57 = vld [vmem:[#allocation10 + $0x1c4] ss:$8 sps:$4 sm:$0xff]  }
 0xf62   : > { %v8120_v4 = vpop.eup %6921  ;;  %v4157_v5 = vmul.f32 1.442695, %v4150_v16  ;;  %4485 = vmatpush1.bf16.msra.mxu0 %v6729_v47  ;;  %v6759_v51 = vld [vmem:[#allocation10 + $0x1a0] ss:$8 sps:$4 sm:$0xff]   ;;  %v6762_v16 = vld [vmem:[#allocation10 + $0x1b0] ss:$8 sps:$4 sm:$0xff]  }
 0xf63   : > { %v8122_v44 = vpop.eup %6923  ;;  %v4155_v33 = vmul.f32 1.442695, %v4149_v60  ;;  %v3936_v38 = vsel %vm1660_vm0, %v8120_v4, 0.0  ;;  %4486 = vmatprep.subr.bf16.mxu0 %v6734_v9  ;;  %v6765_v60 = vld [vmem:[#allocation10 + $0x1c0] ss:$8 sps:$4 sm:$0xff]  }
 0xf64   : > { %6933 = vpow2.f32 %v4157_v5  ;;  %3937 = vadd.xlane.f32.xlu1 %v3936_v38  ;;  %v3933_v54 = vsel %vm1660_vm0, %v8122_v44, 0.0 }
 0xf65   : > { %6935 = vpow2.f32 %v4155_v33  ;;  %3934 = vadd.xlane.f32.xlu0 %v3933_v54 }
 0xf66   : > { %v8128_v10 = vpop.eup %6925  ;;  %4487 = vmatpush1.bf16.msra.mxu0 %v6732_v58 }
 0xf67   : > { %v8130_v45 = vpop.eup %6927  ;;  %v3942_v55 = vsel %vm1660_vm0, %v8128_v10, 0.0  ;;  %4488 = vmatprep.subr.bf16.mxu0 %v6737_v2 }
 0xf68   : > { %3943 = vadd.xlane.f32.xlu1 %v3942_v55  ;;  %v3939_v14 = vsel %vm1660_vm0, %v8130_v45, 0.0 }
 0xf69   : > { %3940 = vadd.xlane.f32.xlu0 %v3939_v14 }
 0xf6a   : > { %v8136_v63 = vpop.eup %6929  ;;  %4489 = vmatpush1.bf16.msra.mxu0 %v6735_v39 }
 0xf6b   : > { %v8138_v23 = vpop.eup %6931  ;;  %v4162_v7 = vsel %vm1660_vm0, %v8136_v63, 0.0  ;;  %4490 = vmatprep.subr.bf16.mxu0 %v6740_v40 }
 0xf6c   : > { %4163 = vadd.xlane.f32.xlu1 %v4162_v7  ;;  %v4159_v12 = vsel %vm1660_vm0, %v8138_v23, 0.0 }
 0xf6d   : > { %4160 = vadd.xlane.f32.xlu0 %v4159_v12 }
 0xf6e   : > { %v8144_v25 = vpop.eup %6933  ;;  %4491 = vmatpush1.bf16.msra.mxu0 %v6738_v11 }
 0xf6f   : > { %v8146_v27 = vpop.eup %6935  ;;  %v4168_v35 = vsel %vm1660_vm0, %v8144_v25, 0.0  ;;  %4492 = vmatprep.subr.bf16.mxu0 %v6743_v62 }
 0xf70   : > { %4169 = vadd.xlane.f32.xlu1 %v4168_v35  ;;  %v4165_v6 = vsel %vm1660_vm0, %v8146_v27, 0.0 }
 0xf71   : > { %4166 = vadd.xlane.f32.xlu0 %v4165_v6 }
 0xf72   : > { %4493 = vmatpush1.bf16.msra.mxu0 %v6741_v13  ;;  %v6770_v13 = vld [vmem:[#allocation10 + $0x1d4] ss:$8 sps:$4 sm:$0xff]  }
 0xf73   : > { %4494 = vmatprep.subr.bf16.mxu0 %v6746_v19  ;;  %v6776_v19 = vld [vmem:[#allocation10 + $0x1f4] ss:$8 sps:$4 sm:$0xff]  }
 0xf76   : > { %4495 = vmatpush1.bf16.msra.mxu0 %v6744_v37  ;;  %v6774_v37 = vld [vmem:[#allocation10 + $0x1f0] ss:$8 sps:$4 sm:$0xff]  }
 0xf77   : > { %4496 = vmatprep.subr.bf16.mxu0 %v6749_v61 }
 0xf7a   : > { %4497 = vmatpush1.bf16.msra.mxu0 %v6747_v48 }
 0xf7b   : > { %4498 = vmatprep.subr.bf16.mxu0 %v6752_v8 }
 0xf7e   : > { %4499 = vmatpush1.bf16.msra.mxu0 %v6750_v0 }
 0xf7f   : > { %4500 = vmatprep.subr.bf16.mxu0 %v6755_v49 }
 0xf82   : > { %4501 = vmatpush1.bf16.msra.mxu0 %v6753_v43 }
 0xf83   : > { %4502 = vmatprep.subr.bf16.mxu0 %v6758_v41 }
 0xf86   : > { %4503 = vmatpush1.bf16.msra.mxu0 %v6756_v50 }
 0xf87   : > { %4504 = vmatprep.subr.bf16.mxu0 %v6761_v17 }
 0xf8a   : > { %4505 = vmatpush1.bf16.msra.mxu0 %v6759_v51 }
 0xf8b   : > { %4506 = vmatprep.subr.bf16.mxu0 %v6764_v3  ;;  %v5703_v3 = vld [vmem:[%s8394_s6 + $0x2] sm:$0x3] }
 0xf8e   : > { %4507 = vmatpush1.bf16.msra.mxu0 %v6762_v16  ;;  %v4317_v16 = vrot.slane %v5703_v3, %v7706_v1 }
 0xf8f   : > { %4508 = vmatprep.subr.bf16.mxu0 %v6767_v57  ;;  %v4321_v57 = vrot.slane %v5703_v3, %v7773_v18 }
 0xf92   : > { %4509 = vmatpush1.bf16.msra.mxu0 %v6765_v60 }
 0xf93   : > { %4510 = vmatprep.subr.bf16.mxu0 %v6770_v13  ;;  %v6782_v13 = vld [vmem:[#allocation11 + $0x114] ss:$8 sps:$4 sm:$0xff]  }
 0xff1   : > { %v3938_v5 = vpop.xlane.xlu1 %3937 }
 0xff2   : > { %6937 = vrcp.f32 %v3938_v5  ;;  %v3935_v33 = vpop.xlane.xlu0 %3934 }
 0xff3   : > { %6939 = vrcp.f32 %v3935_v33 }
 0xff5   : > { %v3944_v38 = vpop.xlane.xlu1 %3943 }
 0xff6   : > { %6941 = vrcp.f32 %v3944_v38  ;;  %v3941_v54 = vpop.xlane.xlu0 %3940 }
 0xff7   : > { %6943 = vrcp.f32 %v3941_v54 }
 0xff9   : > { %v4164_v55 = vpop.xlane.xlu1 %4163 }
 0xffa   : > { %6945 = vrcp.f32 %v4164_v55  ;;  %v4161_v14 = vpop.xlane.xlu0 %4160 }
 0xffb   : > { %6947 = vrcp.f32 %v4161_v14 }
 0xffc   : > { %v6938_v7 = vpop.eup %6937 }
 0xffd   : > { %v6940_v12 = vpop.eup %6939  ;;  %v4170_v35 = vpop.xlane.xlu1 %4169  ;;  %v3950_v53 = vmul.f32 %v6938_v7, %v8120_v4 }
 0xffe   : > { %6949 = vrcp.f32 %v4170_v35  ;;  %v4167_v6 = vpop.xlane.xlu0 %4166  ;;  %v3949_v47 = vmul.f32 %v6940_v12, %v8122_v44 }
 0xfff   : > { %6951 = vrcp.f32 %v4167_v6 }
0x1000   : > { %v6942_v9 = vpop.eup %6941  ;;  %6062 = vmatprep.mubr.msk.f32.mxu1 %vm1660_vm0, %v3949_v47 }
0x1001   : > { %v6944_v58 = vpop.eup %6943  ;;  %6063 = vmatmul.mubr.msk.f32.vlgmr.msra.gmra.mrb[52].mxu1 %vm1660_vm0, %v3950_v53  ;;  %v3952_v39 = vmul.f32 %v6942_v9, %v8128_v10 }
0x1002   : > { %6155 = vmatpush3.bf16.msra.mxu1 %v8103_v36  ;;  %v3951_v2 = vmul.f32 %v6944_v58, %v8130_v45 }
0x1003   : > { %6157 = vmatprep.subr.bf16.mxu1 %v8105_v15 }
0x1004   : > { %v6946_v40 = vpop.eup %6945  ;;  %6065 = vmatprep.mubr.msk.f32.mxu1 %vm1660_vm0, %v3951_v2 }
0x1005   : > { %v6948_v44 = vpop.eup %6947  ;;  %6066 = vmatmul.mubr.msk.f32.gmra.mrb[54].mxu1 %vm1660_vm0, %v3952_v39  ;;  %v4176_v11 = vmul.f32 %v6946_v40, %v8136_v63  ;;  %v6771_v63 = vld [vmem:[#allocation10 + $0x1e0] ss:$8 sps:$4 sm:$0xff]  }
0x1006   : > { %6159 = vmatpush3.bf16.msra.mxu1 %v8105_v15  ;;  %v4175_v4 = vmul.f32 %v6948_v44, %v8138_v23  ;;  %v6768_v15 = vld [vmem:[#allocation10 + $0x1d0] ss:$8 sps:$4 sm:$0xff]   ;;  %v6773_v23 = vld [vmem:[#allocation10 + $0x1e4] ss:$8 sps:$4 sm:$0xff]  }
0x1007   : > { %4511 = vmatpush1.bf16.msra.mxu0 %v6768_v15  ;;  %v6783_v15 = vld [vmem:[#allocation11 + $0x120] ss:$8 sps:$4 sm:$0xff]  }
0x1008   : > { %v6950_v62 = vpop.eup %6949  ;;  %6090 = vmatprep.mubr.msk.f32.mxu1 %vm1660_vm0, %v4175_v4  ;;  %4512 = vmatprep.subr.bf16.mxu0 %v6773_v23  ;;  %v6786_v23 = vld [vmem:[#allocation11 + $0x130] ss:$8 sps:$4 sm:$0xff]  }
0x1009   : > { %v6952_v36 = vpop.eup %6951  ;;  %6091 = vmatmul.mubr.msk.f32.vlgmr.msra.gmra.mrb[56].mxu1 %vm1660_vm0, %v4176_v11  ;;  %v4178_v45 = vmul.f32 %v6950_v62, %v8144_v25 }
0x100a   : > { %v4177_v10 = vmul.f32 %v6952_v36, %v8146_v27 }
0x100b   : > { %4513 = vmatpush1.bf16.msra.mxu0 %v6771_v63  ;;  %v6791_v63 = vld [vmem:[#allocation11 + $0x144] ss:$8 sps:$4 sm:$0xff]  }
0x100c   : > { %6093 = vmatprep.mubr.msk.f32.mxu1 %vm1660_vm0, %v4177_v10  ;;  %4514 = vmatprep.subr.bf16.mxu0 %v6776_v19  ;;  %v6777_v10 = vld [vmem:[#allocation11 + $0x100] ss:$8 sps:$4 sm:$0xff]  }
0x100d   : > { %6094 = vmatmul.mubr.msk.f32.gmra.mrb[58].mxu1 %vm1660_vm0, %v4178_v45  ;;  %v6779_v45 = vld [vmem:[#allocation11 + $0x104] ss:$8 sps:$4 sm:$0xff]   ;;  %v6789_v19 = vld [vmem:[#allocation11 + $0x140] ss:$8 sps:$4 sm:$0xff]  }
0x100e   : > { %4855 = vmatprep.subr.bf16.mxu1 %v6779_v45  ;;  %v6816_v45 = vld [vmem:[#allocation11 + $0x1d0] ss:$8 sps:$4 sm:$0xff]  }
0x100f   : > { %4515 = vmatpush1.bf16.msra.mxu0 %v6774_v37  ;;  %4856 = vmatpush1.bf16.msra.mxu1 %v6777_v10  ;;  %v6794_v37 = vld [vmem:[#allocation11 + $0x154] ss:$8 sps:$4 sm:$0xff]  }
0x1010   : > { %4857 = vmatprep.subr.bf16.mxu1 %v6782_v13  ;;  %v6818_v10 = vld [vmem:[#allocation11 + $0x1d4] ss:$8 sps:$4 sm:$0xff]   ;;  %v6821_v13 = vld [vmem:[#allocation11 + $0x1e4] ss:$8 sps:$4 sm:$0xff]  }
0x10d4   : > { %v6064_v61 = vpop.f32.mrb[52].mxu1 }
0x10d5   : > { %v4031_v27 = vpop.f32.mrb[53].mxu1 }
0x10d6   : > { %v4276_v48 = vpack.c.bf16 %v6064_v61, %v4031_v27  ;;  %v6792_v61 = vld [vmem:[#allocation11 + $0x150] ss:$8 sps:$4 sm:$0xff]   ;;  %v6797_v27 = vld [vmem:[#allocation11 + $0x164] ss:$8 sps:$4 sm:$0xff]  }
0x10d8   : > { %v6067_v25 = vpop.f32.mrb[54].mxu1 }
0x10d9   : > { %v4041_v8 = vpop.f32.mrb[55].mxu1 }
0x10da   : > { %v4278_v0 = vpack.c.bf16 %v6067_v25, %v4041_v8  ;;  %v6800_v25 = vld [vmem:[#allocation11 + $0x174] ss:$8 sps:$4 sm:$0xff]   ;;  %v6798_v8 = vld [vmem:[#allocation11 + $0x170] ss:$8 sps:$4 sm:$0xff]  }
0x10dc   : > { %v6092_v49 = vpop.f32.mrb[56].mxu1 }
0x10dd   : > { %v4257_v43 = vpop.f32.mrb[57].mxu1 }
0x10de   : > { %v4277_v41 = vpack.c.bf16 %v6092_v49, %v4257_v43  ;;  %v6801_v49 = vld [vmem:[#allocation11 + $0x180] ss:$8 sps:$4 sm:$0xff]   ;;  %v6806_v43 = vld [vmem:[#allocation11 + $0x194] ss:$8 sps:$4 sm:$0xff]  }
0x10e0   : > { %v6095_v50 = vpop.f32.mrb[58].mxu1  ;;  %4516 = vmatprep.mubr.bf16.mxu0 %v4277_v41  ;;  %v6804_v41 = vld [vmem:[#allocation11 + $0x190] ss:$8 sps:$4 sm:$0xff]  }
0x10e1   : > { %v4267_v17 = vpop.f32.mrb[59].mxu1  ;;  %4517 = vmatmul.mubr.bf16.vlgmr.msra.gmra.mrb[52].mxu0 %v4276_v48  ;;  %v6795_v48 = vld [vmem:[#allocation11 + $0x160] ss:$8 sps:$4 sm:$0xff]  }
0x10e2   : > { %v4279_v51 = vpack.c.bf16 %v6095_v50, %v4267_v17 }
0x10e4   : > { %4526 = vmatprep.mubr.bf16.mxu0 %v4279_v51 }
0x10e9   : > { %4527 = vmatmul.mubr.bf16.gmra.mrb[56].mxu0 %v4278_v0  ;;  %v6803_v0 = vld [vmem:[#allocation11 + $0x184] ss:$8 sps:$4 sm:$0xff]  }
0x11b4   : > { %v4518_v60 = vpop.f32.mrb[52].mxu0 }
0x11b5   : > { %v4519_v5 = vadd.f32 %v4518_v60, %v4317_v16  ;;  %v4520_v33 = vpop.f32.mrb[53].mxu0 }
0x11b6   : > { %v4521_v38 = vadd.f32 %v4520_v33, %v4321_v57  ;;  %v4522_v54 = vpop.f32.mrb[54].mxu0 }
0x11b7   : > { %v8177_v55 = vadd.f32 %v4519_v5, %v8061_v26  ;;  %v4523_v14 = vadd.f32 %v4522_v54, %v4317_v16  ;;  %v4524_v7 = vpop.f32.mrb[55].mxu0 }
0x11b8   : > { %v8180_v12 = vadd.f32 %v4521_v38, %v8057_v42  ;;  %v4525_v35 = vadd.f32 %v4524_v7, %v4321_v57 }
0x11b9   : > { %v8183_v6 = vadd.f32 %v4523_v14, %v8063_v56 }
0x11ba   : > { %v8186_v47 = vadd.f32 %v4525_v35, %v8059_v29  ;;  %v4545_v53 = vadd.f32 %v8180_v12, %v8177_v55 }
0x11bc   : > { %4546 = vadd.xlane.f32.xlu0 %v4545_v53  ;;  %v4528_v9 = vpop.f32.mrb[56].mxu0  ;;  %v4548_v26 = vadd.f32 %v8186_v47, %v8183_v6 }
0x11bd   : > { %v4529_v58 = vadd.f32 %v4528_v9, %v4317_v16  ;;  %v4530_v2 = vpop.f32.mrb[57].mxu0 }
0x11be   : > { %v4531_v39 = vadd.f32 %v4530_v2, %v4321_v57  ;;  %4549 = vadd.xlane.f32.xlu1 %v4548_v26  ;;  %v4532_v42 = vpop.f32.mrb[58].mxu0 }
0x11bf   : > { %v8193_v40 = vadd.f32 %v4529_v58, %v8081_v59  ;;  %v4533_v56 = vadd.f32 %v4532_v42, %v4317_v16  ;;  %v4534_v44 = vpop.f32.mrb[59].mxu0 }
0x11c0   : > { %v8196_v29 = vadd.f32 %v4531_v39, %v8077_v31  ;;  %v4535_v4 = vadd.f32 %v4534_v44, %v4321_v57  ;;  %v6780_v31 = vld [vmem:[#allocation11 + $0x110] ss:$8 sps:$4 sm:$0xff]  }
0x11c1   : > { %v8199_v11 = vadd.f32 %v4533_v56, %v8083_v52  ;;  %v6785_v52 = vld [vmem:[#allocation11 + $0x124] ss:$8 sps:$4 sm:$0xff]   ;;  %4858 = vmatpush1.bf16.msra.mxu1 %v6780_v31  ;;  %v6819_v31 = vld [vmem:[#allocation11 + $0x1e0] ss:$8 sps:$4 sm:$0xff]  }
0x11c2   : > { %v8202_v62 = vadd.f32 %v4535_v4, %v8079_v46  ;;  %v4551_v36 = vadd.f32 %v8196_v29, %v8193_v40  ;;  %4859 = vmatprep.subr.bf16.mxu1 %v6785_v52  ;;  %v6788_v46 = vld [vmem:[#allocation11 + $0x134] ss:$8 sps:$4 sm:$0xff]   ;;  %v6807_v4 = vld [vmem:[#allocation11 + $0x1a0] ss:$8 sps:$4 sm:$0xff]  }
0x11c3   : > { %v6824_v52 = vld [vmem:[#allocation11 + $0x1f4] ss:$8 sps:$4 sm:$0xff]  }
0x11c4   : > { %4552 = vadd.xlane.f32.xlu0 %v4551_v36  ;;  %v4554_v59 = vadd.f32 %v8202_v62, %v8199_v11  ;;  %v6815_v36 = vld [vmem:[#allocation11 + $0x1c4] ss:$8 sps:$4 sm:$0xff]  }
0x11c5   : > { %4860 = vmatpush1.bf16.msra.mxu1 %v6783_v15  ;;  %v6822_v15 = vld [vmem:[#allocation11 + $0x1f0] ss:$8 sps:$4 sm:$0xff]  }
0x11c6   : > { %4555 = vadd.xlane.f32.xlu1 %v4554_v59  ;;  %4861 = vmatprep.subr.bf16.mxu1 %v6788_v46  ;;  %v6813_v59 = vld [vmem:[#allocation11 + $0x1c0] ss:$8 sps:$4 sm:$0xff]  }
0x11c7   : > { %v6825_v46 = vld [vmem:[#allocation13 + $0x100] ss:$8 sps:$4 sm:$0xff]  }
0x11c9   : > { %4862 = vmatpush1.bf16.msra.mxu1 %v6786_v23  ;;  %v6827_v23 = vld [vmem:[#allocation13 + $0x104] ss:$8 sps:$4 sm:$0xff]  }
0x11ca   : > { %4863 = vmatprep.subr.bf16.mxu1 %v6791_v63  ;;  %v6830_v63 = vld [vmem:[#allocation13 + $0x114] ss:$8 sps:$4 sm:$0xff]   ;;  %5124 = vmatprep.subr.bf16.mxu0 %v6827_v23 }
0x11cb   : > { %5125 = vmatpush1.bf16.msra.mxu0 %v6825_v46 }
0x11cc   : > { %5126 = vmatprep.subr.bf16.mxu0 %v6830_v63 }
0x11cd   : > { %4864 = vmatpush1.bf16.msra.mxu1 %v6789_v19  ;;  %v6828_v19 = vld [vmem:[#allocation13 + $0x110] ss:$8 sps:$4 sm:$0xff]  }
0x11ce   : > { %4865 = vmatprep.subr.bf16.mxu1 %v6794_v37  ;;  %v6833_v37 = vld [vmem:[#allocation13 + $0x124] ss:$8 sps:$4 sm:$0xff]  }
0x11cf   : > { %5127 = vmatpush1.bf16.msra.mxu0 %v6828_v19 }
0x11d0   : > { %5128 = vmatprep.subr.bf16.mxu0 %v6833_v37 }
0x11d1   : > { %4866 = vmatpush1.bf16.msra.mxu1 %v6792_v61  ;;  %v6831_v61 = vld [vmem:[#allocation13 + $0x120] ss:$8 sps:$4 sm:$0xff]  }
0x11d2   : > { %4867 = vmatprep.subr.bf16.mxu1 %v6797_v27  ;;  %v6836_v27 = vld [vmem:[#allocation13 + $0x134] ss:$8 sps:$4 sm:$0xff]  }
0x11d3   : > { %5129 = vmatpush1.bf16.msra.mxu0 %v6831_v61 }
0x11d4   : > { %5130 = vmatprep.subr.bf16.mxu0 %v6836_v27 }
0x11d5   : > { %4868 = vmatpush1.bf16.msra.mxu1 %v6795_v48  ;;  %v6834_v48 = vld [vmem:[#allocation13 + $0x130] ss:$8 sps:$4 sm:$0xff]  }
0x11d6   : > { %4869 = vmatprep.subr.bf16.mxu1 %v6800_v25  ;;  %v6839_v25 = vld [vmem:[#allocation13 + $0x144] ss:$8 sps:$4 sm:$0xff]  }
0x11d7   : > { %5131 = vmatpush1.bf16.msra.mxu0 %v6834_v48 }
0x11d8   : > { %5132 = vmatprep.subr.bf16.mxu0 %v6839_v25 }
0x11d9   : > { %4870 = vmatpush1.bf16.msra.mxu1 %v6798_v8  ;;  %v6837_v8 = vld [vmem:[#allocation13 + $0x140] ss:$8 sps:$4 sm:$0xff]  }
0x11da   : > { %4871 = vmatprep.subr.bf16.mxu1 %v6803_v0  ;;  %v6842_v0 = vld [vmem:[#allocation13 + $0x154] ss:$8 sps:$4 sm:$0xff]  }
0x11db   : > { %5133 = vmatpush1.bf16.msra.mxu0 %v6837_v8 }
0x11dc   : > { %5134 = vmatprep.subr.bf16.mxu0 %v6842_v0 }
0x11dd   : > { %4872 = vmatpush1.bf16.msra.mxu1 %v6801_v49  ;;  %v6840_v49 = vld [vmem:[#allocation13 + $0x150] ss:$8 sps:$4 sm:$0xff]  }
0x11de   : > { %4873 = vmatprep.subr.bf16.mxu1 %v6806_v43  ;;  %v6845_v43 = vld [vmem:[#allocation13 + $0x164] ss:$8 sps:$4 sm:$0xff]  }
0x11df   : > { %5135 = vmatpush1.bf16.msra.mxu0 %v6840_v49 }
0x11e0   : > { %5136 = vmatprep.subr.bf16.mxu0 %v6845_v43 }
0x11e1   : > { %4874 = vmatpush1.bf16.msra.mxu1 %v6804_v41  ;;  %v6843_v41 = vld [vmem:[#allocation13 + $0x160] ss:$8 sps:$4 sm:$0xff]  }
0x11e3   : > { %5137 = vmatpush1.bf16.msra.mxu0 %v6843_v41 }
0x1249   : > { %v4547_v50 = vpop.xlane.xlu0 %4546 }
0x124a   : > { %v4557_v17 = vmul.f32 0.00390625, %v4547_v50  ;;  %v6848_v50 = vld [vmem:[#allocation13 + $0x174] ss:$8 sps:$4 sm:$0xff]  }
0x124b   : > { %v4550_v51 = vpop.xlane.xlu1 %4549  ;;  %5138 = vmatprep.subr.bf16.mxu0 %v6848_v50 }
0x124c   : > { %v8209_v3 = vsub.f32 %v8177_v55, %v4557_v17  ;;  %v8212_v16 = vsub.f32 %v8180_v12, %v4557_v17  ;;  %v4558_v57 = vmul.f32 0.00390625, %v4550_v51  ;;  %v6846_v17 = vld [vmem:[#allocation13 + $0x170] ss:$8 sps:$4 sm:$0xff]   ;;  %v6851_v51 = vld [vmem:[#allocation13 + $0x184] ss:$8 sps:$4 sm:$0xff]  }
0x124d   : > { %5139 = vmatpush1.bf16.msra.mxu0 %v6846_v17 }
0x124e   : > { %v8215_v60 = vsub.f32 %v8183_v6, %v4558_v57  ;;  %v8218_v5 = vsub.f32 %v8186_v47, %v4558_v57  ;;  %v4569_v33 = vmul.f32 %v8209_v3, %v8209_v3  ;;  %v4570_v38 = vmul.f32 %v8212_v16, %v8212_v16  ;;  %v6849_v57 = vld [vmem:[#allocation13 + $0x180] ss:$8 sps:$4 sm:$0xff]   ;;  %5140 = vmatprep.subr.bf16.mxu0 %v6851_v51 }
0x1250   : > { %v4577_v54 = vadd.f32 %v4570_v38, %v4569_v33  ;;  %v4571_v55 = vmul.f32 %v8215_v60, %v8215_v60  ;;  %v4572_v14 = vmul.f32 %v8218_v5, %v8218_v5  ;;  %v6854_v33 = vld [vmem:[#allocation13 + $0x194] ss:$8 sps:$4 sm:$0xff]   ;;  %v6852_v38 = vld [vmem:[#allocation13 + $0x190] ss:$8 sps:$4 sm:$0xff]  }
0x1251   : > { %v4553_v7 = vpop.xlane.xlu0 %4552  ;;  %5141 = vmatpush1.bf16.msra.mxu0 %v6849_v57 }
0x1252   : > { %v4559_v12 = vmul.f32 0.00390625, %v4553_v7  ;;  %4578 = vadd.xlane.f32.xlu0 %v4577_v54  ;;  %v4580_v35 = vadd.f32 %v4572_v14, %v4571_v55  ;;  %5142 = vmatprep.subr.bf16.mxu0 %v6854_v33  ;;  %v6857_v54 = vld [vmem:[#allocation13 + $0x1a4] ss:$8 sps:$4 sm:$0xff]   ;;  %v6855_v55 = vld [vmem:[#allocation13 + $0x1a0] ss:$8 sps:$4 sm:$0xff]  }
0x1253   : > { %v4556_v6 = vpop.xlane.xlu1 %4555  ;;  %v6860_v14 = vld [vmem:[#allocation13 + $0x1b4] ss:$8 sps:$4 sm:$0xff]   ;;  %v6858_v7 = vld [vmem:[#allocation13 + $0x1b0] ss:$8 sps:$4 sm:$0xff]  }
0x1254   : > { %v8229_v47 = vsub.f32 %v8193_v40, %v4559_v12  ;;  %v8232_v53 = vsub.f32 %v8196_v29, %v4559_v12  ;;  %v4560_v9 = vmul.f32 0.00390625, %v4556_v6  ;;  %4581 = vadd.xlane.f32.xlu1 %v4580_v35  ;;  %v6809_v29 = vld [vmem:[#allocation11 + $0x1a4] ss:$8 sps:$4 sm:$0xff]   ;;  %v6861_v35 = vld [vmem:[#allocation13 + $0x1c0] ss:$8 sps:$4 sm:$0xff]  }
0x1255   : > { %4875 = vmatprep.subr.bf16.mxu1 %v6809_v29  ;;  %5143 = vmatpush1.bf16.msra.mxu0 %v6852_v38  ;;  %v6863_v12 = vld [vmem:[#allocation13 + $0x1c4] ss:$8 sps:$4 sm:$0xff]   ;;  %v6866_v6 = vld [vmem:[#allocation13 + $0x1d4] ss:$8 sps:$4 sm:$0xff]  }
0x1256   : > { %v8235_v26 = vsub.f32 %v8199_v11, %v4560_v9  ;;  %v8238_v58 = vsub.f32 %v8202_v62, %v4560_v9  ;;  %v4573_v2 = vmul.f32 %v8229_v47, %v8229_v47  ;;  %v4574_v39 = vmul.f32 %v8232_v53, %v8232_v53  ;;  %4876 = vmatpush1.bf16.msra.mxu1 %v6807_v4  ;;  %v6812_v11 = vld [vmem:[#allocation11 + $0x1b4] ss:$8 sps:$4 sm:$0xff]   ;;  %v6810_v62 = vld [vmem:[#allocation11 + $0x1b0] ss:$8 sps:$4 sm:$0xff]  }
0x1257   : > { %4877 = vmatprep.subr.bf16.mxu1 %v6812_v11  ;;  %5144 = vmatprep.subr.bf16.mxu0 %v6857_v54  ;;  %v6864_v9 = vld [vmem:[#allocation13 + $0x1d0] ss:$8 sps:$4 sm:$0xff]  }
0x1258   : > { %v4583_v42 = vadd.f32 %v4574_v39, %v4573_v2  ;;  %v4575_v40 = vmul.f32 %v8235_v26, %v8235_v26  ;;  %v4576_v56 = vmul.f32 %v8238_v58, %v8238_v58 }
0x1259   : > { %5145 = vmatpush1.bf16.msra.mxu0 %v6855_v55 }
0x125a   : > { %4584 = vadd.xlane.f32.xlu0 %v4583_v42  ;;  %v4586_v44 = vadd.f32 %v4576_v56, %v4575_v40  ;;  %4878 = vmatpush1.bf16.msra.mxu1 %v6810_v62  ;;  %v5704_v62 = vld [vmem:[%s8455_s12 + $0x2] sm:$0x3] }
0x125b   : > { %4879 = vmatprep.subr.bf16.mxu1 %v6815_v36  ;;  %5146 = vmatprep.subr.bf16.mxu0 %v6860_v14 }
0x125c   : > { %4587 = vadd.xlane.f32.xlu1 %v4586_v44 }
0x125d   : > { %5147 = vmatpush1.bf16.msra.mxu0 %v6858_v7 }
0x125e   : > { %4880 = vmatpush1.bf16.msra.mxu1 %v6813_v59  ;;  %5148 = vmatprep.subr.bf16.mxu0 %v6863_v12 }
0x125f   : > { %4881 = vmatprep.subr.bf16.mxu1 %v6818_v10 }
0x1261   : > { %5149 = vmatpush1.bf16.msra.mxu0 %v6861_v35  ;;  %v6867_v35 = vld [vmem:[#allocation13 + $0x1e0] ss:$8 sps:$4 sm:$0xff]  }
0x1262   : > { %4882 = vmatpush1.bf16.msra.mxu1 %v6816_v45  ;;  %5150 = vmatprep.subr.bf16.mxu0 %v6866_v6  ;;  %v4613_v45 = vrot.slane %v5704_v62, %v7706_v1  ;;  %v6872_v6 = vld [vmem:[#allocation13 + $0x1f4] ss:$8 sps:$4 sm:$0xff]  }
0x1263   : > { %4883 = vmatprep.subr.bf16.mxu1 %v6821_v13  ;;  %v5705_v13 = vld [vmem:[%s8456_s8 + $0x2] sm:$0x3] }
0x1264   : > { %v4632_v63 = vrot.slane %v5705_v13, %v7706_v1  ;;  %v4636_v19 = vrot.slane %v5705_v13, %v7773_v18 }
0x1265   : > { %5151 = vmatpush1.bf16.msra.mxu0 %v6864_v9  ;;  %v6870_v9 = vld [vmem:[#allocation13 + $0x1f0] ss:$8 sps:$4 sm:$0xff]  }
0x1266   : > { %4884 = vmatpush1.bf16.msra.mxu1 %v6819_v31  ;;  %v4617_v31 = vrot.slane %v5704_v62, %v7773_v18 }
0x1267   : > { %4885 = vmatprep.subr.bf16.mxu1 %v6824_v52 }
0x126a   : > { %4886 = vmatpush1.bf16.msra.mxu1 %v6822_v15 }
0x12df   : > { %v4579_v2 = vpop.xlane.xlu0 %4578 }
0x12e0   : > { %v4589_v39 = vmul.f32 0.00390625, %v4579_v2  ;;  %v5706_v2 = vld [vmem:[%s8457_s14 + $0x2] sm:$0x3] }
0x12e1   : > { %v4582_v42 = vpop.xlane.xlu1 %4581 }
0x12e2   : > { %v4593_v40 = vadd.f32 1e-05, %v4589_v39  ;;  %v4590_v56 = vmul.f32 0.00390625, %v4582_v42  ;;  %v4688_v39 = vrot.slane %v5706_v2, %v7706_v1  ;;  %v4692_v42 = vrot.slane %v5706_v2, %v7773_v18 }
0x12e4   : > { %6953 = vrsqrt.f32 %v4593_v40  ;;  %v4594_v44 = vadd.f32 1e-05, %v4590_v56 }
0x12e6   : > { %6955 = vrsqrt.f32 %v4594_v44 }
0x12e7   : > { %v4585_v29 = vpop.xlane.xlu0 %4584 }
0x12e8   : > { %v4591_v4 = vmul.f32 0.00390625, %v4585_v29 }
0x12e9   : > { %v4588_v11 = vpop.xlane.xlu1 %4587 }
0x12ea   : > { %v4595_v36 = vadd.f32 1e-05, %v4591_v4  ;;  %v4592_v59 = vmul.f32 0.00390625, %v4588_v11 }
0x12ec   : > { %6957 = vrsqrt.f32 %v4595_v36  ;;  %v4596_v10 = vadd.f32 1e-05, %v4592_v59 }
0x12ee   : > { %v6954_v52 = vpop.eup %6953  ;;  %6959 = vrsqrt.f32 %v4596_v10 }
0x12ef   : > { %v4601_v15 = vmul.f32 %v6954_v52, %v8209_v3  ;;  %v4602_v46 = vmul.f32 %v6954_v52, %v8212_v16 }
0x12f0   : > { %v6956_v23 = vpop.eup %6955 }
0x12f1   : > { %v4620_v37 = vmul.f32 %v4613_v45, %v4601_v15  ;;  %v4603_v61 = vmul.f32 %v6956_v23, %v8215_v60  ;;  %v4604_v27 = vmul.f32 %v6956_v23, %v8218_v5  ;;  %v4621_v48 = vmul.f32 %v4617_v31, %v4602_v46 }
0x12f3   : > { %v4622_v25 = vmul.f32 %v4613_v45, %v4603_v61  ;;  %v4623_v8 = vmul.f32 %v4617_v31, %v4604_v27  ;;  %v8262_v0 = vadd.f32 %v4636_v19, %v4621_v48  ;;  %v8266_v3 = vadd.f32 %v4632_v63, %v4620_v37 }
0x12f5   : > { %v8264_v49 = vadd.f32 %v4636_v19, %v4623_v8  ;;  %v8268_v16 = vadd.f32 %v4632_v63, %v4622_v25 }
0x12f6   : > { %v6958_v43 = vpop.eup %6957 }
0x12f7   : > { %v4648_v41 = vpack.c.bf16 %v8264_v49, %v8262_v0  ;;  %v4647_v60 = vpack.c.bf16 %v8268_v16, %v8266_v3  ;;  %v4606_v5 = vmul.f32 %v6958_v43, %v8232_v53  ;;  %v4605_v50 = vmul.f32 %v6958_v43, %v8229_v47 }
0x12f8   : > { %v6960_v17 = vpop.eup %6959 }
0x12f9   : > { %4887 = vmatprep.mubr.bf16.mxu1 %v4648_v41  ;;  %v4608_v51 = vmul.f32 %v6960_v17, %v8238_v58  ;;  %v4625_v57 = vmul.f32 %v4617_v31, %v4606_v5  ;;  %v4607_v33 = vmul.f32 %v6960_v17, %v8235_v26  ;;  %v4624_v38 = vmul.f32 %v4613_v45, %v4605_v50  ;;  %v6869_v26 = vld [vmem:[#allocation13 + $0x1e4] ss:$8 sps:$4 sm:$0xff]   ;;  %v5707_v5 = vld [vmem:[%s8458_s9 + $0x2] sm:$0x3] }
0x12fa   : > { %4888 = vmatmul.mubr.bf16.vlgmr.msra.gmra.mrb[60].mxu1 %v4647_v60  ;;  %5152 = vmatprep.subr.bf16.mxu0 %v6869_v26  ;;  %v4957_v50 = vrot.slane %v5707_v5, %v7706_v1  ;;  %v4961_v17 = vrot.slane %v5707_v5, %v7773_v18 }
0x12fb   : > { %v4627_v54 = vmul.f32 %v4617_v31, %v4608_v51  ;;  %v4626_v55 = vmul.f32 %v4613_v45, %v4607_v33  ;;  %v8278_v14 = vadd.f32 %v4636_v19, %v4625_v57  ;;  %v8282_v12 = vadd.f32 %v4632_v63, %v4624_v38  ;;  %5153 = vmatpush1.bf16.msra.mxu0 %v6867_v35 }
0x12fc   : > { %5154 = vmatprep.subr.bf16.mxu0 %v6872_v6 }
0x12fd   : > { %v8280_v7 = vadd.f32 %v4636_v19, %v4627_v54  ;;  %v8284_v53 = vadd.f32 %v4632_v63, %v4626_v55 }
0x12ff   : > { %v4650_v47 = vpack.c.bf16 %v8280_v7, %v8278_v14  ;;  %v4649_v58 = vpack.c.bf16 %v8284_v53, %v8282_v12  ;;  %5155 = vmatpush1.bf16.msra.mxu0 %v6870_v9 }
0x1301   : > { %4897 = vmatprep.mubr.bf16.mxu1 %v4650_v47 }
0x1302   : > { %4898 = vmatmul.mubr.bf16.gmra.mrb[64].mxu1 %v4649_v58 }
0x13cd   : > { %v4889_v40 = vpop.f32.mrb[60].mxu1 }
0x13ce   : > { %v4890_v56 = vadd.f32 %v4889_v40, %v4688_v39  ;;  %v4891_v44 = vpop.f32.mrb[61].mxu1 }
0x13cf   : > { %v4892_v29 = vadd.f32 %v4891_v44, %v4692_v42  ;;  %v4893_v4 = vpop.f32.mrb[62].mxu1 }
0x13d0   : > { %v4894_v11 = vadd.f32 %v4893_v4, %v4688_v39  ;;  %v4895_v62 = vpop.f32.mrb[63].mxu1  ;;  %v4908_v59 = vmax.f32 %v4890_v56, 0.0 }
0x13d1   : > { %v4896_v36 = vadd.f32 %v4895_v62, %v4692_v42  ;;  %v4909_v45 = vmax.f32 %v4892_v29, 0.0 }
0x13d2   : > { %v4910_v10 = vmax.f32 %v4894_v11, 0.0 }
0x13d3   : > { %v4911_v13 = vmax.f32 %v4896_v36, 0.0 }
0x13d4   : > { %v4916_v31 = vpack.c.bf16 %v4910_v10, %v4908_v59 }
0x13d5   : > { %v4917_v52 = vpack.c.bf16 %v4911_v13, %v4909_v45  ;;  %v4899_v15 = vpop.f32.mrb[64].mxu1 }
0x13d6   : > { %v4900_v46 = vadd.f32 %v4899_v15, %v4688_v39  ;;  %v4901_v23 = vpop.f32.mrb[65].mxu1 }
0x13d7   : > { %v4902_v63 = vadd.f32 %v4901_v23, %v4692_v42  ;;  %v4903_v19 = vpop.f32.mrb[66].mxu1  ;;  %5156 = vmatprep.mubr.bf16.mxu0 %v4917_v52 }
0x13d8   : > { %v4904_v37 = vadd.f32 %v4903_v19, %v4688_v39  ;;  %v4905_v61 = vpop.f32.mrb[67].mxu1  ;;  %5157 = vmatmul.mubr.bf16.vlgmr.msra.gmra.mrb[60].mxu0 %v4916_v31  ;;  %v4912_v48 = vmax.f32 %v4900_v46, 0.0 }
0x13d9   : > { %v4906_v27 = vadd.f32 %v4905_v61, %v4692_v42  ;;  %v4913_v8 = vmax.f32 %v4902_v63, 0.0 }
0x13da   : > { %v4914_v25 = vmax.f32 %v4904_v37, 0.0 }
0x13db   : > { %v4915_v43 = vmax.f32 %v4906_v27, 0.0 }
0x13dc   : > { %v4918_v41 = vpack.c.bf16 %v4914_v25, %v4912_v48 }
0x13dd   : > { %v4919_v60 = vpack.c.bf16 %v4915_v43, %v4913_v8 }
0x13df   : > { %5166 = vmatprep.mubr.bf16.mxu0 %v4919_v60 }
0x13e0   : > { %5167 = vmatmul.mubr.bf16.gmra.mrb[64].mxu0 %v4918_v41 }
0x14ab   : > { %v5158_v51 = vpop.f32.mrb[60].mxu0 }
0x14ac   : > { %v5159_v57 = vadd.f32 %v5158_v51, %v4957_v50  ;;  %v5160_v33 = vpop.f32.mrb[61].mxu0 }
0x14ad   : > { %v5161_v38 = vadd.f32 %v5160_v33, %v4961_v17  ;;  %v5162_v54 = vpop.f32.mrb[62].mxu0 }
0x14ae   : > { %v5177_v55 = vadd.f32 %v5159_v57, %v8266_v3  ;;  %v5163_v47 = vadd.f32 %v5162_v54, %v4957_v50  ;;  %v5164_v58 = vpop.f32.mrb[63].mxu0 }
0x14af   : > { %v5178_v26 = vadd.f32 %v5161_v38, %v8262_v0  ;;  %v5165_v35 = vadd.f32 %v5164_v58, %v4961_v17 }
0x14b0   : > { %v5179_v6 = vadd.f32 %v5163_v47, %v8268_v16 }
0x14b1   : > { %v5180_v9 = vadd.f32 %v5165_v35, %v8264_v49  ;;  %v5185_v2 = vadd.f32 %v5178_v26, %v5177_v55 }
0x14b3   : > { %5186 = vadd.xlane.f32.xlu0 %v5185_v2  ;;  %v5168_v39 = vpop.f32.mrb[64].mxu0  ;;  %v5188_v42 = vadd.f32 %v5180_v9, %v5179_v6 }
0x14b4   : > { %v5169_v40 = vadd.f32 %v5168_v39, %v4957_v50  ;;  %v5170_v56 = vpop.f32.mrb[65].mxu0 }
0x14b5   : > { %v5171_v44 = vadd.f32 %v5170_v56, %v4961_v17  ;;  %5189 = vadd.xlane.f32.xlu1 %v5188_v42  ;;  %v5172_v29 = vpop.f32.mrb[66].mxu0  ;;  %v5709_v42 = vld [vmem:[%s8460_s22 + $0x2] sm:$0x3] }
0x14b6   : > { %v5181_v3 = vadd.f32 %v5169_v40, %v8282_v12  ;;  %v5173_v4 = vadd.f32 %v5172_v29, %v4957_v50  ;;  %v5174_v11 = vpop.f32.mrb[67].mxu0 }
0x14b7   : > { %v5182_v0 = vadd.f32 %v5171_v44, %v8278_v14  ;;  %v5175_v62 = vadd.f32 %v5174_v11, %v4961_v17 }
0x14b8   : > { %v5183_v16 = vadd.f32 %v5173_v4, %v8284_v53  ;;  %v5276_v4 = vrot.slane %v5709_v42, %v7773_v18 }
0x14b9   : > { %v5184_v49 = vadd.f32 %v5175_v62, %v8280_v7  ;;  %v5191_v36 = vadd.f32 %v5182_v0, %v5181_v3 }
0x14bb   : > { %5192 = vadd.xlane.f32.xlu0 %v5191_v36  ;;  %v5194_v59 = vadd.f32 %v5184_v49, %v5183_v16 }
0x14bd   : > { %5195 = vadd.xlane.f32.xlu1 %v5194_v59 }
0x1540   : > { %v5187_v10 = vpop.xlane.xlu0 %5186 }
0x1541   : > { %v5197_v45 = vmul.f32 0.00390625, %v5187_v10 }
0x1542   : > { %v5190_v13 = vpop.xlane.xlu1 %5189 }
0x1543   : > { %v5201_v31 = vsub.f32 %v5177_v55, %v5197_v45  ;;  %v5202_v52 = vsub.f32 %v5178_v26, %v5197_v45  ;;  %v5198_v15 = vmul.f32 0.00390625, %v5190_v13 }
0x1545   : > { %v5203_v12 = vsub.f32 %v5179_v6, %v5198_v15  ;;  %v5204_v46 = vsub.f32 %v5180_v9, %v5198_v15  ;;  %v5209_v23 = vmul.f32 %v5201_v31, %v5201_v31  ;;  %v5210_v63 = vmul.f32 %v5202_v52, %v5202_v52  ;;  %v5708_v9 = vld [vmem:[%s8459_s16 + $0x2] sm:$0x3] }
0x1546   : > { %v5253_v56 = vrot.slane %v5708_v9, %v7706_v1  ;;  %v5257_v44 = vrot.slane %v5708_v9, %v7773_v18 }
0x1547   : > { %v5217_v14 = vadd.f32 %v5210_v63, %v5209_v23  ;;  %v5211_v19 = vmul.f32 %v5203_v12, %v5203_v12  ;;  %v5212_v37 = vmul.f32 %v5204_v46, %v5204_v46 }
0x1548   : > { %v5193_v53 = vpop.xlane.xlu0 %5192 }
0x1549   : > { %v5199_v61 = vmul.f32 0.00390625, %v5193_v53  ;;  %5218 = vadd.xlane.f32.xlu0 %v5217_v14  ;;  %v5220_v7 = vadd.f32 %v5212_v37, %v5211_v19 }
0x154a   : > { %v5196_v27 = vpop.xlane.xlu1 %5195 }
0x154b   : > { %v5205_v48 = vsub.f32 %v5181_v3, %v5199_v61  ;;  %v5206_v25 = vsub.f32 %v5182_v0, %v5199_v61  ;;  %v5200_v8 = vmul.f32 0.00390625, %v5196_v27  ;;  %5221 = vadd.xlane.f32.xlu1 %v5220_v7  ;;  %v5272_v3 = vrot.slane %v5709_v42, %v7706_v1 }
0x154d   : > { %v5207_v43 = vsub.f32 %v5183_v16, %v5200_v8  ;;  %v5208_v41 = vsub.f32 %v5184_v49, %v5200_v8  ;;  %v5213_v60 = vmul.f32 %v5205_v48, %v5205_v48  ;;  %v5214_v5 = vmul.f32 %v5206_v25, %v5206_v25 }
0x154f   : > { %v5223_v50 = vadd.f32 %v5214_v5, %v5213_v60  ;;  %v5215_v17 = vmul.f32 %v5207_v43, %v5207_v43  ;;  %v5216_v51 = vmul.f32 %v5208_v41, %v5208_v41 }
0x1551   : > { %5224 = vadd.xlane.f32.xlu0 %v5223_v50  ;;  %v5226_v57 = vadd.f32 %v5216_v51, %v5215_v17 }
0x1553   : > { %5227 = vadd.xlane.f32.xlu1 %v5226_v57 }
0x15d6   : > { %v5219_v33 = vpop.xlane.xlu0 %5218 }
0x15d7   : > { %v5229_v38 = vmul.f32 0.00390625, %v5219_v33 }
0x15d8   : > { %v5222_v54 = vpop.xlane.xlu1 %5221 }
0x15d9   : > { %v5233_v55 = vadd.f32 1e-05, %v5229_v38  ;;  %v5230_v47 = vmul.f32 0.00390625, %v5222_v54 }
0x15db   : > { %6961 = vrsqrt.f32 %v5233_v55  ;;  %v5234_v58 = vadd.f32 1e-05, %v5230_v47 }
0x15dd   : > { %6963 = vrsqrt.f32 %v5234_v58 }
0x15de   : > { %v5225_v26 = vpop.xlane.xlu0 %5224 }
0x15df   : > { %v5231_v35 = vmul.f32 0.00390625, %v5225_v26 }
0x15e0   : > { %v5228_v6 = vpop.xlane.xlu1 %5227 }
0x15e1   : > { %v5235_v2 = vadd.f32 1e-05, %v5231_v35  ;;  %v5232_v39 = vmul.f32 0.00390625, %v5228_v6 }
0x15e3   : > { %6965 = vrsqrt.f32 %v5235_v2  ;;  %v5236_v40 = vadd.f32 1e-05, %v5232_v39 }
0x15e5   : > { %v6962_v29 = vpop.eup %6961  ;;  %6967 = vrsqrt.f32 %v5236_v40 }
0x15e6   : > { %v5241_v11 = vmul.f32 %v6962_v29, %v5201_v31  ;;  %v5242_v0 = vmul.f32 %v6962_v29, %v5202_v52 }
0x15e7   : > { %v6964_v62 = vpop.eup %6963 }
0x15e8   : > { %v5260_v16 = vmul.f32 %v5253_v56, %v5241_v11  ;;  %v5261_v49 = vmul.f32 %v5257_v44, %v5242_v0  ;;  %v5243_v36 = vmul.f32 %v6964_v62, %v5203_v12  ;;  %v5244_v59 = vmul.f32 %v6964_v62, %v5204_v46 }
0x15ea   : > { %v5279_v10 = vadd.f32 %v5272_v3, %v5260_v16  ;;  %v5280_v45 = vadd.f32 %v5276_v4, %v5261_v49  ;;  %v5262_v13 = vmul.f32 %v5253_v56, %v5243_v36  ;;  %v5263_v15 = vmul.f32 %v5257_v44, %v5244_v59 }
0x15ec   : > { %v5287_v23 = vadd.f32 %v5279_v10, %v7669_v20  ;;  %v5288_v63 = vadd.f32 %v5280_v45, %v7671_v21  ;;  %v5281_v14 = vadd.f32 %v5272_v3, %v5262_v13  ;;  %v5282_v1 = vadd.f32 %v5276_v4, %v5263_v15 }
0x15ed   : > { %v6966_v19 = vpop.eup %6965 }
0x15ee   : > { %5295 = vst [vmem:[%s8321_s13] sm:$0xff] %v5287_v23  ;;  %5296 = vst [vmem:[%s8321_s13 + $0x8] sm:$0xff] %v5288_v63  ;;  %v5289_v18 = vadd.f32 %v5281_v14, %v7673_v22  ;;  %v5290_v31 = vadd.f32 %v5282_v1, %v7679_v24  ;;  %v5245_v20 = vmul.f32 %v6966_v19, %v5205_v48 }
0x15ef   : > { %v5246_v52 = vmul.f32 %v6966_v19, %v5206_v25  ;;  %v6968_v21 = vpop.eup %6967 }
0x15f0   : > { %5297 = vst [vmem:[%s8321_s13 + $0x10] sm:$0xff] %v5289_v18  ;;  %5298 = vst [vmem:[%s8321_s13 + $0x18] sm:$0xff] %v5290_v31  ;;  %v5264_v12 = vmul.f32 %v5253_v56, %v5245_v20  ;;  %v5247_v37 = vmul.f32 %v6968_v21, %v5207_v43  ;;  %v5248_v53 = vmul.f32 %v6968_v21, %v5208_v41 }
0x15f1   : > { %v5265_v46 = vmul.f32 %v5257_v44, %v5246_v52 }
0x15f2   : > { %v5283_v61 = vadd.f32 %v5272_v3, %v5264_v12  ;;  %v5266_v27 = vmul.f32 %v5253_v56, %v5247_v37  ;;  %v5267_v22 = vmul.f32 %v5257_v44, %v5248_v53 }
0x15f3   : > { %v5284_v7 = vadd.f32 %v5276_v4, %v5265_v46 }
0x15f4   : > { %v5291_v24 = vadd.f32 %v5283_v61, %v7685_v28  ;;  %v5285_v25 = vadd.f32 %v5272_v3, %v5266_v27  ;;  %v5286_v8 = vadd.f32 %v5276_v4, %v5267_v22 }
0x15f5   : > { %v5292_v48 = vadd.f32 %v5284_v7, %v7687_v30 }
0x15f6   : > { %5299 = vst [vmem:[%s8321_s13 + $0x20] sm:$0xff] %v5291_v24  ;;  %v5293_v43 = vadd.f32 %v5285_v25, %v7689_v32  ;;  %v5294_v28 = vadd.f32 %v5286_v8, %v7695_v34 }
0x15f7   : > { %5300 = vst [vmem:[%s8321_s13 + $0x28] sm:$0xff] %v5292_v48 }
0x15f8   : > { %5301 = vst [vmem:[%s8321_s13 + $0x30] sm:$0xff] %v5293_v43  ;;  %5302 = vst [vmem:[%s8321_s13 + $0x38] sm:$0xff] %v5294_v28 }
0x15f9   : > { %7186 = shalt.err (!%p7183_p8)
}
0x15fa   : > { %s7187_s27 = scalar_lea.hbm %s8336_s25, 1024  ;;  %s7191_s30 = scalar_lea.hbm %s8461_s11, 2048 }
0x15fb   : > { %p7188_p4 = scmp.ne.s32.totalorder %s8336_s25, %s7187_s27  ;;  %p7192_p1 = scmp.lt.u32.totalorder %s8336_s25, %s8461_s11 }
0x15fc   : > { %p7193_p11 = scmp.lt.u32.totalorder %s7191_s30, %s7187_s27  ;;  %p7195_p2 = scmp.lt.u32.totalorder %s7187_s27, %s8336_s25 }
0x15fd   : > { %p7189_p3 = pnand %p7188_p4, %p8462_p13 }
0x15fe   : > { %p7194_p12 = por %p7193_p11, %p7192_p1 }
0x15ff   : > { %p7190_p10 = pneg %p7189_p3 }
0x1600   : > { %p7196_p6 = por %p7195_p2, %p7194_p12 }
0x1602   : > { %p7197_p9 = pnand %p7196_p6, %p7190_p10 }
0x1604   : > { %7200 = shalt.err (!%p7197_p9)
}
0x1605   : > { %s7272_s2 = smov 256   ;;  %s7273_s15 = smov 16  }
0x1606   : > { %6184 = dma.vmem_to_hbm [thread:$0]  (%p8462_p13), %s8338_s7, 1024, %s8336_s25, %s5304_s24, %s7272_s2, %s7272_s2, %s7273_s15  }
0x1607 PF: > { %s5333_s3 = sand.u32 1, %s7243_s18   ;;  %p8463_p0 = scmp.ne.s32.totalorder %s8443_s29, 0 }
0x1608   : > { %p8464_p5 = scmp.ge.s32.totalorder %s7255_s21, 2  ;;  %s5334_s5 = scalar_lea.sflag [#allocation4], %s5333_s3 }
0x160a   : > { %p6210_p7 = pnand %p8464_p5, %p8463_p0 }
0x160c   : > { %7238 = dma.done.wait (!%p6210_p7), %s5334_s5, 1024  }
0x160d   : > { %7240 = vsyncadd (!%p6210_p7), %s5334_s5, 4294966272  ;;  %s8465_s27 = sld [smem:[#allocation21_spill]]  ;;  %p33_p8 = scmp.ge.s32.totalorder %s7520_s26, 4  }
0x160e   : > { %s8466_s18 = smov %s7247_s19  ;;  %s8467_s19 = smov %s7251_s20 }
0x160f   : > { %s8469_s21 = smov %s7520_s26  ;;  %35 = sbr.rel (!%p33_p8) target bundleno = 23 (0x17), region = 170 }
0x1613   : > { %s8468_s20 = smov %s8465_s27 }
0x1616   :  { %5339 = vsyncpa [#allocation3], 1 }
0x1617   :  { %5341 = vsyncpa [#allocation3 + $0x1], 1 }
0x1618   :  { %5342 = vsyncpa [#allocation6], 1 }
0x1619   :  { %5344 = vsyncpa [#allocation6 + $0x1], 1 }
0x161a   :  { %5345 = vsyncpa [#allocation9], 1 }
0x161b   :  { %5346 = vsyncpa [#allocation12], 1 }
0x161c   :  { %5347 = vsyncpa [#allocation4], 1 }
0x161d   :  { %5349 = vsyncpa [#allocation4 + $0x1], 1 }

</bundles_post_ra>
